<compile_context>
chip_gen: v7x
topology: tpu7x:2x2x1
jax: 0.10.0
libtpu: 0.0.40
codegen_flags: <defaults>
</compile_context>

<pallas_src>
import functools

import jax
import jax.numpy as jnp
from jax.experimental import pallas as pl
from jax.experimental.pallas import tpu as pltpu

EPS = 1e-5
LANES = 128
_HI = jax.lax.Precision.HIGHEST


# ------------------------------ small helpers ------------------------------ #
def _default_vmem_limit():
    """~3/4 of physical VMEM, capped at 100 MiB (v7x ~48 MiB, v5e/v6e ~96 MiB)."""
    try:
        cap = getattr(pltpu.get_tpu_info(), "vmem_capacity_bytes", None)
        if cap:
            return int(max(32 << 20, min((cap * 3) // 4, 100 << 20)))
    except Exception:
        pass
    return 48 << 20


_VMEM_LIMIT = _default_vmem_limit()


def _round_up(x, m):
    return (x + m - 1) // m * m


def _row_tile(ho, wo, max_rows=512):
    """Largest divisor of Ho giving <= max_rows output rows per tile (prefer >=2 tiles)."""
    cands = [t for t in range(1, ho + 1)
             if ho % t == 0 and t * wo <= max_rows and (t < ho or ho == 1)]
    return max(cands) if cands else 1


def _compiler_params(sem):
    return pltpu.CompilerParams(dimension_semantics=sem,
                                vmem_limit_bytes=_VMEM_LIMIT)


def _stat_rows(s1, s2c, co):
    """Pack per-channel sum / centered sum-of-squares into an (8, co) slab."""
    row = jax.lax.broadcasted_iota(jnp.int32, (8, co), 0)
    return jnp.where(row == 0, s1[None, :],
                     jnp.where(row == 1, s2c[None, :], 0.0))


def _tile_stats(acc):
    """Per-tile BN partials: sum and *centered* sum-of-squares (f32)."""
    rows = acc.shape[0]
    s1 = jnp.sum(acc, axis=0)
    mu = s1 * (1.0 / rows)
    d = acc - mu[None, :]
    s2c = jnp.sum(d * d, axis=0)
    return _stat_rows(s1, s2c, acc.shape[-1])


# ------------------------------ Pallas kernels ----------------------------- #
def _conv_taps(ph_ref, w_ref, r0, stride, th, wo, shortcut_w_ref=None):
    """9 accumulated tap matmuls over the phase-split padded input.

    ph_ref : (P, Hph, Wph, Ci) bf16  (full sample, resident in VMEM)
    w_ref  : (9, Ci, Co)       bf16  tap-major weights
    Also (optionally) the fused 1x1 shortcut matmul, whose input is exactly
    the centre tap (kh=kw=1) patch.
    """
    ci = ph_ref.shape[-1]
    co = w_ref.shape[-1]
    acc = jnp.zeros((th * wo, co), jnp.float32)
    acc_s = None
    for kh in range(3):
        for kw in range(3):
            p = (kh % stride) * stride + (kw % stride)
            dh, dw = kh // stride, kw // stride
            patch = ph_ref[p, pl.ds(r0 + dh, th), dw:dw + wo, :]
            patm = patch.reshape(th * wo, ci)
            acc = acc + jnp.dot(patm, w_ref[kh * 3 + kw],
                                preferred_element_type=jnp.float32)
            if shortcut_w_ref is not None and kh == 1 and kw == 1:
                acc_s = jnp.dot(patm, shortcut_w_ref[0],
                                preferred_element_type=jnp.float32)
    return acc, acc_s


def _conv1_kernel(ph_ref, w_ref, y_ref, st_ref, *, stride, th, wo):
    r0 = pl.program_id(1) * th
    acc, _ = _conv_taps(ph_ref, w_ref, r0, stride, th, wo)
    y_ref[...] = acc.reshape(th, wo, -1).astype(y_ref.dtype)
    st_ref[...] = _tile_stats(acc)


def _conv1_sc_kernel(ph_ref, w_ref, ws_ref, y_ref, st_ref, ys_ref, sts_ref, *,
                     stride, th, wo):
    r0 = pl.program_id(1) * th
    acc, acc_s = _conv_taps(ph_ref, w_ref, r0, stride, th, wo,
                            shortcut_w_ref=ws_ref)
    y_ref[...] = acc.reshape(th, wo, -1).astype(y_ref.dtype)
    st_ref[...] = _tile_stats(acc)
    ys_ref[...] = acc_s.reshape(th, wo, -1).astype(ys_ref.dtype)
    sts_ref[...] = _tile_stats(acc_s)


def _conv2_kernel(y1_ref, sc_ref, sh_ref, w_ref, y_ref, st_ref, hpad_ref, *,
                  th, ho, wo):
    """Fused BN1+ReLU+zero-pad (per sample, into VMEM scratch) + 3x3 stride-1
    conv over row tiles + BN2 partial stats."""
    j = pl.program_id(1)
    ci = y1_ref.shape[-1]
    co = w_ref.shape[-1]

    @pl.when(j == 0)
    def _():
        hpad_ref[...] = jnp.zeros(hpad_ref.shape, hpad_ref.dtype)
        h = jnp.maximum(
            y1_ref[...].astype(jnp.float32) * sc_ref[...] + sh_ref[...], 0.0)
        hpad_ref[1:ho + 1, 1:wo + 1, :] = h.astype(hpad_ref.dtype)

    r0 = j * th
    acc = jnp.zeros((th * wo, co), jnp.float32)
    for kh in range(3):
        for kw in range(3):
            patch = hpad_ref[pl.ds(r0 + kh, th), kw:kw + wo, :]
            acc = acc + jnp.dot(patch.reshape(th * wo, ci), w_ref[kh * 3 + kw],
                                preferred_element_type=jnp.float32)
    y_ref[...] = acc.reshape(th, wo, co).astype(y_ref.dtype)
    st_ref[...] = _tile_stats(acc)


def _epi_convsc_kernel(y2_ref, ys_ref, sc2_ref, sh2_ref, scs_ref, shs_ref, o_ref):
    """BN(left) + BN(1x1-conv shortcut) + add + ReLU, row-tiled, bf16 out."""
    left = y2_ref[...].astype(jnp.float32) * sc2_ref[...] + sh2_ref[...]
    right = ys_ref[...].astype(jnp.float32) * scs_ref[...] + shs_ref[...]
    o_ref[...] = jnp.maximum(left + right, 0.0).astype(o_ref.dtype)


def _epi_identity_kernel(y2_ref, x_ref, sc2_ref, sh2_ref, o_ref):
    """BN(left) + identity shortcut + add + ReLU, row-tiled, bf16 out."""
    left = y2_ref[...].astype(jnp.float32) * sc2_ref[...] + sh2_ref[...]
    o_ref[...] = jnp.maximum(left + x_ref[...], 0.0).astype(o_ref.dtype)


# --------------------------- pallas_call wrappers --------------------------- #
def _conv1(phases, w_mat, ws_mat, *, stride, th, ho, wo, co):
    n, p, hph, wph, ci = phases.shape
    nt = ho // th
    has_sc = ws_mat is not None
    kernel = functools.partial(_conv1_sc_kernel if has_sc else _conv1_kernel,
                               stride=stride, th=th, wo=wo)

    in_specs = [pl.BlockSpec((None, p, hph, wph, ci),
                             lambda i, j: (i, 0, 0, 0, 0)),
                pl.BlockSpec((9, ci, co), lambda i, j: (0, 0, 0))]
    ins = [phases, w_mat]
    out_shape = [jax.ShapeDtypeStruct((n, ho, wo, co), jnp.bfloat16),
                 jax.ShapeDtypeStruct((n, nt, 8, co), jnp.float32)]
    out_specs = [pl.BlockSpec((None, th, wo, co), lambda i, j: (i, j, 0, 0)),
                 pl.BlockSpec((None, None, 8, co), lambda i, j: (i, j, 0, 0))]
    if has_sc:
        in_specs.append(pl.BlockSpec((1, ci, co), lambda i, j: (0, 0, 0)))
        ins.append(ws_mat)
        out_shape += [jax.ShapeDtypeStruct((n, ho, wo, co), jnp.bfloat16),
                      jax.ShapeDtypeStruct((n, nt, 8, co), jnp.float32)]
        out_specs += [pl.BlockSpec((None, th, wo, co), lambda i, j: (i, j, 0, 0)),
                      pl.BlockSpec((None, None, 8, co), lambda i, j: (i, j, 0, 0))]

    return pl.pallas_call(
        kernel,
        out_shape=tuple(out_shape),
        grid=(n, nt),
        in_specs=in_specs,
        out_specs=tuple(out_specs),
        compiler_params=_compiler_params(("parallel", "parallel")),
    )(*ins)


def _conv2(y1, sc1, sh1, w_mat, *, th, ho, wo):
    n = y1.shape[0]
    ci = y1.shape[-1]
    co = w_mat.shape[-1]
    nt = ho // th
    kernel = functools.partial(_conv2_kernel, th=th, ho=ho, wo=wo)
    return pl.pallas_call(
        kernel,
        out_shape=(jax.ShapeDtypeStruct((n, ho, wo, co), jnp.bfloat16),
                   jax.ShapeDtypeStruct((n, nt, 8, co), jnp.float32)),
        grid=(n, nt),
        in_specs=[pl.BlockSpec((None, ho, wo, ci), lambda i, j: (i, 0, 0, 0)),
                  pl.BlockSpec((1, ci), lambda i, j: (0, 0)),
                  pl.BlockSpec((1, ci), lambda i, j: (0, 0)),
                  pl.BlockSpec((9, ci, co), lambda i, j: (0, 0, 0))],
        out_specs=(pl.BlockSpec((None, th, wo, co), lambda i, j: (i, j, 0, 0)),
                   pl.BlockSpec((None, None, 8, co), lambda i, j: (i, j, 0, 0))),
        scratch_shapes=[pltpu.VMEM((ho + 2, wo + 2, ci), jnp.bfloat16)],
        compiler_params=_compiler_params(("parallel", "arbitrary")),
    )(y1, sc1, sh1, w_mat)


def _epilogue_convsc(y2, ys, sc2, sh2, scs, shs, *, th):
    n, ho, wo, co = y2.shape
    nt = ho // th
    tile = lambda: pl.BlockSpec((None, th, wo, co), lambda i, j: (i, j, 0, 0))
    vec = lambda: pl.BlockSpec((1, co), lambda i, j: (0, 0))
    return pl.pallas_call(
        _epi_convsc_kernel,
        out_shape=jax.ShapeDtypeStruct((n, ho, wo, co), jnp.bfloat16),
        grid=(n, nt),
        in_specs=[tile(), tile(), vec(), vec(), vec(), vec()],
        out_specs=tile(),
        compiler_params=_compiler_params(("parallel", "parallel")),
    )(y2, ys, sc2, sh2, scs, shs)


def _epilogue_identity(y2, x_p, sc2, sh2, *, th):
    n, ho, wo, co = y2.shape
    nt = ho // th
    tile = lambda: pl.BlockSpec((None, th, wo, co), lambda i, j: (i, j, 0, 0))
    vec = lambda: pl.BlockSpec((1, co), lambda i, j: (0, 0))
    return pl.pallas_call(
        _epi_identity_kernel,
        out_shape=jax.ShapeDtypeStruct((n, ho, wo, co), jnp.bfloat16),
        grid=(n, nt),
        in_specs=[tile(), tile(), vec(), vec()],
        out_specs=tile(),
        compiler_params=_compiler_params(("parallel", "parallel")),
    )(y2, x_p, sc2, sh2)


# --------------------------------- JAX glue --------------------------------- #
def _make_phases(x, stride, pad=1):
    """Phase-decompose a (channel-padded) NHWC activation for a 3x3 conv.

    Returns (N, stride*stride, Hph, Wph, C) so the 9 taps become contiguous
    in-kernel slices; total size ~= 1x the input.
    """
    n, h, w, c = x.shape
    ho = (h + 2 * pad - 3) // stride + 1
    wo = (w + 2 * pad - 3) // stride + 1
    xp = jnp.pad(x, ((0, 0), (pad, pad), (pad, pad), (0, 0)))
    if stride == 1:
        return xp[:, None], ho, wo
    need_h = ho + 2 // stride
    need_w = wo + 2 // stride
    phases = []
    for a in range(stride):
        for b in range(stride):
            ph = xp[:, a::stride, b::stride, :][:, :need_h, :need_w, :]
            ph = jnp.pad(ph, ((0, 0), (0, need_h - ph.shape[1]),
                              (0, need_w - ph.shape[2]), (0, 0)))
            phases.append(ph)
    return jnp.stack(phases, axis=1), ho, wo


def _w3x3(w, ci_p, co_p):
    """PyTorch (Cout, Cin, 3, 3) -> (9, Ci_pad, Co_pad) bf16, tap = kh*3+kw."""
    co, ci = w.shape[0], w.shape[1]
    wk = jnp.transpose(w, (2, 3, 1, 0)).reshape(9, ci, co)
    return jnp.pad(wk, ((0, 0), (0, ci_p - ci), (0, co_p - co))).astype(jnp.bfloat16)


def _w1x1(w, ci_p, co_p):
    """PyTorch (Cout, Cin, 1, 1) -> (1, Ci_pad, Co_pad) bf16."""
    co, ci = w.shape[0], w.shape[1]
    wm = jnp.transpose(w[:, :, 0, 0], (1, 0))
    wm = jnp.pad(wm, ((0, ci_p - ci), (0, co_p - co))).astype(jnp.bfloat16)
    return wm[None]


def _pad_vec(v, c):
    return jnp.pad(v.astype(jnp.float32), (0, c - v.shape[0]))


def _bn_scale_shift(stats, rows, gamma_pad, beta_pad):
    """Finalize training-mode BN from per-tile (sum, centered sumsq) partials."""
    s1 = stats[:, 0, :]                       # (T, C) per-tile sums
    s2c = stats[:, 1, :]                      # (T, C) per-tile centered sumsq
    count = stats.shape[0] * rows
    mean = jnp.sum(s1, axis=0) / count
    mu_t = s1 / rows
    var = (jnp.sum(s2c, axis=0)
           + rows * jnp.sum(jnp.square(mu_t - mean[None, :]), axis=0)) / count
    var = jnp.maximum(var, 0.0)
    scale = gamma_pad * jax.lax.rsqrt(var + EPS)
    shift = beta_pad - mean * scale
    return scale[None, :], shift[None, :]


def init_params(key, inchannel, outchannel, stride):
    k1, k2, k3 = jax.random.split(key, 3)
    params = {
        "w1": 0.1 * jax.random.normal(k1, (outchannel, inchannel, 3, 3), jnp.float32),
        "g1": jnp.ones((outchannel,), jnp.float32),
        "b1": jnp.zeros((outchannel,), jnp.float32),
        "w2": 0.1 * jax.random.normal(k2, (outchannel, outchannel, 3, 3), jnp.float32),
        "g2": jnp.ones((outchannel,), jnp.float32),
        "b2": jnp.zeros((outchannel,), jnp.float32),
    }
    if stride != 1 or inchannel != outchannel:
        params["ws"] = 0.1 * jax.random.normal(
            k3, (outchannel, inchannel, 1, 1), jnp.float32)
        params["gs"] = jnp.ones((outchannel,), jnp.float32)
        params["bs"] = jnp.zeros((outchannel,), jnp.float32)
    return params


@functools.partial(jax.jit, static_argnames=("stride",))
def residual_block_pallas(x_nchw, params, stride):
    n, cin, h, w = x_nchw.shape
    cout = params["w1"].shape[0]
    ci_p = _round_up(cin, LANES)
    co_p = _round_up(cout, LANES)
    has_sc = "ws" in params

    x = jnp.transpose(x_nchw, (0, 2, 3, 1)).astype(jnp.float32)          # NHWC
    x_p = jnp.pad(x, ((0, 0), (0, 0), (0, 0), (0, ci_p - cin)))          # lane-pad

    # ---- conv1 (3x3, stride) [+ fused 1x1 shortcut conv] + BN partial stats ----
    phases, ho, wo = _make_phases(x_p.astype(jnp.bfloat16), stride)
    th = _row_tile(ho, wo)
    nt = ho // th
    rows = th * wo
    m_tiles = n * nt

    w1 = _w3x3(params["w1"], ci_p, co_p)
    w2 = _w3x3(params["w2"], co_p, co_p)

    if has_sc:
        ws = _w1x1(params["ws"], ci_p, co_p)
        y1, st1, ys, sts = _conv1(phases, w1, ws, stride=stride, th=th,
                                  ho=ho, wo=wo, co=co_p)
    else:
        y1, st1 = _conv1(phases, w1, None, stride=stride, th=th,
                         ho=ho, wo=wo, co=co_p)

    sc1, sh1 = _bn_scale_shift(st1.reshape(m_tiles, 8, co_p), rows,
                               _pad_vec(params["g1"], co_p),
                               _pad_vec(params["b1"], co_p))

    # ---- conv2 (fused BN1 + ReLU + pad in-kernel) + BN2 partial stats ----
    y2, st2 = _conv2(y1, sc1, sh1, w2, th=th, ho=ho, wo=wo)
    sc2, sh2 = _bn_scale_shift(st2.reshape(m_tiles, 8, co_p), rows,
                               _pad_vec(params["g2"], co_p),
                               _pad_vec(params["b2"], co_p))

    # ---- BN(left) + shortcut + add + ReLU (row-tiled epilogue, bf16 out) ----
    if has_sc:
        scs, shs = _bn_scale_shift(sts.reshape(m_tiles, 8, co_p), rows,
                                   _pad_vec(params["gs"], co_p),
                                   _pad_vec(params["bs"], co_p))
        out = _epilogue_convsc(y2, ys, sc2, sh2, scs, shs, th=th)
    else:
        out = _epilogue_identity(y2, x_p, sc2, sh2, th=th)

    out = out[..., :cout].astype(jnp.float32)
    return jnp.transpose(out, (0, 3, 1, 2))                              # NCHW


# ---------------------------- pure-JAX reference ---------------------------- #
def residual_block_ref(x, params, stride):
    def conv(x, w, s, p):
        return jax.lax.conv_general_dilated(
            x, w, (s, s), [(p, p), (p, p)],
            dimension_numbers=("NCHW", "OIHW", "NCHW"), precision=_HI)

    def bn(y, g, b):
        mean = y.mean(axis=(0, 2, 3), keepdims=True)
        var = ((y - mean) ** 2).mean(axis=(0, 2, 3), keepdims=True)
        yn = (y - mean) * jax.lax.rsqrt(var + EPS)
        return yn * g[None, :, None, None] + b[None, :, None, None]

    left = jax.nn.relu(bn(conv(x, params["w1"], stride, 1), params["g1"], params["b1"]))
    left = bn(conv(left, params["w2"], 1, 1), params["g2"], params["b2"])
    if "ws" in params:
        short = bn(conv(x, params["ws"], stride, 0), params["gs"], params["bs"])
    else:
        short = x
    return jax.nn.relu(left + short)


# ----------------------------------- main ----------------------------------- #
if __name__ == "__main__":
    key = jax.random.PRNGKey(0)
    kx, kp1, kp2 = jax.random.split(key, 3)
    x = jax.random.normal(kx, (2, 4, 16, 16), jnp.float32)

    # Case 1: downsampling block with conv shortcut (stride=2, 4 -> 8 channels)
    params = init_params(kp1, inchannel=4, outchannel=8, stride=2)
    out = jax.block_until_ready(residual_block_pallas(x, params, stride=2))
    ref = residual_block_ref(x, params, 2)
    assert out.shape == (2, 8, 8, 8), out.shape
    # bf16 MXU operands + bf16 HBM intermediates vs f32-HIGHEST reference.
    err = float(jnp.max(jnp.abs(out - ref)))
    assert jnp.allclose(out, ref, atol=3e-2, rtol=3e-2), f"mismatch (conv sc) {err}"

    # Case 2: identity-shortcut block (stride=1, 4 -> 4 channels)
    params_id = init_params(kp2, inchannel=4, outchannel=4, stride=1)
    out_id = jax.block_until_ready(residual_block_pallas(x, params_id, stride=1))
    ref_id = residual_block_ref(x, params_id, 1)
    assert out_id.shape == (2, 4, 16, 16), out_id.shape
    err_id = float(jnp.max(jnp.abs(out_id - ref_id)))
    assert jnp.allclose(out_id, ref_id, atol=3e-2, rtol=3e-2), f"mismatch (id) {err_id}"

    print("KERNEL_OK")
</pallas_src>

<mosaic_0001>
module attributes {stable_mosaic.version = 11 : i64} {
  func.func @_conv1_sc_kernel(%arg0: i32, %arg1: i32, %arg2: memref<1x4x9x9x128xbf16, #tpu.memory_space<vmem>>, %arg3: memref<9x128x128xbf16, #tpu.memory_space<vmem>>, %arg4: memref<1x128x128xbf16, #tpu.memory_space<vmem>>, %arg5: memref<1x4x8x128xbf16, #tpu.memory_space<vmem>>, %arg6: memref<1x1x8x128xf32, #tpu.memory_space<vmem>>, %arg7: memref<1x4x8x128xbf16, #tpu.memory_space<vmem>>, %arg8: memref<1x1x8x128xf32, #tpu.memory_space<vmem>>) attributes {dimension_semantics = [#tpu.dimension_semantics<parallel>, #tpu.dimension_semantics<parallel>], iteration_bounds = array<i64: 2, 2>, scalar_prefetch = 0 : i64, scratch_operands = 0 : i64, tpu.core_type = #tpu.core_type<tc>, window_params = [{transform_indices = @transform_0, window_bounds = array<i64: 1, 4, 9, 9, 128>}, {pipeline_mode = #tpu.pipeline_mode<synchronous>, transform_indices = @transform_1, window_bounds = array<i64: 9, 128, 128>}, {pipeline_mode = #tpu.pipeline_mode<synchronous>, transform_indices = @transform_2, window_bounds = array<i64: 1, 128, 128>}, {transform_indices = @transform_3, window_bounds = array<i64: 1, 4, 8, 128>}, {transform_indices = @transform_4, window_bounds = array<i64: 1, 1, 8, 128>}, {transform_indices = @transform_5, window_bounds = array<i64: 1, 4, 8, 128>}, {transform_indices = @transform_6, window_bounds = array<i64: 1, 1, 8, 128>}]} {
    %c4_i32 = arith.constant 4 : i32
    %0 = arith.muli %arg1, %c4_i32 : i32
    %cst = arith.constant 0.000000e+00 : f32
    %1 = vector.broadcast %cst : f32 to vector<32x128xf32>
    %c0_i32 = arith.constant 0 : i32
    %2 = arith.addi %0, %c0_i32 : i32
    %c0 = arith.constant 0 : index
    %c0_0 = arith.constant 0 : index
    %3 = arith.index_cast %2 : i32 to index
    %c0_1 = arith.constant 0 : index
    %c0_2 = arith.constant 0 : index
    %4 = vector.load %arg2[%c0, %c0_0, %3, %c0_1, %c0_2] : memref<1x4x9x9x128xbf16, #tpu.memory_space<vmem>>, vector<1x1x4x8x128xbf16>
    %5 = vector.shape_cast %4 : vector<1x1x4x8x128xbf16> to vector<4x8x128xbf16>
    %6 = vector.shape_cast %5 : vector<4x8x128xbf16> to vector<32x128xbf16>
    %c0_3 = arith.constant 0 : index
    %c0_4 = arith.constant 0 : index
    %c0_5 = arith.constant 0 : index
    %7 = vector.load %arg3[%c0_3, %c0_4, %c0_5] : memref<9x128x128xbf16, #tpu.memory_space<vmem>>, vector<1x128x128xbf16>
    %8 = vector.shape_cast %7 : vector<1x128x128xbf16> to vector<128x128xbf16>
    %cst_6 = arith.constant dense<0.000000e+00> : vector<32x128xf32>
    %9 = tpu.matmul %6, %8, %cst_6 {dimension_numbers = #tpu.dot_dimension_numbers<[1], [0], [0], [1], [0, 0, 1, 1], [], []>} : vector<32x128xbf16>, vector<128x128xbf16>, vector<32x128xf32> -> vector<32x128xf32>
    %10 = arith.addf %1, %9 : vector<32x128xf32>
    %c0_i32_7 = arith.constant 0 : i32
    %11 = arith.addi %0, %c0_i32_7 : i32
    %c0_8 = arith.constant 0 : index
    %c1 = arith.constant 1 : index
    %12 = arith.index_cast %11 : i32 to index
    %c0_9 = arith.constant 0 : index
    %c0_10 = arith.constant 0 : index
    %13 = vector.load %arg2[%c0_8, %c1, %12, %c0_9, %c0_10] : memref<1x4x9x9x128xbf16, #tpu.memory_space<vmem>>, vector<1x1x4x8x128xbf16>
    %14 = vector.shape_cast %13 : vector<1x1x4x8x128xbf16> to vector<4x8x128xbf16>
    %15 = vector.shape_cast %14 : vector<4x8x128xbf16> to vector<32x128xbf16>
    %c1_11 = arith.constant 1 : index
    %c0_12 = arith.constant 0 : index
    %c0_13 = arith.constant 0 : index
    %16 = vector.load %arg3[%c1_11, %c0_12, %c0_13] : memref<9x128x128xbf16, #tpu.memory_space<vmem>>, vector<1x128x128xbf16>
    %17 = vector.shape_cast %16 : vector<1x128x128xbf16> to vector<128x128xbf16>
    %cst_14 = arith.constant dense<0.000000e+00> : vector<32x128xf32>
    %18 = tpu.matmul %15, %17, %cst_14 {dimension_numbers = #tpu.dot_dimension_numbers<[1], [0], [0], [1], [0, 0, 1, 1], [], []>} : vector<32x128xbf16>, vector<128x128xbf16>, vector<32x128xf32> -> vector<32x128xf32>
    %19 = arith.addf %10, %18 : vector<32x128xf32>
    %c0_i32_15 = arith.constant 0 : i32
    %20 = arith.addi %0, %c0_i32_15 : i32
    %c0_16 = arith.constant 0 : index
    %c0_17 = arith.constant 0 : index
    %21 = arith.index_cast %20 : i32 to index
    %c1_18 = arith.constant 1 : index
    %c0_19 = arith.constant 0 : index
    %22 = vector.load %arg2[%c0_16, %c0_17, %21, %c1_18, %c0_19] : memref<1x4x9x9x128xbf16, #tpu.memory_space<vmem>>, vector<1x1x4x8x128xbf16>
    %23 = vector.shape_cast %22 : vector<1x1x4x8x128xbf16> to vector<4x8x128xbf16>
    %24 = vector.shape_cast %23 : vector<4x8x128xbf16> to vector<32x128xbf16>
    %c2 = arith.constant 2 : index
    %c0_20 = arith.constant 0 : index
    %c0_21 = arith.constant 0 : index
    %25 = vector.load %arg3[%c2, %c0_20, %c0_21] : memref<9x128x128xbf16, #tpu.memory_space<vmem>>, vector<1x128x128xbf16>
    %26 = vector.shape_cast %25 : vector<1x128x128xbf16> to vector<128x128xbf16>
    %cst_22 = arith.constant dense<0.000000e+00> : vector<32x128xf32>
    %27 = tpu.matmul %24, %26, %cst_22 {dimension_numbers = #tpu.dot_dimension_numbers<[1], [0], [0], [1], [0, 0, 1, 1], [], []>} : vector<32x128xbf16>, vector<128x128xbf16>, vector<32x128xf32> -> vector<32x128xf32>
    %28 = arith.addf %19, %27 : vector<32x128xf32>
    %c0_i32_23 = arith.constant 0 : i32
    %29 = arith.addi %0, %c0_i32_23 : i32
    %c0_24 = arith.constant 0 : index
    %c2_25 = arith.constant 2 : index
    %30 = arith.index_cast %29 : i32 to index
    %c0_26 = arith.constant 0 : index
    %c0_27 = arith.constant 0 : index
    %31 = vector.load %arg2[%c0_24, %c2_25, %30, %c0_26, %c0_27] : memref<1x4x9x9x128xbf16, #tpu.memory_space<vmem>>, vector<1x1x4x8x128xbf16>
    %32 = vector.shape_cast %31 : vector<1x1x4x8x128xbf16> to vector<4x8x128xbf16>
    %33 = vector.shape_cast %32 : vector<4x8x128xbf16> to vector<32x128xbf16>
    %c3 = arith.constant 3 : index
    %c0_28 = arith.constant 0 : index
    %c0_29 = arith.constant 0 : index
    %34 = vector.load %arg3[%c3, %c0_28, %c0_29] : memref<9x128x128xbf16, #tpu.memory_space<vmem>>, vector<1x128x128xbf16>
    %35 = vector.shape_cast %34 : vector<1x128x128xbf16> to vector<128x128xbf16>
    %cst_30 = arith.constant dense<0.000000e+00> : vector<32x128xf32>
    %36 = tpu.matmul %33, %35, %cst_30 {dimension_numbers = #tpu.dot_dimension_numbers<[1], [0], [0], [1], [0, 0, 1, 1], [], []>} : vector<32x128xbf16>, vector<128x128xbf16>, vector<32x128xf32> -> vector<32x128xf32>
    %37 = arith.addf %28, %36 : vector<32x128xf32>
    %c0_i32_31 = arith.constant 0 : i32
    %38 = arith.addi %0, %c0_i32_31 : i32
    %c0_32 = arith.constant 0 : index
    %c3_33 = arith.constant 3 : index
    %39 = arith.index_cast %38 : i32 to index
    %c0_34 = arith.constant 0 : index
    %c0_35 = arith.constant 0 : index
    %40 = vector.load %arg2[%c0_32, %c3_33, %39, %c0_34, %c0_35] : memref<1x4x9x9x128xbf16, #tpu.memory_space<vmem>>, vector<1x1x4x8x128xbf16>
    %41 = vector.shape_cast %40 : vector<1x1x4x8x128xbf16> to vector<4x8x128xbf16>
    %42 = vector.shape_cast %41 : vector<4x8x128xbf16> to vector<32x128xbf16>
    %c4 = arith.constant 4 : index
    %c0_36 = arith.constant 0 : index
    %c0_37 = arith.constant 0 : index
    %43 = vector.load %arg3[%c4, %c0_36, %c0_37] : memref<9x128x128xbf16, #tpu.memory_space<vmem>>, vector<1x128x128xbf16>
    %44 = vector.shape_cast %43 : vector<1x128x128xbf16> to vector<128x128xbf16>
    %cst_38 = arith.constant dense<0.000000e+00> : vector<32x128xf32>
    %45 = tpu.matmul %42, %44, %cst_38 {dimension_numbers = #tpu.dot_dimension_numbers<[1], [0], [0], [1], [0, 0, 1, 1], [], []>} : vector<32x128xbf16>, vector<128x128xbf16>, vector<32x128xf32> -> vector<32x128xf32>
    %46 = arith.addf %37, %45 : vector<32x128xf32>
    %c0_39 = arith.constant 0 : index
    %c0_40 = arith.constant 0 : index
    %c0_41 = arith.constant 0 : index
    %47 = vector.load %arg4[%c0_39, %c0_40, %c0_41] : memref<1x128x128xbf16, #tpu.memory_space<vmem>>, vector<1x128x128xbf16>
    %48 = vector.shape_cast %47 : vector<1x128x128xbf16> to vector<128x128xbf16>
    %cst_42 = arith.constant dense<0.000000e+00> : vector<32x128xf32>
    %49 = tpu.matmul %42, %48, %cst_42 {dimension_numbers = #tpu.dot_dimension_numbers<[1], [0], [0], [1], [0, 0, 1, 1], [], []>} : vector<32x128xbf16>, vector<128x128xbf16>, vector<32x128xf32> -> vector<32x128xf32>
    %c0_i32_43 = arith.constant 0 : i32
    %50 = arith.addi %0, %c0_i32_43 : i32
    %c0_44 = arith.constant 0 : index
    %c2_45 = arith.constant 2 : index
    %51 = arith.index_cast %50 : i32 to index
    %c1_46 = arith.constant 1 : index
    %c0_47 = arith.constant 0 : index
    %52 = vector.load %arg2[%c0_44, %c2_45, %51, %c1_46, %c0_47] : memref<1x4x9x9x128xbf16, #tpu.memory_space<vmem>>, vector<1x1x4x8x128xbf16>
    %53 = vector.shape_cast %52 : vector<1x1x4x8x128xbf16> to vector<4x8x128xbf16>
    %54 = vector.shape_cast %53 : vector<4x8x128xbf16> to vector<32x128xbf16>
    %c5 = arith.constant 5 : index
    %c0_48 = arith.constant 0 : index
    %c0_49 = arith.constant 0 : index
    %55 = vector.load %arg3[%c5, %c0_48, %c0_49] : memref<9x128x128xbf16, #tpu.memory_space<vmem>>, vector<1x128x128xbf16>
    %56 = vector.shape_cast %55 : vector<1x128x128xbf16> to vector<128x128xbf16>
    %cst_50 = arith.constant dense<0.000000e+00> : vector<32x128xf32>
    %57 = tpu.matmul %54, %56, %cst_50 {dimension_numbers = #tpu.dot_dimension_numbers<[1], [0], [0], [1], [0, 0, 1, 1], [], []>} : vector<32x128xbf16>, vector<128x128xbf16>, vector<32x128xf32> -> vector<32x128xf32>
    %58 = arith.addf %46, %57 : vector<32x128xf32>
    %c1_i32 = arith.constant 1 : i32
    %59 = arith.addi %0, %c1_i32 : i32
    %c0_51 = arith.constant 0 : index
    %c0_52 = arith.constant 0 : index
    %60 = arith.index_cast %59 : i32 to index
    %c0_53 = arith.constant 0 : index
    %c0_54 = arith.constant 0 : index
    %61 = vector.load %arg2[%c0_51, %c0_52, %60, %c0_53, %c0_54] : memref<1x4x9x9x128xbf16, #tpu.memory_space<vmem>>, vector<1x1x4x8x128xbf16>
    %62 = vector.shape_cast %61 : vector<1x1x4x8x128xbf16> to vector<4x8x128xbf16>
    %63 = vector.shape_cast %62 : vector<4x8x128xbf16> to vector<32x128xbf16>
    %c6 = arith.constant 6 : index
    %c0_55 = arith.constant 0 : index
    %c0_56 = arith.constant 0 : index
    %64 = vector.load %arg3[%c6, %c0_55, %c0_56] : memref<9x128x128xbf16, #tpu.memory_space<vmem>>, vector<1x128x128xbf16>
    %65 = vector.shape_cast %64 : vector<1x128x128xbf16> to vector<128x128xbf16>
    %cst_57 = arith.constant dense<0.000000e+00> : vector<32x128xf32>
    %66 = tpu.matmul %63, %65, %cst_57 {dimension_numbers = #tpu.dot_dimension_numbers<[1], [0], [0], [1], [0, 0, 1, 1], [], []>} : vector<32x128xbf16>, vector<128x128xbf16>, vector<32x128xf32> -> vector<32x128xf32>
    %67 = arith.addf %58, %66 : vector<32x128xf32>
    %c1_i32_58 = arith.constant 1 : i32
    %68 = arith.addi %0, %c1_i32_58 : i32
    %c0_59 = arith.constant 0 : index
    %c1_60 = arith.constant 1 : index
    %69 = arith.index_cast %68 : i32 to index
    %c0_61 = arith.constant 0 : index
    %c0_62 = arith.constant 0 : index
    %70 = vector.load %arg2[%c0_59, %c1_60, %69, %c0_61, %c0_62] : memref<1x4x9x9x128xbf16, #tpu.memory_space<vmem>>, vector<1x1x4x8x128xbf16>
    %71 = vector.shape_cast %70 : vector<1x1x4x8x128xbf16> to vector<4x8x128xbf16>
    %72 = vector.shape_cast %71 : vector<4x8x128xbf16> to vector<32x128xbf16>
    %c7 = arith.constant 7 : index
    %c0_63 = arith.constant 0 : index
    %c0_64 = arith.constant 0 : index
    %73 = vector.load %arg3[%c7, %c0_63, %c0_64] : memref<9x128x128xbf16, #tpu.memory_space<vmem>>, vector<1x128x128xbf16>
    %74 = vector.shape_cast %73 : vector<1x128x128xbf16> to vector<128x128xbf16>
    %cst_65 = arith.constant dense<0.000000e+00> : vector<32x128xf32>
    %75 = tpu.matmul %72, %74, %cst_65 {dimension_numbers = #tpu.dot_dimension_numbers<[1], [0], [0], [1], [0, 0, 1, 1], [], []>} : vector<32x128xbf16>, vector<128x128xbf16>, vector<32x128xf32> -> vector<32x128xf32>
    %76 = arith.addf %67, %75 : vector<32x128xf32>
    %c1_i32_66 = arith.constant 1 : i32
    %77 = arith.addi %0, %c1_i32_66 : i32
    %c0_67 = arith.constant 0 : index
    %c0_68 = arith.constant 0 : index
    %78 = arith.index_cast %77 : i32 to index
    %c1_69 = arith.constant 1 : index
    %c0_70 = arith.constant 0 : index
    %79 = vector.load %arg2[%c0_67, %c0_68, %78, %c1_69, %c0_70] : memref<1x4x9x9x128xbf16, #tpu.memory_space<vmem>>, vector<1x1x4x8x128xbf16>
    %80 = vector.shape_cast %79 : vector<1x1x4x8x128xbf16> to vector<4x8x128xbf16>
    %81 = vector.shape_cast %80 : vector<4x8x128xbf16> to vector<32x128xbf16>
    %c8 = arith.constant 8 : index
    %c0_71 = arith.constant 0 : index
    %c0_72 = arith.constant 0 : index
    %82 = vector.load %arg3[%c8, %c0_71, %c0_72] : memref<9x128x128xbf16, #tpu.memory_space<vmem>>, vector<1x128x128xbf16>
    %83 = vector.shape_cast %82 : vector<1x128x128xbf16> to vector<128x128xbf16>
    %cst_73 = arith.constant dense<0.000000e+00> : vector<32x128xf32>
    %84 = tpu.matmul %81, %83, %cst_73 {dimension_numbers = #tpu.dot_dimension_numbers<[1], [0], [0], [1], [0, 0, 1, 1], [], []>} : vector<32x128xbf16>, vector<128x128xbf16>, vector<32x128xf32> -> vector<32x128xf32>
    %85 = arith.addf %76, %84 : vector<32x128xf32>
    %86 = vector.shape_cast %85 : vector<32x128xf32> to vector<4x8x128xf32>
    %87 = arith.truncf %86 : vector<4x8x128xf32> to vector<4x8x128xbf16>
    %c0_74 = arith.constant 0 : index
    %c0_75 = arith.constant 0 : index
    %c0_76 = arith.constant 0 : index
    %c0_77 = arith.constant 0 : index
    %88 = vector.load %arg5[%c0_74, %c0_75, %c0_76, %c0_77] : memref<1x4x8x128xbf16, #tpu.memory_space<vmem>>, vector<1x4x8x128xbf16>
    %89 = vector.shape_cast %88 : vector<1x4x8x128xbf16> to vector<4x8x128xbf16>
    %90 = vector.shape_cast %87 : vector<4x8x128xbf16> to vector<1x4x8x128xbf16>
    tpu.vector_store %arg5[%c0_74, %c0_75, %c0_76, %c0_77], %90 {strides = array<i32>} : memref<1x4x8x128xbf16, #tpu.memory_space<vmem>>, vector<1x4x8x128xbf16>,
    %cst_78 = arith.constant dense<0.000000e+00> : vector<128xf32>
    %91 = vector.multi_reduction <add>, %85, %cst_78 [0] : vector<32x128xf32> to vector<128xf32>
    %cst_79 = arith.constant 3.125000e-02 : f32
    %92 = vector.broadcast %cst_79 : f32 to vector<128xf32>
    %93 = arith.mulf %91, %92 : vector<128xf32>
    %94 = vector.shape_cast %93 : vector<128xf32> to vector<1x128xf32>
    %95 = vector.broadcast %94 : vector<1x128xf32> to vector<32x128xf32>
    %96 = arith.subf %85, %95 : vector<32x128xf32>
    %97 = arith.mulf %96, %96 : vector<32x128xf32>
    %cst_80 = arith.constant dense<0.000000e+00> : vector<128xf32>
    %98 = vector.multi_reduction <add>, %97, %cst_80 [0] : vector<32x128xf32> to vector<128xf32>
    %99 = tpu.iota {dimensions = array<i32: 0>} : vector<8x128xi32>
    %c0_i32_81 = arith.constant 0 : i32
    %100 = vector.broadcast %c0_i32_81 : i32 to vector<8x128xi32>
    %101 = arith.cmpi eq, %99, %100 : vector<8x128xi32>
    %102 = vector.shape_cast %91 : vector<128xf32> to vector<1x128xf32>
    %c1_i32_82 = arith.constant 1 : i32
    %103 = vector.broadcast %c1_i32_82 : i32 to vector<8x128xi32>
    %104 = arith.cmpi eq, %99, %103 : vector<8x128xi32>
    %105 = vector.shape_cast %98 : vector<128xf32> to vector<1x128xf32>
    %cst_83 = arith.constant 0.000000e+00 : f32
    %106 = vector.shape_cast %105 : vector<1x128xf32> to vector<1x128xf32>
    %107 = vector.broadcast %106 : vector<1x128xf32> to vector<8x128xf32>
    %108 = vector.broadcast %cst_83 : f32 to vector<8x128xf32>
    %109 = arith.select %104, %107, %108 : vector<8x128xi1>, vector<8x128xf32>
    %110 = vector.shape_cast %102 : vector<1x128xf32> to vector<1x128xf32>
    %111 = vector.broadcast %110 : vector<1x128xf32> to vector<8x128xf32>
    %112 = arith.select %101, %111, %109 : vector<8x128xi1>, vector<8x128xf32>
    %c0_84 = arith.constant 0 : index
    %c0_85 = arith.constant 0 : index
    %c0_86 = arith.constant 0 : index
    %c0_87 = arith.constant 0 : index
    %113 = vector.load %arg6[%c0_84, %c0_85, %c0_86, %c0_87] : memref<1x1x8x128xf32, #tpu.memory_space<vmem>>, vector<1x1x8x128xf32>
    %114 = vector.shape_cast %113 : vector<1x1x8x128xf32> to vector<8x128xf32>
    %115 = vector.shape_cast %112 : vector<8x128xf32> to vector<1x1x8x128xf32>
    tpu.vector_store %arg6[%c0_84, %c0_85, %c0_86, %c0_87], %115 {strides = array<i32>} : memref<1x1x8x128xf32, #tpu.memory_space<vmem>>, vector<1x1x8x128xf32>,
    %116 = vector.shape_cast %49 : vector<32x128xf32> to vector<4x8x128xf32>
    %117 = arith.truncf %116 : vector<4x8x128xf32> to vector<4x8x128xbf16>
    %c0_88 = arith.constant 0 : index
    %c0_89 = arith.constant 0 : index
    %c0_90 = arith.constant 0 : index
    %c0_91 = arith.constant 0 : index
    %118 = vector.load %arg7[%c0_88, %c0_89, %c0_90, %c0_91] : memref<1x4x8x128xbf16, #tpu.memory_space<vmem>>, vector<1x4x8x128xbf16>
    %119 = vector.shape_cast %118 : vector<1x4x8x128xbf16> to vector<4x8x128xbf16>
    %120 = vector.shape_cast %117 : vector<4x8x128xbf16> to vector<1x4x8x128xbf16>
    tpu.vector_store %arg7[%c0_88, %c0_89, %c0_90, %c0_91], %120 {strides = array<i32>} : memref<1x4x8x128xbf16, #tpu.memory_space<vmem>>, vector<1x4x8x128xbf16>,
    %cst_92 = arith.constant dense<0.000000e+00> : vector<128xf32>
    %121 = vector.multi_reduction <add>, %49, %cst_92 [0] : vector<32x128xf32> to vector<128xf32>
    %cst_93 = arith.constant 3.125000e-02 : f32
    %122 = vector.broadcast %cst_93 : f32 to vector<128xf32>
    %123 = arith.mulf %121, %122 : vector<128xf32>
    %124 = vector.shape_cast %123 : vector<128xf32> to vector<1x128xf32>
    %125 = vector.broadcast %124 : vector<1x128xf32> to vector<32x128xf32>
    %126 = arith.subf %49, %125 : vector<32x128xf32>
    %127 = arith.mulf %126, %126 : vector<32x128xf32>
    %cst_94 = arith.constant dense<0.000000e+00> : vector<128xf32>
    %128 = vector.multi_reduction <add>, %127, %cst_94 [0] : vector<32x128xf32> to vector<128xf32>
    %129 = tpu.iota {dimensions = array<i32: 0>} : vector<8x128xi32>
    %c0_i32_95 = arith.constant 0 : i32
    %130 = vector.broadcast %c0_i32_95 : i32 to vector<8x128xi32>
    %131 = arith.cmpi eq, %129, %130 : vector<8x128xi32>
    %132 = vector.shape_cast %121 : vector<128xf32> to vector<1x128xf32>
    %c1_i32_96 = arith.constant 1 : i32
    %133 = vector.broadcast %c1_i32_96 : i32 to vector<8x128xi32>
    %134 = arith.cmpi eq, %129, %133 : vector<8x128xi32>
    %135 = vector.shape_cast %128 : vector<128xf32> to vector<1x128xf32>
    %cst_97 = arith.constant 0.000000e+00 : f32
    %136 = vector.shape_cast %135 : vector<1x128xf32> to vector<1x128xf32>
    %137 = vector.broadcast %136 : vector<1x128xf32> to vector<8x128xf32>
    %138 = vector.broadcast %cst_97 : f32 to vector<8x128xf32>
    %139 = arith.select %134, %137, %138 : vector<8x128xi1>, vector<8x128xf32>
    %140 = vector.shape_cast %132 : vector<1x128xf32> to vector<1x128xf32>
    %141 = vector.broadcast %140 : vector<1x128xf32> to vector<8x128xf32>
    %142 = arith.select %131, %141, %139 : vector<8x128xi1>, vector<8x128xf32>
    %c0_98 = arith.constant 0 : index
    %c0_99 = arith.constant 0 : index
    %c0_100 = arith.constant 0 : index
    %c0_101 = arith.constant 0 : index
    %143 = vector.load %arg8[%c0_98, %c0_99, %c0_100, %c0_101] : memref<1x1x8x128xf32, #tpu.memory_space<vmem>>, vector<1x1x8x128xf32>
    %144 = vector.shape_cast %143 : vector<1x1x8x128xf32> to vector<8x128xf32>
    %145 = vector.shape_cast %142 : vector<8x128xf32> to vector<1x1x8x128xf32>
    tpu.vector_store %arg8[%c0_98, %c0_99, %c0_100, %c0_101], %145 {strides = array<i32>} : memref<1x1x8x128xf32, #tpu.memory_space<vmem>>, vector<1x1x8x128xf32>,
    return
  }
  func.func @transform_0(%arg0: i32, %arg1: i32) -> (i32, i32, i32, i32, i32) {
    %c0_i32 = arith.constant 0 : i32
    %c0_i32_0 = arith.constant 0 : i32
    %c0_i32_1 = arith.constant 0 : i32
    %c0_i32_2 = arith.constant 0 : i32
    %c0_i32_3 = arith.constant 0 : i32
    return %arg0, %c0_i32, %c0_i32_0, %c0_i32_1, %c0_i32_2 : i32, i32, i32, i32, i32
  }
  func.func @transform_1(%arg0: i32, %arg1: i32) -> (i32, i32, i32) {
    %c0_i32 = arith.constant 0 : i32
    %c0_i32_0 = arith.constant 0 : i32
    %c0_i32_1 = arith.constant 0 : i32
    %c0_i32_2 = arith.constant 0 : i32
    return %c0_i32, %c0_i32_0, %c0_i32_1 : i32, i32, i32
  }
  func.func @transform_2(%arg0: i32, %arg1: i32) -> (i32, i32, i32) {
    %c0_i32 = arith.constant 0 : i32
    %c0_i32_0 = arith.constant 0 : i32
    %c0_i32_1 = arith.constant 0 : i32
    %c0_i32_2 = arith.constant 0 : i32
    return %c0_i32, %c0_i32_0, %c0_i32_1 : i32, i32, i32
  }
  func.func @transform_3(%arg0: i32, %arg1: i32) -> (i32, i32, i32, i32) {
    %c0_i32 = arith.constant 0 : i32
    %c0_i32_0 = arith.constant 0 : i32
    %c0_i32_1 = arith.constant 0 : i32
    return %arg0, %arg1, %c0_i32, %c0_i32_0 : i32, i32, i32, i32
  }
  func.func @transform_4(%arg0: i32, %arg1: i32) -> (i32, i32, i32, i32) {
    %c0_i32 = arith.constant 0 : i32
    %c0_i32_0 = arith.constant 0 : i32
    %c0_i32_1 = arith.constant 0 : i32
    return %arg0, %arg1, %c0_i32, %c0_i32_0 : i32, i32, i32, i32
  }
  func.func @transform_5(%arg0: i32, %arg1: i32) -> (i32, i32, i32, i32) {
    %c0_i32 = arith.constant 0 : i32
    %c0_i32_0 = arith.constant 0 : i32
    %c0_i32_1 = arith.constant 0 : i32
    return %arg0, %arg1, %c0_i32, %c0_i32_0 : i32, i32, i32, i32
  }
  func.func @transform_6(%arg0: i32, %arg1: i32) -> (i32, i32, i32, i32) {
    %c0_i32 = arith.constant 0 : i32
    %c0_i32_0 = arith.constant 0 : i32
    %c0_i32_1 = arith.constant 0 : i32
    return %arg0, %arg1, %c0_i32, %c0_i32_0 : i32, i32, i32, i32
  }
}

module attributes {stable_mosaic.version = 11 : i64} {
  func.func @_epi_convsc_kernel(%arg0: i32, %arg1: i32, %arg2: memref<1x4x8x128xbf16, #tpu.memory_space<vmem>>, %arg3: memref<1x4x8x128xbf16, #tpu.memory_space<vmem>>, %arg4: memref<1x128xf32, #tpu.memory_space<vmem>>, %arg5: memref<1x128xf32, #tpu.memory_space<vmem>>, %arg6: memref<1x128xf32, #tpu.memory_space<vmem>>, %arg7: memref<1x128xf32, #tpu.memory_space<vmem>>, %arg8: memref<1x4x8x128xbf16, #tpu.memory_space<vmem>>) attributes {dimension_semantics = [#tpu.dimension_semantics<parallel>, #tpu.dimension_semantics<parallel>], iteration_bounds = array<i64: 2, 2>, scalar_prefetch = 0 : i64, scratch_operands = 0 : i64, tpu.core_type = #tpu.core_type<tc>, window_params = [{transform_indices = @transform_0, window_bounds = array<i64: 1, 4, 8, 128>}, {transform_indices = @transform_1, window_bounds = array<i64: 1, 4, 8, 128>}, {pipeline_mode = #tpu.pipeline_mode<synchronous>, transform_indices = @transform_2, window_bounds = array<i64: 1, 128>}, {pipeline_mode = #tpu.pipeline_mode<synchronous>, transform_indices = @transform_3, window_bounds = array<i64: 1, 128>}, {pipeline_mode = #tpu.pipeline_mode<synchronous>, transform_indices = @transform_4, window_bounds = array<i64: 1, 128>}, {pipeline_mode = #tpu.pipeline_mode<synchronous>, transform_indices = @transform_5, window_bounds = array<i64: 1, 128>}, {transform_indices = @transform_6, window_bounds = array<i64: 1, 4, 8, 128>}]} {
    %c0 = arith.constant 0 : index
    %c0_0 = arith.constant 0 : index
    %c0_1 = arith.constant 0 : index
    %c0_2 = arith.constant 0 : index
    %0 = vector.load %arg2[%c0, %c0_0, %c0_1, %c0_2] : memref<1x4x8x128xbf16, #tpu.memory_space<vmem>>, vector<1x4x8x128xbf16>
    %1 = vector.shape_cast %0 : vector<1x4x8x128xbf16> to vector<4x8x128xbf16>
    %2 = arith.extf %1 : vector<4x8x128xbf16> to vector<4x8x128xf32>
    %c0_3 = arith.constant 0 : index
    %c0_4 = arith.constant 0 : index
    %3 = vector.load %arg4[%c0_3, %c0_4] : memref<1x128xf32, #tpu.memory_space<vmem>>, vector<1x128xf32>
    %4 = vector.shape_cast %3 : vector<1x128xf32> to vector<1x1x128xf32>
    %5 = vector.broadcast %4 : vector<1x1x128xf32> to vector<4x8x128xf32>
    %6 = arith.mulf %2, %5 : vector<4x8x128xf32>
    %c0_5 = arith.constant 0 : index
    %c0_6 = arith.constant 0 : index
    %7 = vector.load %arg5[%c0_5, %c0_6] : memref<1x128xf32, #tpu.memory_space<vmem>>, vector<1x128xf32>
    %8 = vector.shape_cast %7 : vector<1x128xf32> to vector<1x1x128xf32>
    %9 = vector.broadcast %8 : vector<1x1x128xf32> to vector<4x8x128xf32>
    %10 = arith.addf %6, %9 : vector<4x8x128xf32>
    %c0_7 = arith.constant 0 : index
    %c0_8 = arith.constant 0 : index
    %c0_9 = arith.constant 0 : index
    %c0_10 = arith.constant 0 : index
    %11 = vector.load %arg3[%c0_7, %c0_8, %c0_9, %c0_10] : memref<1x4x8x128xbf16, #tpu.memory_space<vmem>>, vector<1x4x8x128xbf16>
    %12 = vector.shape_cast %11 : vector<1x4x8x128xbf16> to vector<4x8x128xbf16>
    %13 = arith.extf %12 : vector<4x8x128xbf16> to vector<4x8x128xf32>
    %c0_11 = arith.constant 0 : index
    %c0_12 = arith.constant 0 : index
    %14 = vector.load %arg6[%c0_11, %c0_12] : memref<1x128xf32, #tpu.memory_space<vmem>>, vector<1x128xf32>
    %15 = vector.shape_cast %14 : vector<1x128xf32> to vector<1x1x128xf32>
    %16 = vector.broadcast %15 : vector<1x1x128xf32> to vector<4x8x128xf32>
    %17 = arith.mulf %13, %16 : vector<4x8x128xf32>
    %c0_13 = arith.constant 0 : index
    %c0_14 = arith.constant 0 : index
    %18 = vector.load %arg7[%c0_13, %c0_14] : memref<1x128xf32, #tpu.memory_space<vmem>>, vector<1x128xf32>
    %19 = vector.shape_cast %18 : vector<1x128xf32> to vector<1x1x128xf32>
    %20 = vector.broadcast %19 : vector<1x1x128xf32> to vector<4x8x128xf32>
    %21 = arith.addf %17, %20 : vector<4x8x128xf32>
    %22 = arith.addf %10, %21 : vector<4x8x128xf32>
    %cst = arith.constant 0.000000e+00 : f32
    %23 = vector.broadcast %cst : f32 to vector<4x8x128xf32>
    %24 = arith.maximumf %22, %23 : vector<4x8x128xf32>
    %25 = arith.truncf %24 : vector<4x8x128xf32> to vector<4x8x128xbf16>
    %c0_15 = arith.constant 0 : index
    %c0_16 = arith.constant 0 : index
    %c0_17 = arith.constant 0 : index
    %c0_18 = arith.constant 0 : index
    %26 = vector.load %arg8[%c0_15, %c0_16, %c0_17, %c0_18] : memref<1x4x8x128xbf16, #tpu.memory_space<vmem>>, vector<1x4x8x128xbf16>
    %27 = vector.shape_cast %26 : vector<1x4x8x128xbf16> to vector<4x8x128xbf16>
    %28 = vector.shape_cast %25 : vector<4x8x128xbf16> to vector<1x4x8x128xbf16>
    tpu.vector_store %arg8[%c0_15, %c0_16, %c0_17, %c0_18], %28 {strides = array<i32>} : memref<1x4x8x128xbf16, #tpu.memory_space<vmem>>, vector<1x4x8x128xbf16>,
    return
  }
  func.func @transform_0(%arg0: i32, %arg1: i32) -> (i32, i32, i32, i32) {
    %c0_i32 = arith.constant 0 : i32
    %c0_i32_0 = arith.constant 0 : i32
    %c0_i32_1 = arith.constant 0 : i32
    return %arg0, %arg1, %c0_i32, %c0_i32_0 : i32, i32, i32, i32
  }
  func.func @transform_1(%arg0: i32, %arg1: i32) -> (i32, i32, i32, i32) {
    %c0_i32 = arith.constant 0 : i32
    %c0_i32_0 = arith.constant 0 : i32
    %c0_i32_1 = arith.constant 0 : i32
    return %arg0, %arg1, %c0_i32, %c0_i32_0 : i32, i32, i32, i32
  }
  func.func @transform_2(%arg0: i32, %arg1: i32) -> (i32, i32) {
    %c0_i32 = arith.constant 0 : i32
    %c0_i32_0 = arith.constant 0 : i32
    %c0_i32_1 = arith.constant 0 : i32
    return %c0_i32, %c0_i32_0 : i32, i32
  }
  func.func @transform_3(%arg0: i32, %arg1: i32) -> (i32, i32) {
    %c0_i32 = arith.constant 0 : i32
    %c0_i32_0 = arith.constant 0 : i32
    %c0_i32_1 = arith.constant 0 : i32
    return %c0_i32, %c0_i32_0 : i32, i32
  }
  func.func @transform_4(%arg0: i32, %arg1: i32) -> (i32, i32) {
    %c0_i32 = arith.constant 0 : i32
    %c0_i32_0 = arith.constant 0 : i32
    %c0_i32_1 = arith.constant 0 : i32
    return %c0_i32, %c0_i32_0 : i32, i32
  }
  func.func @transform_5(%arg0: i32, %arg1: i32) -> (i32, i32) {
    %c0_i32 = arith.constant 0 : i32
    %c0_i32_0 = arith.constant 0 : i32
    %c0_i32_1 = arith.constant 0 : i32
    return %c0_i32, %c0_i32_0 : i32, i32
  }
  func.func @transform_6(%arg0: i32, %arg1: i32) -> (i32, i32, i32, i32) {
    %c0_i32 = arith.constant 0 : i32
    %c0_i32_0 = arith.constant 0 : i32
    %c0_i32_1 = arith.constant 0 : i32
    return %arg0, %arg1, %c0_i32, %c0_i32_0 : i32, i32, i32, i32
  }
}

module attributes {stable_mosaic.version = 11 : i64} {
  func.func @_conv2_kernel(%arg0: i32, %arg1: i32, %arg2: memref<1x8x8x128xbf16, #tpu.memory_space<vmem>>, %arg3: memref<1x128xf32, #tpu.memory_space<vmem>>, %arg4: memref<1x128xf32, #tpu.memory_space<vmem>>, %arg5: memref<9x128x128xbf16, #tpu.memory_space<vmem>>, %arg6: memref<1x4x8x128xbf16, #tpu.memory_space<vmem>>, %arg7: memref<1x1x8x128xf32, #tpu.memory_space<vmem>>, %arg8: memref<10x10x128xbf16, #tpu.memory_space<vmem>>) attributes {dimension_semantics = [#tpu.dimension_semantics<parallel>, #tpu.dimension_semantics<arbitrary>], iteration_bounds = array<i64: 2, 2>, scalar_prefetch = 0 : i64, scratch_operands = 1 : i64, tpu.core_type = #tpu.core_type<tc>, window_params = [{transform_indices = @transform_0, window_bounds = array<i64: 1, 8, 8, 128>}, {pipeline_mode = #tpu.pipeline_mode<synchronous>, transform_indices = @transform_1, window_bounds = array<i64: 1, 128>}, {pipeline_mode = #tpu.pipeline_mode<synchronous>, transform_indices = @transform_2, window_bounds = array<i64: 1, 128>}, {pipeline_mode = #tpu.pipeline_mode<synchronous>, transform_indices = @transform_3, window_bounds = array<i64: 9, 128, 128>}, {transform_indices = @transform_4, window_bounds = array<i64: 1, 4, 8, 128>}, {transform_indices = @transform_5, window_bounds = array<i64: 1, 1, 8, 128>}]} {
    %c0_i32 = arith.constant 0 : i32
    %0 = arith.cmpi eq, %arg1, %c0_i32 : i32
    %1 = arith.extui %0 : i1 to i32
    %c0_i32_0 = arith.constant 0 : i32
    %2 = arith.cmpi ne, %1, %c0_i32_0 : i32
    scf.if %2 {
      %cst_67 = arith.constant 0.000000e+00 : bf16
      %107 = vector.broadcast %cst_67 : bf16 to vector<10x10x128xbf16>
      %c0_68 = arith.constant 0 : index
      %c0_69 = arith.constant 0 : index
      %c0_70 = arith.constant 0 : index
      %108 = vector.load %arg8[%c0_68, %c0_69, %c0_70] : memref<10x10x128xbf16, #tpu.memory_space<vmem>>, vector<10x10x128xbf16>
      tpu.vector_store %arg8[%c0_68, %c0_69, %c0_70], %107 {strides = array<i32>} : memref<10x10x128xbf16, #tpu.memory_space<vmem>>, vector<10x10x128xbf16>,
      %c0_71 = arith.constant 0 : index
      %c0_72 = arith.constant 0 : index
      %c0_73 = arith.constant 0 : index
      %c0_74 = arith.constant 0 : index
      %109 = vector.load %arg2[%c0_71, %c0_72, %c0_73, %c0_74] : memref<1x8x8x128xbf16, #tpu.memory_space<vmem>>, vector<1x8x8x128xbf16>
      %110 = vector.shape_cast %109 : vector<1x8x8x128xbf16> to vector<8x8x128xbf16>
      %111 = arith.extf %110 : vector<8x8x128xbf16> to vector<8x8x128xf32>
      %c0_75 = arith.constant 0 : index
      %c0_76 = arith.constant 0 : index
      %112 = vector.load %arg3[%c0_75, %c0_76] : memref<1x128xf32, #tpu.memory_space<vmem>>, vector<1x128xf32>
      %113 = vector.shape_cast %112 : vector<1x128xf32> to vector<1x1x128xf32>
      %114 = vector.broadcast %113 : vector<1x1x128xf32> to vector<8x8x128xf32>
      %115 = arith.mulf %111, %114 : vector<8x8x128xf32>
      %c0_77 = arith.constant 0 : index
      %c0_78 = arith.constant 0 : index
      %116 = vector.load %arg4[%c0_77, %c0_78] : memref<1x128xf32, #tpu.memory_space<vmem>>, vector<1x128xf32>
      %117 = vector.shape_cast %116 : vector<1x128xf32> to vector<1x1x128xf32>
      %118 = vector.broadcast %117 : vector<1x1x128xf32> to vector<8x8x128xf32>
      %119 = arith.addf %115, %118 : vector<8x8x128xf32>
      %cst_79 = arith.constant 0.000000e+00 : f32
      %120 = vector.broadcast %cst_79 : f32 to vector<8x8x128xf32>
      %121 = arith.maximumf %119, %120 : vector<8x8x128xf32>
      %122 = arith.truncf %121 : vector<8x8x128xf32> to vector<8x8x128xbf16>
      %c1_80 = arith.constant 1 : index
      %c1_81 = arith.constant 1 : index
      %c0_82 = arith.constant 0 : index
      %123 = vector.load %arg8[%c1_80, %c1_81, %c0_82] : memref<10x10x128xbf16, #tpu.memory_space<vmem>>, vector<8x8x128xbf16>
      tpu.vector_store %arg8[%c1_80, %c1_81, %c0_82], %122 {strides = array<i32>} : memref<10x10x128xbf16, #tpu.memory_space<vmem>>, vector<8x8x128xbf16>,
    } else {
    }
    %c4_i32 = arith.constant 4 : i32
    %3 = arith.muli %arg1, %c4_i32 : i32
    %cst = arith.constant 0.000000e+00 : f32
    %4 = vector.broadcast %cst : f32 to vector<32x128xf32>
    %c0_i32_1 = arith.constant 0 : i32
    %5 = arith.addi %3, %c0_i32_1 : i32
    %6 = arith.index_cast %5 : i32 to index
    %c0 = arith.constant 0 : index
    %c0_2 = arith.constant 0 : index
    %7 = vector.load %arg8[%6, %c0, %c0_2] : memref<10x10x128xbf16, #tpu.memory_space<vmem>>, vector<4x8x128xbf16>
    %8 = vector.shape_cast %7 : vector<4x8x128xbf16> to vector<32x128xbf16>
    %c0_3 = arith.constant 0 : index
    %c0_4 = arith.constant 0 : index
    %c0_5 = arith.constant 0 : index
    %9 = vector.load %arg5[%c0_3, %c0_4, %c0_5] : memref<9x128x128xbf16, #tpu.memory_space<vmem>>, vector<1x128x128xbf16>
    %10 = vector.shape_cast %9 : vector<1x128x128xbf16> to vector<128x128xbf16>
    %cst_6 = arith.constant dense<0.000000e+00> : vector<32x128xf32>
    %11 = tpu.matmul %8, %10, %cst_6 {dimension_numbers = #tpu.dot_dimension_numbers<[1], [0], [0], [1], [0, 0, 1, 1], [], []>} : vector<32x128xbf16>, vector<128x128xbf16>, vector<32x128xf32> -> vector<32x128xf32>
    %12 = arith.addf %4, %11 : vector<32x128xf32>
    %c0_i32_7 = arith.constant 0 : i32
    %13 = arith.addi %3, %c0_i32_7 : i32
    %14 = arith.index_cast %13 : i32 to index
    %c1 = arith.constant 1 : index
    %c0_8 = arith.constant 0 : index
    %15 = vector.load %arg8[%14, %c1, %c0_8] : memref<10x10x128xbf16, #tpu.memory_space<vmem>>, vector<4x8x128xbf16>
    %16 = vector.shape_cast %15 : vector<4x8x128xbf16> to vector<32x128xbf16>
    %c1_9 = arith.constant 1 : index
    %c0_10 = arith.constant 0 : index
    %c0_11 = arith.constant 0 : index
    %17 = vector.load %arg5[%c1_9, %c0_10, %c0_11] : memref<9x128x128xbf16, #tpu.memory_space<vmem>>, vector<1x128x128xbf16>
    %18 = vector.shape_cast %17 : vector<1x128x128xbf16> to vector<128x128xbf16>
    %cst_12 = arith.constant dense<0.000000e+00> : vector<32x128xf32>
    %19 = tpu.matmul %16, %18, %cst_12 {dimension_numbers = #tpu.dot_dimension_numbers<[1], [0], [0], [1], [0, 0, 1, 1], [], []>} : vector<32x128xbf16>, vector<128x128xbf16>, vector<32x128xf32> -> vector<32x128xf32>
    %20 = arith.addf %12, %19 : vector<32x128xf32>
    %c0_i32_13 = arith.constant 0 : i32
    %21 = arith.addi %3, %c0_i32_13 : i32
    %22 = arith.index_cast %21 : i32 to index
    %c2 = arith.constant 2 : index
    %c0_14 = arith.constant 0 : index
    %23 = vector.load %arg8[%22, %c2, %c0_14] : memref<10x10x128xbf16, #tpu.memory_space<vmem>>, vector<4x8x128xbf16>
    %24 = vector.shape_cast %23 : vector<4x8x128xbf16> to vector<32x128xbf16>
    %c2_15 = arith.constant 2 : index
    %c0_16 = arith.constant 0 : index
    %c0_17 = arith.constant 0 : index
    %25 = vector.load %arg5[%c2_15, %c0_16, %c0_17] : memref<9x128x128xbf16, #tpu.memory_space<vmem>>, vector<1x128x128xbf16>
    %26 = vector.shape_cast %25 : vector<1x128x128xbf16> to vector<128x128xbf16>
    %cst_18 = arith.constant dense<0.000000e+00> : vector<32x128xf32>
    %27 = tpu.matmul %24, %26, %cst_18 {dimension_numbers = #tpu.dot_dimension_numbers<[1], [0], [0], [1], [0, 0, 1, 1], [], []>} : vector<32x128xbf16>, vector<128x128xbf16>, vector<32x128xf32> -> vector<32x128xf32>
    %28 = arith.addf %20, %27 : vector<32x128xf32>
    %c1_i32 = arith.constant 1 : i32
    %29 = arith.addi %3, %c1_i32 : i32
    %30 = arith.index_cast %29 : i32 to index
    %c0_19 = arith.constant 0 : index
    %c0_20 = arith.constant 0 : index
    %31 = vector.load %arg8[%30, %c0_19, %c0_20] : memref<10x10x128xbf16, #tpu.memory_space<vmem>>, vector<4x8x128xbf16>
    %32 = vector.shape_cast %31 : vector<4x8x128xbf16> to vector<32x128xbf16>
    %c3 = arith.constant 3 : index
    %c0_21 = arith.constant 0 : index
    %c0_22 = arith.constant 0 : index
    %33 = vector.load %arg5[%c3, %c0_21, %c0_22] : memref<9x128x128xbf16, #tpu.memory_space<vmem>>, vector<1x128x128xbf16>
    %34 = vector.shape_cast %33 : vector<1x128x128xbf16> to vector<128x128xbf16>
    %cst_23 = arith.constant dense<0.000000e+00> : vector<32x128xf32>
    %35 = tpu.matmul %32, %34, %cst_23 {dimension_numbers = #tpu.dot_dimension_numbers<[1], [0], [0], [1], [0, 0, 1, 1], [], []>} : vector<32x128xbf16>, vector<128x128xbf16>, vector<32x128xf32> -> vector<32x128xf32>
    %36 = arith.addf %28, %35 : vector<32x128xf32>
    %c1_i32_24 = arith.constant 1 : i32
    %37 = arith.addi %3, %c1_i32_24 : i32
    %38 = arith.index_cast %37 : i32 to index
    %c1_25 = arith.constant 1 : index
    %c0_26 = arith.constant 0 : index
    %39 = vector.load %arg8[%38, %c1_25, %c0_26] : memref<10x10x128xbf16, #tpu.memory_space<vmem>>, vector<4x8x128xbf16>
    %40 = vector.shape_cast %39 : vector<4x8x128xbf16> to vector<32x128xbf16>
    %c4 = arith.constant 4 : index
    %c0_27 = arith.constant 0 : index
    %c0_28 = arith.constant 0 : index
    %41 = vector.load %arg5[%c4, %c0_27, %c0_28] : memref<9x128x128xbf16, #tpu.memory_space<vmem>>, vector<1x128x128xbf16>
    %42 = vector.shape_cast %41 : vector<1x128x128xbf16> to vector<128x128xbf16>
    %cst_29 = arith.constant dense<0.000000e+00> : vector<32x128xf32>
    %43 = tpu.matmul %40, %42, %cst_29 {dimension_numbers = #tpu.dot_dimension_numbers<[1], [0], [0], [1], [0, 0, 1, 1], [], []>} : vector<32x128xbf16>, vector<128x128xbf16>, vector<32x128xf32> -> vector<32x128xf32>
    %44 = arith.addf %36, %43 : vector<32x128xf32>
    %c1_i32_30 = arith.constant 1 : i32
    %45 = arith.addi %3, %c1_i32_30 : i32
    %46 = arith.index_cast %45 : i32 to index
    %c2_31 = arith.constant 2 : index
    %c0_32 = arith.constant 0 : index
    %47 = vector.load %arg8[%46, %c2_31, %c0_32] : memref<10x10x128xbf16, #tpu.memory_space<vmem>>, vector<4x8x128xbf16>
    %48 = vector.shape_cast %47 : vector<4x8x128xbf16> to vector<32x128xbf16>
    %c5 = arith.constant 5 : index
    %c0_33 = arith.constant 0 : index
    %c0_34 = arith.constant 0 : index
    %49 = vector.load %arg5[%c5, %c0_33, %c0_34] : memref<9x128x128xbf16, #tpu.memory_space<vmem>>, vector<1x128x128xbf16>
    %50 = vector.shape_cast %49 : vector<1x128x128xbf16> to vector<128x128xbf16>
    %cst_35 = arith.constant dense<0.000000e+00> : vector<32x128xf32>
    %51 = tpu.matmul %48, %50, %cst_35 {dimension_numbers = #tpu.dot_dimension_numbers<[1], [0], [0], [1], [0, 0, 1, 1], [], []>} : vector<32x128xbf16>, vector<128x128xbf16>, vector<32x128xf32> -> vector<32x128xf32>
    %52 = arith.addf %44, %51 : vector<32x128xf32>
    %c2_i32 = arith.constant 2 : i32
    %53 = arith.addi %3, %c2_i32 : i32
    %54 = arith.index_cast %53 : i32 to index
    %c0_36 = arith.constant 0 : index
    %c0_37 = arith.constant 0 : index
    %55 = vector.load %arg8[%54, %c0_36, %c0_37] : memref<10x10x128xbf16, #tpu.memory_space<vmem>>, vector<4x8x128xbf16>
    %56 = vector.shape_cast %55 : vector<4x8x128xbf16> to vector<32x128xbf16>
    %c6 = arith.constant 6 : index
    %c0_38 = arith.constant 0 : index
    %c0_39 = arith.constant 0 : index
    %57 = vector.load %arg5[%c6, %c0_38, %c0_39] : memref<9x128x128xbf16, #tpu.memory_space<vmem>>, vector<1x128x128xbf16>
    %58 = vector.shape_cast %57 : vector<1x128x128xbf16> to vector<128x128xbf16>
    %cst_40 = arith.constant dense<0.000000e+00> : vector<32x128xf32>
    %59 = tpu.matmul %56, %58, %cst_40 {dimension_numbers = #tpu.dot_dimension_numbers<[1], [0], [0], [1], [0, 0, 1, 1], [], []>} : vector<32x128xbf16>, vector<128x128xbf16>, vector<32x128xf32> -> vector<32x128xf32>
    %60 = arith.addf %52, %59 : vector<32x128xf32>
    %c2_i32_41 = arith.constant 2 : i32
    %61 = arith.addi %3, %c2_i32_41 : i32
    %62 = arith.index_cast %61 : i32 to index
    %c1_42 = arith.constant 1 : index
    %c0_43 = arith.constant 0 : index
    %63 = vector.load %arg8[%62, %c1_42, %c0_43] : memref<10x10x128xbf16, #tpu.memory_space<vmem>>, vector<4x8x128xbf16>
    %64 = vector.shape_cast %63 : vector<4x8x128xbf16> to vector<32x128xbf16>
    %c7 = arith.constant 7 : index
    %c0_44 = arith.constant 0 : index
    %c0_45 = arith.constant 0 : index
    %65 = vector.load %arg5[%c7, %c0_44, %c0_45] : memref<9x128x128xbf16, #tpu.memory_space<vmem>>, vector<1x128x128xbf16>
    %66 = vector.shape_cast %65 : vector<1x128x128xbf16> to vector<128x128xbf16>
    %cst_46 = arith.constant dense<0.000000e+00> : vector<32x128xf32>
    %67 = tpu.matmul %64, %66, %cst_46 {dimension_numbers = #tpu.dot_dimension_numbers<[1], [0], [0], [1], [0, 0, 1, 1], [], []>} : vector<32x128xbf16>, vector<128x128xbf16>, vector<32x128xf32> -> vector<32x128xf32>
    %68 = arith.addf %60, %67 : vector<32x128xf32>
    %c2_i32_47 = arith.constant 2 : i32
    %69 = arith.addi %3, %c2_i32_47 : i32
    %70 = arith.index_cast %69 : i32 to index
    %c2_48 = arith.constant 2 : index
    %c0_49 = arith.constant 0 : index
    %71 = vector.load %arg8[%70, %c2_48, %c0_49] : memref<10x10x128xbf16, #tpu.memory_space<vmem>>, vector<4x8x128xbf16>
    %72 = vector.shape_cast %71 : vector<4x8x128xbf16> to vector<32x128xbf16>
    %c8 = arith.constant 8 : index
    %c0_50 = arith.constant 0 : index
    %c0_51 = arith.constant 0 : index
    %73 = vector.load %arg5[%c8, %c0_50, %c0_51] : memref<9x128x128xbf16, #tpu.memory_space<vmem>>, vector<1x128x128xbf16>
    %74 = vector.shape_cast %73 : vector<1x128x128xbf16> to vector<128x128xbf16>
    %cst_52 = arith.constant dense<0.000000e+00> : vector<32x128xf32>
    %75 = tpu.matmul %72, %74, %cst_52 {dimension_numbers = #tpu.dot_dimension_numbers<[1], [0], [0], [1], [0, 0, 1, 1], [], []>} : vector<32x128xbf16>, vector<128x128xbf16>, vector<32x128xf32> -> vector<32x128xf32>
    %76 = arith.addf %68, %75 : vector<32x128xf32>
    %77 = vector.shape_cast %76 : vector<32x128xf32> to vector<4x8x128xf32>
    %78 = arith.truncf %77 : vector<4x8x128xf32> to vector<4x8x128xbf16>
    %c0_53 = arith.constant 0 : index
    %c0_54 = arith.constant 0 : index
    %c0_55 = arith.constant 0 : index
    %c0_56 = arith.constant 0 : index
    %79 = vector.load %arg6[%c0_53, %c0_54, %c0_55, %c0_56] : memref<1x4x8x128xbf16, #tpu.memory_space<vmem>>, vector<1x4x8x128xbf16>
    %80 = vector.shape_cast %79 : vector<1x4x8x128xbf16> to vector<4x8x128xbf16>
    %81 = vector.shape_cast %78 : vector<4x8x128xbf16> to vector<1x4x8x128xbf16>
    tpu.vector_store %arg6[%c0_53, %c0_54, %c0_55, %c0_56], %81 {strides = array<i32>} : memref<1x4x8x128xbf16, #tpu.memory_space<vmem>>, vector<1x4x8x128xbf16>,
    %cst_57 = arith.constant dense<0.000000e+00> : vector<128xf32>
    %82 = vector.multi_reduction <add>, %76, %cst_57 [0] : vector<32x128xf32> to vector<128xf32>
    %cst_58 = arith.constant 3.125000e-02 : f32
    %83 = vector.broadcast %cst_58 : f32 to vector<128xf32>
    %84 = arith.mulf %82, %83 : vector<128xf32>
    %85 = vector.shape_cast %84 : vector<128xf32> to vector<1x128xf32>
    %86 = vector.broadcast %85 : vector<1x128xf32> to vector<32x128xf32>
    %87 = arith.subf %76, %86 : vector<32x128xf32>
    %88 = arith.mulf %87, %87 : vector<32x128xf32>
    %cst_59 = arith.constant dense<0.000000e+00> : vector<128xf32>
    %89 = vector.multi_reduction <add>, %88, %cst_59 [0] : vector<32x128xf32> to vector<128xf32>
    %90 = tpu.iota {dimensions = array<i32: 0>} : vector<8x128xi32>
    %c0_i32_60 = arith.constant 0 : i32
    %91 = vector.broadcast %c0_i32_60 : i32 to vector<8x128xi32>
    %92 = arith.cmpi eq, %90, %91 : vector<8x128xi32>
    %93 = vector.shape_cast %82 : vector<128xf32> to vector<1x128xf32>
    %c1_i32_61 = arith.constant 1 : i32
    %94 = vector.broadcast %c1_i32_61 : i32 to vector<8x128xi32>
    %95 = arith.cmpi eq, %90, %94 : vector<8x128xi32>
    %96 = vector.shape_cast %89 : vector<128xf32> to vector<1x128xf32>
    %cst_62 = arith.constant 0.000000e+00 : f32
    %97 = vector.shape_cast %96 : vector<1x128xf32> to vector<1x128xf32>
    %98 = vector.broadcast %97 : vector<1x128xf32> to vector<8x128xf32>
    %99 = vector.broadcast %cst_62 : f32 to vector<8x128xf32>
    %100 = arith.select %95, %98, %99 : vector<8x128xi1>, vector<8x128xf32>
    %101 = vector.shape_cast %93 : vector<1x128xf32> to vector<1x128xf32>
    %102 = vector.broadcast %101 : vector<1x128xf32> to vector<8x128xf32>
    %103 = arith.select %92, %102, %100 : vector<8x128xi1>, vector<8x128xf32>
    %c0_63 = arith.constant 0 : index
    %c0_64 = arith.constant 0 : index
    %c0_65 = arith.constant 0 : index
    %c0_66 = arith.constant 0 : index
    %104 = vector.load %arg7[%c0_63, %c0_64, %c0_65, %c0_66] : memref<1x1x8x128xf32, #tpu.memory_space<vmem>>, vector<1x1x8x128xf32>
    %105 = vector.shape_cast %104 : vector<1x1x8x128xf32> to vector<8x128xf32>
    %106 = vector.shape_cast %103 : vector<8x128xf32> to vector<1x1x8x128xf32>
    tpu.vector_store %arg7[%c0_63, %c0_64, %c0_65, %c0_66], %106 {strides = array<i32>} : memref<1x1x8x128xf32, #tpu.memory_space<vmem>>, vector<1x1x8x128xf32>,
    return
  }
  func.func @transform_0(%arg0: i32, %arg1: i32) -> (i32, i32, i32, i32) {
    %c0_i32 = arith.constant 0 : i32
    %c0_i32_0 = arith.constant 0 : i32
    %c0_i32_1 = arith.constant 0 : i32
    %c0_i32_2 = arith.constant 0 : i32
    return %arg0, %c0_i32, %c0_i32_0, %c0_i32_1 : i32, i32, i32, i32
  }
  func.func @transform_1(%arg0: i32, %arg1: i32) -> (i32, i32) {
    %c0_i32 = arith.constant 0 : i32
    %c0_i32_0 = arith.constant 0 : i32
    %c0_i32_1 = arith.constant 0 : i32
    return %c0_i32, %c0_i32_0 : i32, i32
  }
  func.func @transform_2(%arg0: i32, %arg1: i32) -> (i32, i32) {
    %c0_i32 = arith.constant 0 : i32
    %c0_i32_0 = arith.constant 0 : i32
    %c0_i32_1 = arith.constant 0 : i32
    return %c0_i32, %c0_i32_0 : i32, i32
  }
  func.func @transform_3(%arg0: i32, %arg1: i32) -> (i32, i32, i32) {
    %c0_i32 = arith.constant 0 : i32
    %c0_i32_0 = arith.constant 0 : i32
    %c0_i32_1 = arith.constant 0 : i32
    %c0_i32_2 = arith.constant 0 : i32
    return %c0_i32, %c0_i32_0, %c0_i32_1 : i32, i32, i32
  }
  func.func @transform_4(%arg0: i32, %arg1: i32) -> (i32, i32, i32, i32) {
    %c0_i32 = arith.constant 0 : i32
    %c0_i32_0 = arith.constant 0 : i32
    %c0_i32_1 = arith.constant 0 : i32
    return %arg0, %arg1, %c0_i32, %c0_i32_0 : i32, i32, i32, i32
  }
  func.func @transform_5(%arg0: i32, %arg1: i32) -> (i32, i32, i32, i32) {
    %c0_i32 = arith.constant 0 : i32
    %c0_i32_0 = arith.constant 0 : i32
    %c0_i32_1 = arith.constant 0 : i32
    return %arg0, %arg1, %c0_i32, %c0_i32_0 : i32, i32, i32, i32
  }
}

</mosaic_0001>

<bundles_post_ra>
// kernel: residual_block_pallas.5
= control target key start
LH: loop header
LB: loop body
LE: loop exit
PB: predicated region body
PF: predicated region fallthrough
CT: control target
= control target key end

     0   :  { %s675_s21 = smov 0   ;;  %s677_s22 = smov 0   ;;  %s746_s0 = inlined_call_operand.vmem [shape: bf16[2,8,8,128], index: 0, kind: input, shape index: {}]   ;;  %s747_s1 = inlined_call_operand.vmem [shape: bf16[2,8,8,128], index: 1, kind: input, shape index: {}]   ;;  %s748_s2 = inlined_call_operand.vmem [shape: f32[1,128], index: 2, kind: input, shape index: {}]   ;;  %s749_s3 = inlined_call_operand.vmem [shape: f32[1,128], index: 3, kind: input, shape index: {}]   ;;  %s750_s4 = inlined_call_operand.vmem [shape: f32[1,128], index: 4, kind: input, shape index: {}]   ;;  %s751_s5 = inlined_call_operand.vmem [shape: f32[1,128], index: 5, kind: input, shape index: {}]   ;;  %s752_s6 = inlined_call_operand.vmem [shape: bf16[2,8,8,128], index: 6, kind: output, shape index: {}]  }
   0x1   :  { %s679_s23 = smov 0   ;;  %s681_s24 = smov 0  }
   0x2   :  { %s683_s25 = smov 0  }
   0x3 LB: > { %s25_s26 = sadd.s32 1, %s630_s23  ;;  %s28_s27 = sadd.s32 1, %s634_s24  ;;  %s638_s25 = sphi %s683_s25, %s16_s25   ;;  %s634_s24 = sphi %s681_s24, %s756_s24   ;;  %s630_s23 = sphi %s679_s23, %s755_s23   ;;  %s626_s22 = sphi %s677_s22, %s754_s22   ;;  %s622_s21 = sphi %s675_s21, %s753_s21  }
   0x4   : > { %p26_p0 = scmp.ge.s32.totalorder %s25_s26, 2  ;;  %p515_p1 = scmp.ge.s32.totalorder %s638_s25, 1 }
   0x5   : > { %p250_p2 = scmp.lt.s32.totalorder %s638_s25, 5 }
   0x6   : > { %s758_s26 = smov (%p26_p0, %s25_s26), 0  ;;  %s760_s27 = smov (!%p26_p0, %s28_s27), %s634_s24 }
   0x7   : > { %p251_p3 = pnand %p515_p1, %p250_p2  ;;  %p30_p4 = scmp.ge.s32.totalorder %s760_s27, 2 }
   0x8   : > { %s516_s28 = sshll.u32 (!%p251_p3), %s622_s21, 2  ;;  %p298_p5 = scmp.lt.s32.totalorder (!%p251_p3), %s626_s22, 1  ;;  %v525_v0 = vld [vmem:[%s748_s2] ss:$0 sm:$0xff] (!%p251_p3) }
   0x9   : > { %s762_s27 = smov (%p30_p4, %s760_s27), 0  ;;  %254 = sbr.rel (%p251_p3) target bundleno = 36 (0x24), region = 44 }
   0xa   : > { %p300_p6 = scmp.lt.s32.totalorder (!%p251_p3), %s516_s28, 7  ;;  %v527_v9 = vld [vmem:[%s750_s4] ss:$0 sm:$0xff] (!%p251_p3) }
   0xb   : > { %v526_v10 = vld [vmem:[%s749_s3] ss:$0 sm:$0xff] (!%p251_p3) }
   0xc   : > { %v528_v17 = vld [vmem:[%s751_s5] ss:$0 sm:$0xff] (!%p251_p3) }
  0x10   : > { %s764_s22 = smov (!%p298_p5, %s626_s22), 1  ;;  %s766_s28 = smov (!%p300_p6, %s516_s28), 7 }
  0x11   : > { %s517_s29 = sshll.u32 %s764_s22, 3 }
  0x12   : > { %s303_s30 = sadd.s32 %s517_s29, %s766_s28 }
  0x13   : > { %s705_s7 = sshll.u32 %s303_s30, 2 }
  0x14   : > { %s305_s10 = scalar_lea.vmem %s746_s0, %s705_s7  ;;  %s315_s13 = scalar_lea.vmem %s747_s1, %s705_s7 }
  0x15   : > { %v532_v1 = vld [vmem:[%s305_s10] sm:$0xff]   ;;  %v557_v2 = vld [vmem:[%s305_s10 + $0x8] sm:$0xff]   ;;  %s325_s29 = scalar_lea.vmem %s752_s6, %s705_s7 }
  0x16   : > { %v540_v3 = vld [vmem:[%s315_s13] sm:$0xff]   ;;  %v533_v4 = vunpack.c.l.bf16 %v532_v1  ;;  %v534_v5 = vunpack.c.h.bf16 %v532_v1  ;;  %v537_v6 = vunpack.c.l.bf16 %v557_v2  ;;  %v538_v7 = vunpack.c.h.bf16 %v557_v2  ;;  %v558_v8 = vld [vmem:[%s315_s13 + $0x8] sm:$0xff]  }
  0x17   : > { %v541_v11 = vunpack.c.l.bf16 %v540_v3  ;;  %v542_v12 = vunpack.c.h.bf16 %v540_v3  ;;  %v545_v13 = vunpack.c.l.bf16 %v558_v8  ;;  %v546_v14 = vunpack.c.h.bf16 %v558_v8 }
  0x18   : > { %v342_v15 = vmul.f32 %v533_v4, %v525_v0  ;;  %v343_v16 = vmul.f32 %v534_v5, %v525_v0  ;;  %v344_v18 = vmul.f32 %v537_v6, %v525_v0  ;;  %v345_v19 = vmul.f32 %v538_v7, %v525_v0 }
  0x19   : > { %v372_v20 = vmul.f32 %v541_v11, %v527_v9  ;;  %v373_v21 = vmul.f32 %v542_v12, %v527_v9  ;;  %v374_v22 = vmul.f32 %v545_v13, %v527_v9  ;;  %v375_v23 = vmul.f32 %v546_v14, %v527_v9 }
  0x1a   : > { %v353_v24 = vadd.f32 %v526_v10, %v342_v15  ;;  %v354_v25 = vadd.f32 %v526_v10, %v343_v16  ;;  %v355_v26 = vadd.f32 %v526_v10, %v344_v18  ;;  %v356_v27 = vadd.f32 %v526_v10, %v345_v19 }
  0x1b   : > { %v383_v28 = vadd.f32 %v528_v17, %v372_v20  ;;  %v384_v29 = vadd.f32 %v528_v17, %v373_v21  ;;  %v385_v30 = vadd.f32 %v528_v17, %v374_v22  ;;  %v386_v31 = vadd.f32 %v528_v17, %v375_v23 }
  0x1d   : > { %v387_v32 = vadd.f32 %v383_v28, %v353_v24  ;;  %v388_v33 = vadd.f32 %v384_v29, %v354_v25  ;;  %v389_v34 = vadd.f32 %v385_v30, %v355_v26  ;;  %v390_v35 = vadd.f32 %v386_v31, %v356_v27 }
  0x1f   : > { %v391_v36 = vmax.f32 %v387_v32, 0.0  ;;  %v392_v37 = vmax.f32 %v388_v33, 0.0  ;;  %v393_v38 = vmax.f32 %v389_v34, 0.0  ;;  %v394_v39 = vmax.f32 %v390_v35, 0.0 }
  0x21   : > { %v550_v40 = vpack.c.bf16 %v392_v37, %v391_v36  ;;  %v555_v41 = vpack.c.bf16 %v394_v39, %v393_v38 }
  0x23   : > { %551 = vst [vmem:[%s325_s29] sm:$0xff] %v550_v40   ;;  %559 = vst [vmem:[%s325_s29 + $0x8] sm:$0xff] %v555_v41  }
  0x24 PF: > { %s16_s25 = sadd.s32 1, %s638_s25   ;;  %s753_s21 = smov %s630_s23 }
  0x25   : > { %p13_p7 = scmp.ge.s32.totalorder %s16_s25, 6   ;;  %s754_s22 = smov %s634_s24 }
  0x26   : > { %s755_s23 = smov %s758_s26  ;;  %s756_s24 = smov %s762_s27 }
  0x27   :  { %15 = sbr.rel (!%p13_p7) target bundleno = 3 (0x3), region = 77 }

// kernel: residual_block_pallas.3
= control target key start
LH: loop header
LB: loop body
LE: loop exit
PB: predicated region body
PF: predicated region fallthrough
CT: control target
= control target key end

     0   :  { %s3036_s21 = smov 0   ;;  %s3038_s22 = smov 0   ;;  %s3423_s0 = inlined_call_operand.vmem [shape: bf16[2,4,9,9,128], index: 0, kind: input, shape index: {}]   ;;  %s3424_s1 = inlined_call_operand.vmem [shape: bf16[9,128,128], index: 1, kind: input, shape index: {}]   ;;  %s3425_s2 = inlined_call_operand.vmem [shape: bf16[1,128,128], index: 2, kind: input, shape index: {}]   ;;  %s3426_s3 = inlined_call_operand.vmem [shape: bf16[2,8,8,128], index: 3, kind: output, shape index: {0}]   ;;  %s3427_s4 = inlined_call_operand.vmem [shape: f32[2,2,8,128], index: 4, kind: output, shape index: {1}]   ;;  %s3428_s5 = inlined_call_operand.vmem [shape: bf16[2,8,8,128], index: 5, kind: output, shape index: {2}]   ;;  %s3429_s6 = inlined_call_operand.vmem [shape: f32[2,2,8,128], index: 6, kind: output, shape index: {3}]  }
   0x1   :  { %s3040_s23 = smov 0   ;;  %s3042_s24 = smov 0  }
   0x2   :  { %s3044_s25 = smov 0  }
   0x3 LB: > { %s26_s26 = sadd.s32 1, %s2991_s23  ;;  %s29_s27 = sadd.s32 1, %s2995_s24  ;;  %s2999_s25 = sphi %s3044_s25, %s17_s25   ;;  %s2995_s24 = sphi %s3042_s24, %s3435_s24   ;;  %s2991_s23 = sphi %s3040_s23, %s3434_s23   ;;  %s2987_s22 = sphi %s3038_s22, %s3433_s22   ;;  %s2983_s21 = sphi %s3036_s21, %s3432_s21  }
   0x4   : > { %p27_p0 = scmp.ge.s32.totalorder %s26_s26, 2  ;;  %p2176_p1 = scmp.ge.s32.totalorder %s2999_s25, 1 }
   0x5   : > { %p239_p2 = scmp.lt.s32.totalorder %s2999_s25, 5 }
   0x6   : > { %s3437_s26 = smov (%p27_p0, %s26_s26), 0  ;;  %s3439_s27 = smov (!%p27_p0, %s29_s27), %s2995_s24 }
   0x7   : > { %p240_p3 = pnand %p2176_p1, %p239_p2  ;;  %p31_p4 = scmp.ge.s32.totalorder %s3439_s27, 2 }
   0x8   : > { %v2869_v0 = vld [vmem:[%s3424_s1 + $0x40] sm:$0xff] (!%p240_p3)   ;;  %p298_p5 = scmp.lt.s32.totalorder (!%p240_p3), %s2987_s22, 1  ;;  %v2871_v2 = vld [vmem:[%s3424_s1 + $0x48] sm:$0xff] (!%p240_p3)   ;;  %v2873_v4 = vld [vmem:[%s3424_s1 + $0x50] sm:$0xff] (!%p240_p3)   ;;  %s2467_s7 = sshll.u32 (!%p240_p3), %s2983_s21, 5 }
   0x9   : > { %s3441_s27 = smov (%p31_p4, %s3439_s27), 0  ;;  %243 = sbr.rel (%p240_p3) target bundleno = 433 (0x1b1), region = 32 }
   0xa   : > { %v2870_v1 = vld [vmem:[%s3424_s1 + $0x100] sm:$0xff] (!%p240_p3)   ;;  %2596 = vmatprep.subr.bf16.mxu1 (!%p240_p3), %v2869_v0  ;;  %v2872_v3 = vld [vmem:[%s3424_s1 + $0x108] sm:$0xff] (!%p240_p3)   ;;  %v2874_v5 = vld [vmem:[%s3424_s1 + $0x110] sm:$0xff] (!%p240_p3)   ;;  %vm614_vm0 = vsmask.f32 (!%p240_p3), 3328  ;;  %p315_p7 = scmp.lt.s32.totalorder (!%p240_p3), %s2983_s21, 1 }
   0xb   : > { %2676 = vmatprep.subr.bf16.mxu0 (!%p240_p3), %v2870_v1  ;;  %2597 = vmatpush3.bf16.msra.mxu1 (!%p240_p3), %v2869_v0  ;;  %v2875_v6 = vld [vmem:[%s3424_s1 + $0x58] sm:$0xff] (!%p240_p3)   ;;  %v2877_v8 = vld [vmem:[%s3424_s1 + $0x60] sm:$0xff] (!%p240_p3)   ;;  %v2879_v10 = vld [vmem:[%s3424_s1 + $0x68] sm:$0xff] (!%p240_p3)   ;;  %vm615_vm1 = vsmask.f32 (!%p240_p3), 7440 }
   0xc   : > { %2677 = vmatpush3.bf16.msra.mxu0 (!%p240_p3), %v2870_v1  ;;  %2598 = vmatprep.subr.bf16.mxu1 (!%p240_p3), %v2871_v2  ;;  %v2876_v7 = vld [vmem:[%s3424_s1 + $0x118] sm:$0xff] (!%p240_p3)   ;;  %v2878_v9 = vld [vmem:[%s3424_s1 + $0x120] sm:$0xff] (!%p240_p3)   ;;  %v2880_v12 = vld [vmem:[%s3424_s1 + $0x128] sm:$0xff] (!%p240_p3)  }
   0xd   : > { %2678 = vmatprep.subr.bf16.mxu0 (!%p240_p3), %v2872_v3  ;;  %v2881_v14 = vld [vmem:[%s3424_s1 + $0x70] sm:$0xff] (!%p240_p3)   ;;  %v2883_v16 = vld [vmem:[%s3424_s1 + $0x78] sm:$0xff] (!%p240_p3)   ;;  %v2886_v18 = vld [vmem:[%s3424_s1] sm:$0xff] (!%p240_p3)  }
   0xe   : > { %v2882_v15 = vld [vmem:[%s3424_s1 + $0x130] sm:$0xff] (!%p240_p3)   ;;  %v2884_v17 = vld [vmem:[%s3424_s1 + $0x138] sm:$0xff] (!%p240_p3)   ;;  %v2888_v19 = vld [vmem:[%s3424_s1 + $0x140] sm:$0xff] (!%p240_p3)  }
   0xf   : > { %2599 = vmatpush3.bf16.msra.mxu1 (!%p240_p3), %v2871_v2  ;;  %v2891_v22 = vld [vmem:[%s3424_s1 + $0x8] sm:$0xff] (!%p240_p3)   ;;  %v2893_v24 = vld [vmem:[%s3424_s1 + $0x10] sm:$0xff] (!%p240_p3)   ;;  %v2895_v32 = vld [vmem:[%s3424_s1 + $0x18] sm:$0xff] (!%p240_p3)  }
  0x10   : > { %s3443_s22 = smov (!%p298_p5, %s2987_s22), 1  ;;  %2679 = vmatpush3.bf16.msra.mxu0 %v2872_v3  ;;  %2600 = vmatprep.subr.bf16.mxu1 %v2873_v4  ;;  %v2892_v23 = vld [vmem:[%s3424_s1 + $0x148] sm:$0xff]   ;;  %v2894_v26 = vld [vmem:[%s3424_s1 + $0x150] sm:$0xff]   ;;  %v2896_v37 = vld [vmem:[%s3424_s1 + $0x158] sm:$0xff]  }
  0x11   : > { %s2828_s16 = smul.u32 288, %s3443_s22  ;;  %2680 = vmatprep.subr.bf16.mxu0 %v2874_v5  ;;  %v2897_v41 = vld [vmem:[%s3424_s1 + $0x20] sm:$0xff]   ;;  %vm3172_vm2 = vmor %vm614_vm0, %vm615_vm1  ;;  %v2899_v59 = vld [vmem:[%s3424_s1 + $0x28] sm:$0xff]   ;;  %s2179_s8 = sshll.u32 %s3443_s22, 3 }
  0x12   : > { %v2898_v44 = vld [vmem:[%s3424_s1 + $0x160] sm:$0xff]   ;;  %v2900_v63 = vld [vmem:[%s3424_s1 + $0x168] sm:$0xff]   ;;  %s2181_s18 = sshll.u32 %s3443_s22, 1 }
  0x13   : > { %s302_s30 = scalar_lea.vmem %s3423_s0, %s2828_s16  ;;  %2601 = vmatpush3.bf16.msra.mxu1 %v2873_v4 }
  0x14   : > { %2681 = vmatpush3.bf16.msra.mxu0 %v2874_v5  ;;  %2602 = vmatprep.subr.bf16.mxu1 %v2875_v6  ;;  %s3105_s12 = scalar_lea.vmem %s302_s30, %s2467_s7  ;;  %s2178_s7 = sshll.u32 %s2983_s21, 2 }
  0x15   : > { %2682 = vmatprep.subr.bf16.mxu0 %v2876_v7  ;;  %v2885_v11 = vld [vmem:[%s3105_s12 + $0x48] ss:$8 sps:$4 sm:$0xff]   ;;  %v3115_v13 = vld [vmem:[%s3105_s12 + $0xd8] ss:$8 sps:$4 sm:$0xff]   ;;  %v2332_v28 = vld [vmem:[%s3105_s12 + $0x94] sm:$0x1] }
  0x16   : > { %2612 = vmatprep.mubr.bf16.mxu1 %v2885_v11  ;;  %2692 = vmatprep.mubr.bf16.mxu0 %v3115_v13  ;;  %v2889_v20 = vld [vmem:[%s3105_s12 + $0x58] ss:$8 sps:$4 sm:$0xff]   ;;  %v3138_v21 = vld [vmem:[%s3105_s12 + $0xe8] ss:$8 sps:$4 sm:$0xff]   ;;  %v2334_v33 = vld [vmem:[%s3105_s12 + $0x9c] sm:$0x1] }
  0x17   : > { %2603 = vmatpush3.bf16.msra.mxu1 %v2875_v6  ;;  %v2905_v25 = vld [vmem:[%s3105_s12] ss:$8 sps:$4 sm:$0xff]   ;;  %v2331_v27 = vld [vmem:[%s3105_s12 + $0x90] sm:$0xf]  ;;  %v2333_v29 = vld [vmem:[%s3105_s12 + $0x98] sm:$0xf] }
  0x18   : > { %2683 = vmatpush3.bf16.msra.mxu0 %v2876_v7  ;;  %2604 = vmatprep.subr.bf16.mxu1 %v2877_v8  ;;  %v1195_v30 = vshrl.u32 %v2331_v27, 16  ;;  %v1198_v31 = vshll.u32 %v2331_v27, 16  ;;  %v1204_v34 = vshll.u32 %v2332_v28, 16  ;;  %v1209_v35 = vshrl.u32 %v2333_v29, 16  ;;  %v2335_v50 = vld [vmem:[%s3105_s12 + $0xa0] sm:$0xf] }
  0x19   : > { %2684 = vmatprep.subr.bf16.mxu0 %v2878_v9  ;;  %v1212_v36 = vshll.u32 %v2333_v29, 16  ;;  %v1218_v40 = vshll.u32 %v2334_v33, 16  ;;  %v2336_v51 = vld [vmem:[%s3105_s12 + $0xa4] sm:$0x1]  ;;  %v2337_v53 = vld [vmem:[%s3105_s12 + $0xa8] sm:$0xf] }
  0x1a   : > { %v1197_v38 = vrot.slane %v1195_v30, 4  ;;  %v1200_v39 = vrot.slane %v1198_v31, 5  ;;  %v1211_v42 = vrot.slane %v1209_v35, 4  ;;  %v1206_v46 = vrot.slane %v1204_v34, 5  ;;  %v2338_v54 = vld [vmem:[%s3105_s12 + $0xac] sm:$0x1] }
  0x1b   : > { %2605 = vmatpush3.bf16.msra.mxu1 %v2877_v8  ;;  %v1214_v43 = vrot.slane %v1212_v36, 5  ;;  %v1220_v49 = vrot.slane %v1218_v40, 5  ;;  %v1223_v55 = vshrl.u32 %v2335_v50, 16  ;;  %v1226_v57 = vshll.u32 %v2335_v50, 16  ;;  %v2901_v7 = vld [vmem:[%s3424_s1 + $0x30] sm:$0xff]   ;;  %v2903_v11 = vld [vmem:[%s3424_s1 + $0x38] sm:$0xff]  }
  0x1c   : > { %2685 = vmatpush3.bf16.msra.mxu0 %v2878_v9  ;;  %2606 = vmatprep.subr.bf16.mxu1 %v2879_v10  ;;  %v1201_v45 = vor.u32 %v1200_v39, %v1197_v38  ;;  %v1237_v58 = vshrl.u32 %v2337_v53, 16  ;;  %v1232_v61 = vshll.u32 %v2336_v51, 16  ;;  %v1240_v62 = vshll.u32 %v2337_v53, 16  ;;  %v609_v27 = vld [vmem:[%s3105_s12 + $0xc] sm:$0x1]  ;;  %v2913_v51 = vld [vmem:[%s3424_s1 + $0x98] sm:$0xff]  }
  0x1d   : > { %2686 = vmatprep.subr.bf16.mxu0 %v2880_v12  ;;  %v1215_v48 = vor.u32 %v1214_v43, %v1211_v42  ;;  %v1225_v1 = vrot.slane %v1223_v55, 4  ;;  %v1228_v2 = vrot.slane %v1226_v57, 5  ;;  %v1246_v6 = vshll.u32 %v2338_v54, 16  ;;  %v2909_v35 = vld [vmem:[%s3424_s1 + $0x88] sm:$0xff]   ;;  %v610_v54 = vld [vmem:[%s3105_s12 + $0x10] sm:$0xf] }
  0x1e   : > { %v1202_v52 = vrot.slane %v1201_v45, 4  ;;  %v1239_v3 = vrot.slane %v1237_v58, 4  ;;  %v1242_v5 = vrot.slane %v1240_v62, 5  ;;  %v641_v34 = vshll.u32 %v609_v27, 16  ;;  %v2910_v39 = vld [vmem:[%s3424_s1 + $0x188] sm:$0xff]   ;;  %v2914_v57 = vld [vmem:[%s3424_s1 + $0x198] sm:$0xff]  }
  0x1f   : > { %2607 = vmatpush3.bf16.msra.mxu1 %v2879_v10  ;;  %v1216_v56 = vrot.slane %v1215_v48, 4  ;;  %v1229_v8 = vor.u32 %v1228_v2, %v1225_v1  ;;  %v2902_v10 = vld [vmem:[%s3424_s1 + $0x170] sm:$0xff]   ;;  %v612_v55 = vld [vmem:[%s3105_s12 + $0x18] sm:$0xf]  ;;  %v2915_v58 = vld [vmem:[%s3424_s1 + $0xa0] sm:$0xff]   ;;  %p306_p6 = scmp.lt.s32.totalorder %s2178_s7, 7 }
  0x20   : > { %2687 = vmatpush3.bf16.msra.mxu0 %v2880_v12  ;;  %2608 = vmatprep.subr.bf16.mxu1 %v2881_v14  ;;  %v1207_v60 = vsel %vm3172_vm2, %v1202_v52, %v1206_v46  ;;  %v1243_v9 = vor.u32 %v1242_v5, %v1239_v3  ;;  %v1234_v12 = vrot.slane %v1232_v61, 5  ;;  %v643_v45 = vrot.slane %v641_v34, 5  ;;  %v2911_v46 = vld [vmem:[%s3424_s1 + $0x90] sm:$0xff]   ;;  %v613_v1 = vld [vmem:[%s3105_s12 + $0x1c] sm:$0x1]  ;;  %s3447_s21 = smov (!%p315_p7, %s2983_s21), 1 }
  0x21   : > { %2688 = vmatprep.subr.bf16.mxu0 %v2882_v15  ;;  %v1221_v0 = vsel %vm3172_vm2, %v1216_v56, %v1220_v49  ;;  %v2912_v49 = vld [vmem:[%s3424_s1 + $0x190] sm:$0xff]   ;;  %v660_v61 = vshrl.u32 %v612_v55, 16  ;;  %v663_v62 = vshll.u32 %v612_v55, 16  ;;  %v2926_v27 = vld [vmem:[%s3105_s12 + $0x18] ss:$8 sps:$4 sm:$0xff]   ;;  %s3445_s7 = smov (!%p306_p6, %s2178_s7), 7  ;;  %s318_s19 = sadd.s32 %s2181_s18, %s3447_s21 }
  0x22   : > { %v2355_v4 = vcombine.low %v1207_v60, %v1221_v0  ;;  %v649_v60 = vshll.u32 %v610_v54, 16  ;;  %v611_v0 = vld [vmem:[%s3105_s12 + $0x14] sm:$0x1]  ;;  %v2931_v34 = vld [vmem:[%s3424_s1 + $0xd8] sm:$0xff]   ;;  %s309_s9 = sadd.s32 %s2179_s8, %s3445_s7  ;;  %s2182_s20 = sshll.u32 %s318_s19, 3 }
  0x23   : > { %2609 = vmatpush3.bf16.msra.mxu1 %v2881_v14  ;;  %v1248_v14 = vrot.slane %v1246_v6, 5  ;;  %v665_v5 = vrot.slane %v663_v62, 5  ;;  %v2917_v6 = vld [vmem:[%s3424_s1 + $0xa8] sm:$0xff]   ;;  %s2180_s10 = sshll.u32 %s309_s9, 2  ;;  %s338_s29 = scalar_lea.vmem %s3429_s6, %s2182_s20 }
  0x24   : > { %2689 = vmatpush3.bf16.msra.mxu0 %v2882_v15  ;;  %2610 = vmatprep.subr.bf16.mxu1 %v2883_v16  ;;  %v1230_v15 = vrot.slane %v1229_v8, 4  ;;  %v651_v3 = vrot.slane %v649_v60, 5  ;;  %v655_v8 = vshll.u32 %v611_v0, 16  ;;  %v2940_v60 = vld [vmem:[%s3424_s1 + $0x1f8] sm:$0xff]   ;;  %s329_s14 = scalar_lea.vmem %s3428_s5, %s2180_s10  ;;  %s311_s17 = scalar_lea.vmem %s3426_s3, %s2180_s10 }
  0x25   : > { %2690 = vmatprep.subr.bf16.mxu0 %v2884_v17  ;;  %s320_s30 = scalar_lea.vmem %s3427_s4, %s2182_s20 }
  0x27   : > { %2611 = vmatpush3.bf16.msra.mxu1 %v2883_v16  ;;  %v1244_v16 = vrot.slane %v1243_v9, 4  ;;  %v669_v9 = vshll.u32 %v613_v1, 16  ;;  %v2943_v1 = vld [vmem:[%s3425_s2] sm:$0xff]  }
  0x28   : > { %2691 = vmatpush3.bf16.msra.mxu0 %v2884_v17  ;;  %2616 = vmatprep.subr.bf16.mxu1 %v2886_v18  ;;  %v2904_v17 = vld [vmem:[%s3424_s1 + $0x178] sm:$0xff]  }
  0x29   : > { %2716 = vmatprep.subr.bf16.mxu0 %v2888_v19 }
  0x2a   : > { %2613 = vmatmul.mubr.bf16.vlgmr.msra.gmra.mrb[0].mxu1 %v2889_v20  ;;  %v2908_v20 = vld [vmem:[%s3105_s12 + $0x10] ss:$8 sps:$4 sm:$0xff]  }
  0x2b   : > { %2617 = vmatpush3.bf16.msra.mxu1 %v2886_v18  ;;  %2693 = vmatmul.mubr.bf16.vlgmr.msra.gmra.mrb[0].mxu0 %v3138_v21  ;;  %v2906_v18 = vld [vmem:[%s3424_s1 + $0x80] sm:$0xff]  }
  0x2c   : > { %2717 = vmatpush3.bf16.msra.mxu0 %v2888_v19  ;;  %2618 = vmatprep.subr.bf16.mxu1 %v2891_v22  ;;  %v2907_v19 = vld [vmem:[%s3424_s1 + $0x180] sm:$0xff]  }
  0x2d   : > { %2718 = vmatprep.subr.bf16.mxu0 %v2892_v23  ;;  %2632 = vmatprep.mubr.bf16.mxu1 %v2905_v25  ;;  %v607_v25 = vld [vmem:[%s3105_s12 + $0x4] sm:$0x1] }
  0x2e   : > { %2732 = vmatprep.mubr.bf16.mxu0 %v2355_v4  ;;  %v627_v30 = vshll.u32 %v607_v25, 16  ;;  %v662_v4 = vrot.slane %v660_v61, 4  ;;  %v2925_v25 = vld [vmem:[%s3424_s1 + $0x1c0] sm:$0xff]  }
  0x2f   : > { %2619 = vmatpush3.bf16.msra.mxu1 %v2891_v22  ;;  %v1235_v22 = vsel %vm3172_vm2, %v1230_v15, %v1234_v12  ;;  %v2919_v12 = vld [vmem:[%s3424_s1 + $0xb0] sm:$0xff]   ;;  %v657_v15 = vrot.slane %v655_v8, 5  ;;  %v2948_v8 = vld [vmem:[%s3424_s1 + $0x208] sm:$0xff]  }
  0x30   : > { %2719 = vmatpush3.bf16.msra.mxu0 %v2892_v23  ;;  %2620 = vmatprep.subr.bf16.mxu1 %v2893_v24  ;;  %v1249_v23 = vsel %vm3172_vm2, %v1244_v16, %v1248_v14  ;;  %v629_v43 = vrot.slane %v627_v30, 5  ;;  %v2920_v14 = vld [vmem:[%s3424_s1 + $0x1b0] sm:$0xff]   ;;  %v671_v16 = vrot.slane %v669_v9, 5 }
  0x31   : > { %2720 = vmatprep.subr.bf16.mxu0 %v2894_v26  ;;  %v2941_v30 = vld [vmem:[%s3105_s12 + $0x90] ss:$8 sps:$4 sm:$0xff]  }
  0x33   : > { %2621 = vmatpush3.bf16.msra.mxu1 %v2893_v24  ;;  %v606_v24 = vld [vmem:[%s3105_s12] sm:$0xf] }
  0x34   : > { %2721 = vmatpush3.bf16.msra.mxu0 %v2894_v26  ;;  %2622 = vmatprep.subr.bf16.mxu1 %v2895_v32  ;;  %v608_v26 = vld [vmem:[%s3105_s12 + $0x8] sm:$0xf]  ;;  %v618_v28 = vshrl.u32 %v606_v24, 16  ;;  %v621_v29 = vshll.u32 %v606_v24, 16  ;;  %v2923_v24 = vld [vmem:[%s3424_s1 + $0xc0] sm:$0xff]  }
  0x35   : > { %2722 = vmatprep.subr.bf16.mxu0 %v2896_v37  ;;  %v632_v31 = vshrl.u32 %v608_v26, 16  ;;  %v635_v33 = vshll.u32 %v608_v26, 16 }
  0x36   : > { %v620_v36 = vrot.slane %v618_v28, 4  ;;  %v2927_v28 = vld [vmem:[%s3424_s1 + $0xc8] sm:$0xff]  }
  0x37   : > { %2623 = vmatpush3.bf16.msra.mxu1 %v2895_v32  ;;  %v2356_v32 = vcombine.low %v1235_v22, %v1249_v23  ;;  %v634_v38 = vrot.slane %v632_v31, 4  ;;  %v637_v40 = vrot.slane %v635_v33, 5  ;;  %v2944_v31 = vld [vmem:[%s3105_s12 + $0x50] ss:$8 sps:$4 sm:$0xff]  }
  0x38   : > { %2723 = vmatpush3.bf16.msra.mxu0 %v2896_v37  ;;  %2624 = vmatprep.subr.bf16.mxu1 %v2897_v41  ;;  %v623_v37 = vrot.slane %v621_v29, 5  ;;  %v2928_v29 = vld [vmem:[%s3424_s1 + $0x1c8] sm:$0xff]   ;;  %v2930_v33 = vld [vmem:[%s3424_s1 + $0x1d0] sm:$0xff]  }
  0x39   : > { %2724 = vmatprep.subr.bf16.mxu0 %v2898_v44 }
  0x3a   : > { %v624_v42 = vor.u32 %v623_v37, %v620_v36  ;;  %v2933_v36 = vld [vmem:[%s3424_s1 + $0xe0] sm:$0xff]   ;;  %v2430_v37 = vld [vmem:[%s3105_s12 + $0x8] sm:$0xf] }
  0x3b   : > { %2625 = vmatpush3.bf16.msra.mxu1 %v2897_v41  ;;  %v2924_v41 = vld [vmem:[%s3105_s12 + $0x8] ss:$8 sps:$4 sm:$0xff]  }
  0x3c   : > { %2725 = vmatpush3.bf16.msra.mxu0 %v2898_v44  ;;  %2626 = vmatprep.subr.bf16.mxu1 %v2899_v59  ;;  %v638_v44 = vor.u32 %v637_v40, %v634_v38  ;;  %v625_v48 = vrot.slane %v624_v42, 4  ;;  %v2432_v38 = vld [vmem:[%s3105_s12 + $0x10] sm:$0xf]  ;;  %v1660_v40 = vshrl.u32 %v2430_v37, 16 }
  0x3d   : > { %2726 = vmatprep.subr.bf16.mxu0 %v2900_v63  ;;  %v1674_v42 = vshrl.u32 %v2432_v38, 16 }
  0x3e   : > { %v639_v50 = vrot.slane %v638_v44, 4  ;;  %v630_v52 = vsel %vm3172_vm2, %v625_v48, %v629_v43  ;;  %v1677_v43 = vshll.u32 %v2432_v38, 16  ;;  %v2935_v44 = vld [vmem:[%s3424_s1 + $0xe8] sm:$0xff]  }
  0x3f   : > { %2627 = vmatpush3.bf16.msra.mxu1 %v2899_v59  ;;  %v646_v59 = vshrl.u32 %v610_v54, 16  ;;  %v2938_v54 = vld [vmem:[%s3424_s1 + $0x1f0] sm:$0xff]  }
  0x40   : > { %2727 = vmatpush3.bf16.msra.mxu0 %v2900_v63  ;;  %2628 = vmatprep.subr.bf16.mxu1 %v2901_v7  ;;  %v644_v53 = vsel %vm3172_vm2, %v639_v50, %v643_v45  ;;  %v2916_v63 = vld [vmem:[%s3424_s1 + $0x1a0] sm:$0xff]   ;;  %v2936_v45 = vld [vmem:[%s3424_s1 + $0x1e8] sm:$0xff]   ;;  %v1679_v50 = vrot.slane %v1677_v43, 5 }
  0x41   : > { %2728 = vmatprep.subr.bf16.mxu0 %v2902_v10  ;;  %v2249_v56 = vcombine.low %v630_v52, %v644_v53  ;;  %v648_v2 = vrot.slane %v646_v59, 4  ;;  %v2431_v52 = vld [vmem:[%s3105_s12 + $0xc] sm:$0x1]  ;;  %v2433_v53 = vld [vmem:[%s3105_s12 + $0x14] sm:$0x1]  ;;  %v2939_v59 = vld [vmem:[%s3424_s1 + $0xf8] sm:$0xff]  }
  0x43   : > { %2629 = vmatpush3.bf16.msra.mxu1 %v2901_v7  ;;  %v2918_v7 = vld [vmem:[%s3424_s1 + $0x1a8] sm:$0xff]  }
  0x44   : > { %2729 = vmatpush3.bf16.msra.mxu0 %v2902_v10  ;;  %2630 = vmatprep.subr.bf16.mxu1 %v2903_v11  ;;  %v652_v10 = vor.u32 %v651_v3, %v648_v2  ;;  %v2945_v2 = vld [vmem:[%s3424_s1 + $0x200] sm:$0xff]  }
  0x45   : > { %2730 = vmatprep.subr.bf16.mxu0 %v2904_v17  ;;  %v2942_v3 = vld [vmem:[%s3105_s12 + $0xa0] ss:$8 sps:$4 sm:$0xff]  }
  0x47   : > { %2631 = vmatpush3.bf16.msra.mxu1 %v2903_v11  ;;  %v666_v11 = vor.u32 %v665_v5, %v662_v4  ;;  %v2946_v4 = vld [vmem:[%s3105_s12 + $0x60] ss:$8 sps:$4 sm:$0xff]  }
  0x48   : > { %2731 = vmatpush3.bf16.msra.mxu0 %v2904_v17  ;;  %2636 = vmatprep.subr.bf16.mxu1 %v2906_v18  ;;  %v653_v17 = vrot.slane %v652_v10, 4  ;;  %v2949_v10 = vld [vmem:[%s3425_s2 + $0x10] sm:$0xff]  }
  0x49   : > { %2736 = vmatprep.subr.bf16.mxu0 %v2907_v19 }
  0x4a   : > { %2633 = vmatmul.mubr.bf16.vlgmr.msra.gmra.mrb[0].mxu1 %v2908_v20  ;;  %v2922_v20 = vld [vmem:[%s3424_s1 + $0x1b8] sm:$0xff]   ;;  %v658_v22 = vsel %vm3172_vm2, %v653_v17, %v657_v15 }
  0x4b   : > { %2637 = vmatpush3.bf16.msra.mxu1 %v2906_v18  ;;  %2733 = vmatmul.mubr.bf16.vlgmr.msra.gmra.mrb[0].mxu0 %v2356_v32  ;;  %v667_v18 = vrot.slane %v666_v11, 4  ;;  %v2929_v32 = vld [vmem:[%s3424_s1 + $0xd0] sm:$0xff]   ;;  %v2434_v15 = vld [vmem:[%s3105_s12 + $0x18] sm:$0xf] }
  0x4c   : > { %2737 = vmatpush3.bf16.msra.mxu0 %v2907_v19  ;;  %2638 = vmatprep.subr.bf16.mxu1 %v2909_v35  ;;  %v2921_v19 = vld [vmem:[%s3424_s1 + $0xb8] sm:$0xff]   ;;  %v2950_v11 = vld [vmem:[%s3424_s1 + $0x210] sm:$0xff]   ;;  %v1688_v17 = vshrl.u32 %v2434_v15, 16 }
  0x4d   : > { %2738 = vmatprep.subr.bf16.mxu0 %v2910_v39  ;;  %2752 = vmatprep.mubr.bf16.mxu0 %v2924_v41  ;;  %v672_v23 = vsel %vm3172_vm2, %v667_v18, %v671_v16  ;;  %v1663_v41 = vshll.u32 %v2430_v37, 16  ;;  %v2436_v16 = vld [vmem:[%s3105_s12 + $0x20] sm:$0xf]  ;;  %v1691_v18 = vshll.u32 %v2434_v15, 16  ;;  %v2959_v37 = vld [vmem:[%s3425_s2 + $0x38] sm:$0xff]  }
  0x4e   : > { %2652 = vmatprep.mubr.bf16.mxu1 %v2249_v56  ;;  %v2250_v26 = vcombine.low %v658_v22, %v672_v23  ;;  %v1669_v56 = vshll.u32 %v2431_v52, 16  ;;  %v2954_v22 = vld [vmem:[%s3424_s1 + $0x220] sm:$0xff]   ;;  %v2955_v23 = vld [vmem:[%s3425_s2 + $0x28] sm:$0xff]  }
  0x4f   : > { %2639 = vmatpush3.bf16.msra.mxu1 %v2909_v35  ;;  %v2932_v35 = vld [vmem:[%s3424_s1 + $0x1d8] sm:$0xff]   ;;  %v1665_v48 = vrot.slane %v1663_v41, 5 }
  0x50   : > { %2739 = vmatpush3.bf16.msra.mxu0 %v2910_v39  ;;  %2640 = vmatprep.subr.bf16.mxu1 %v2911_v46  ;;  %v2934_v39 = vld [vmem:[%s3424_s1 + $0x1e0] sm:$0xff]   ;;  %v1671_v62 = vrot.slane %v1669_v56, 5 }
  0x51   : > { %2740 = vmatprep.subr.bf16.mxu0 %v2912_v49 }
  0x53   : > { %2641 = vmatpush3.bf16.msra.mxu1 %v2911_v46  ;;  %v1662_v46 = vrot.slane %v1660_v40, 4 }
  0x54   : > { %2741 = vmatpush3.bf16.msra.mxu0 %v2912_v49  ;;  %2642 = vmatprep.subr.bf16.mxu1 %v2913_v51  ;;  %v1676_v49 = vrot.slane %v1674_v42, 4  ;;  %v2960_v42 = vld [vmem:[%s3424_s1 + $0x238] sm:$0xff]  }
  0x55   : > { %2742 = vmatprep.subr.bf16.mxu0 %v2914_v57  ;;  %v1666_v55 = vor.u32 %v1665_v48, %v1662_v46 }
  0x57   : > { %2643 = vmatpush3.bf16.msra.mxu1 %v2913_v51  ;;  %v2937_v51 = vld [vmem:[%s3424_s1 + $0xf0] sm:$0xff]   ;;  %v1667_v61 = vrot.slane %v1666_v55, 4 }
  0x58   : > { %2743 = vmatpush3.bf16.msra.mxu0 %v2914_v57  ;;  %2644 = vmatprep.subr.bf16.mxu1 %v2915_v58  ;;  %v1680_v57 = vor.u32 %v1679_v50, %v1676_v49 }
  0x59   : > { %2744 = vmatprep.subr.bf16.mxu0 %v2916_v63  ;;  %v1672_v5 = vsel %vm3172_vm2, %v1667_v61, %v1671_v62 }
  0x5b   : > { %2645 = vmatpush3.bf16.msra.mxu1 %v2915_v58  ;;  %v1683_v58 = vshll.u32 %v2433_v53, 16 }
  0x5c   : > { %2745 = vmatpush3.bf16.msra.mxu0 %v2916_v63  ;;  %2646 = vmatprep.subr.bf16.mxu1 %v2917_v6  ;;  %v1681_v63 = vrot.slane %v1680_v57, 4 }
  0x5d   : > { %2746 = vmatprep.subr.bf16.mxu0 %v2918_v7  ;;  %v1685_v0 = vrot.slane %v1683_v58, 5 }
  0x5f   : > { %2647 = vmatpush3.bf16.msra.mxu1 %v2917_v6  ;;  %v1686_v6 = vsel %vm3172_vm2, %v1681_v63, %v1685_v0 }
  0x60   : > { %2747 = vmatpush3.bf16.msra.mxu0 %v2918_v7  ;;  %2648 = vmatprep.subr.bf16.mxu1 %v2919_v12  ;;  %v2947_v7 = vld [vmem:[%s3425_s2 + $0x8] sm:$0xff]   ;;  %v2454_v9 = vcombine.low %v1672_v5, %v1686_v6 }
  0x61   : > { %2748 = vmatprep.subr.bf16.mxu0 %v2920_v14 }
  0x63   : > { %2649 = vmatpush3.bf16.msra.mxu1 %v2919_v12  ;;  %v2951_v12 = vld [vmem:[%s3425_s2 + $0x18] sm:$0xff]  }
  0x64   : > { %2749 = vmatpush3.bf16.msra.mxu0 %v2920_v14  ;;  %2650 = vmatprep.subr.bf16.mxu1 %v2921_v19  ;;  %v2952_v14 = vld [vmem:[%s3424_s1 + $0x218] sm:$0xff]  }
  0x65   : > { %2750 = vmatprep.subr.bf16.mxu0 %v2922_v20 }
  0x67   : > { %2651 = vmatpush3.bf16.msra.mxu1 %v2921_v19  ;;  %v1702_v19 = vshrl.u32 %v2436_v16, 16 }
  0x68   : > { %2751 = vmatpush3.bf16.msra.mxu0 %v2922_v20  ;;  %2656 = vmatprep.subr.bf16.mxu1 %v2923_v24  ;;  %v1705_v20 = vshll.u32 %v2436_v16, 16 }
  0x69   : > { %2756 = vmatprep.subr.bf16.mxu0 %v2925_v25 }
  0x6a   : > { %2653 = vmatmul.mubr.bf16.vlgmr.msra.gmra.mrb[0].mxu1 %v2250_v26  ;;  %v1704_v26 = vrot.slane %v1702_v19, 4 }
  0x6b   : > { %2657 = vmatpush3.bf16.msra.mxu1 %v2923_v24  ;;  %2753 = vmatmul.mubr.bf16.vlgmr.msra.gmra.mrb[0].mxu0 %v2926_v27  ;;  %v1690_v24 = vrot.slane %v1688_v17, 4  ;;  %v1707_v27 = vrot.slane %v1705_v20, 5 }
  0x6c   : > { %2757 = vmatpush3.bf16.msra.mxu0 %v2925_v25  ;;  %2658 = vmatprep.subr.bf16.mxu1 %v2927_v28  ;;  %v1693_v25 = vrot.slane %v1691_v18, 5 }
  0x6d   : > { %2758 = vmatprep.subr.bf16.mxu0 %v2928_v29  ;;  %2672 = vmatprep.mubr.bf16.mxu1 %v2941_v30  ;;  %v2437_v30 = vld [vmem:[%s3105_s12 + $0x24] sm:$0x1] }
  0x6e   : > { %2772 = vmatprep.mubr.bf16.mxu0 %v2944_v31  ;;  %v2957_v31 = vld [vmem:[%s3425_s2 + $0x30] sm:$0xff]  }
  0x6f   : > { %2659 = vmatpush3.bf16.msra.mxu1 %v2927_v28  ;;  %v2956_v28 = vld [vmem:[%s3424_s1 + $0x228] sm:$0xff]  }
  0x70   : > { %2759 = vmatpush3.bf16.msra.mxu0 %v2928_v29  ;;  %2660 = vmatprep.subr.bf16.mxu1 %v2929_v32  ;;  %v2435_v29 = vld [vmem:[%s3105_s12 + $0x1c] sm:$0x1] }
  0x71   : > { %2760 = vmatprep.subr.bf16.mxu0 %v2930_v33 }
  0x73   : > { %2661 = vmatpush3.bf16.msra.mxu1 %v2929_v32  ;;  %v1694_v32 = vor.u32 %v1693_v25, %v1690_v24 }
  0x74   : > { %2761 = vmatpush3.bf16.msra.mxu0 %v2930_v33  ;;  %2662 = vmatprep.subr.bf16.mxu1 %v2931_v34  ;;  %v1697_v33 = vshll.u32 %v2435_v29, 16 }
  0x75   : > { %2762 = vmatprep.subr.bf16.mxu0 %v2932_v35  ;;  %v1695_v38 = vrot.slane %v1694_v32, 4 }
  0x77   : > { %2663 = vmatpush3.bf16.msra.mxu1 %v2931_v34  ;;  %v1708_v34 = vor.u32 %v1707_v27, %v1704_v26 }
  0x78   : > { %2763 = vmatpush3.bf16.msra.mxu0 %v2932_v35  ;;  %2664 = vmatprep.subr.bf16.mxu1 %v2933_v36  ;;  %v1711_v35 = vshll.u32 %v2437_v30, 16 }
  0x79   : > { %2764 = vmatprep.subr.bf16.mxu0 %v2934_v39  ;;  %v1709_v40 = vrot.slane %v1708_v34, 4 }
  0x7a   : > { %v1713_v41 = vrot.slane %v1711_v35, 5 }
  0x7b   : > { %2665 = vmatpush3.bf16.msra.mxu1 %v2933_v36  ;;  %v2958_v36 = vld [vmem:[%s3424_s1 + $0x230] sm:$0xff]  }
  0x7c   : > { %2765 = vmatpush3.bf16.msra.mxu0 %v2934_v39  ;;  %2666 = vmatprep.subr.bf16.mxu1 %v2935_v44  ;;  %v1699_v39 = vrot.slane %v1697_v33, 5 }
  0x7d   : > { %2766 = vmatprep.subr.bf16.mxu0 %v2936_v45 }
  0x7e   : > { %v1700_v43 = vsel %vm3172_vm2, %v1695_v38, %v1699_v39 }
  0x7f   : > { %2667 = vmatpush3.bf16.msra.mxu1 %v2935_v44  ;;  %v1714_v44 = vsel %vm3172_vm2, %v1709_v40, %v1713_v41 }
  0x80   : > { %2767 = vmatpush3.bf16.msra.mxu0 %v2936_v45  ;;  %2668 = vmatprep.subr.bf16.mxu1 %v2937_v51  ;;  %v2455_v45 = vcombine.low %v1700_v43, %v1714_v44  ;;  %v1876_v44 = vlaneseq }
  0x81   : > { %2768 = vmatprep.subr.bf16.mxu0 %v2938_v54 }
  0x83   : > { %2669 = vmatpush3.bf16.msra.mxu1 %v2937_v51 }
  0x84   : > { %2769 = vmatpush3.bf16.msra.mxu0 %v2938_v54  ;;  %2670 = vmatprep.subr.bf16.mxu1 %v2939_v59 }
  0x85   : > { %2770 = vmatprep.subr.bf16.mxu0 %v2940_v60 }
  0x87   : > { %2671 = vmatpush3.bf16.msra.mxu1 %v2939_v59 }
  0x88   : > { %2771 = vmatpush3.bf16.msra.mxu0 %v2940_v60  ;;  %2696 = vmatprep.subr.bf16.mxu1 %v2943_v1 }
  0x89   : > { %2776 = vmatprep.subr.bf16.mxu0 %v2945_v2 }
  0x8a   : > { %2673 = vmatmul.mubr.bf16.vlgmr.msra.gmra.mrb[0].mxu1 %v2942_v3 }
  0x8b   : > { %2697 = vmatpush3.bf16.msra.mxu1 %v2943_v1  ;;  %2773 = vmatmul.mubr.bf16.vlgmr.msra.gmra.mrb[0].mxu0 %v2946_v4 }
  0x8c   : > { %2777 = vmatpush3.bf16.msra.mxu0 %v2945_v2  ;;  %2698 = vmatprep.subr.bf16.mxu1 %v2947_v7 }
  0x8d   : > { %2778 = vmatprep.subr.bf16.mxu0 %v2948_v8  ;;  %2712 = vmatprep.mubr.bf16.mxu1 %v3115_v13  ;;  %v2953_v13 = vld [vmem:[%s3425_s2 + $0x20] sm:$0xff]  }
  0x8e   : > { %2792 = vmatprep.mubr.bf16.mxu0 %v2454_v9 }
  0x8f   : > { %2699 = vmatpush3.bf16.msra.mxu1 %v2947_v7 }
  0x90   : > { %2779 = vmatpush3.bf16.msra.mxu0 %v2948_v8  ;;  %2700 = vmatprep.subr.bf16.mxu1 %v2949_v10 }
  0x91   : > { %2780 = vmatprep.subr.bf16.mxu0 %v2950_v11 }
  0x93   : > { %2701 = vmatpush3.bf16.msra.mxu1 %v2949_v10 }
  0x94   : > { %2781 = vmatpush3.bf16.msra.mxu0 %v2950_v11  ;;  %2702 = vmatprep.subr.bf16.mxu1 %v2951_v12 }
  0x95   : > { %2782 = vmatprep.subr.bf16.mxu0 %v2952_v14 }
  0x97   : > { %2703 = vmatpush3.bf16.msra.mxu1 %v2951_v12 }
  0x98   : > { %2783 = vmatpush3.bf16.msra.mxu0 %v2952_v14  ;;  %2704 = vmatprep.subr.bf16.mxu1 %v2953_v13 }
  0x99   : > { %2784 = vmatprep.subr.bf16.mxu0 %v2954_v22 }
  0x9b   : > { %2705 = vmatpush3.bf16.msra.mxu1 %v2953_v13 }
  0x9c   : > { %2785 = vmatpush3.bf16.msra.mxu0 %v2954_v22  ;;  %2706 = vmatprep.subr.bf16.mxu1 %v2955_v23 }
  0x9d   : > { %2786 = vmatprep.subr.bf16.mxu0 %v2956_v28 }
  0x9f   : > { %2707 = vmatpush3.bf16.msra.mxu1 %v2955_v23 }
  0xa0   : > { %2787 = vmatpush3.bf16.msra.mxu0 %v2956_v28  ;;  %2708 = vmatprep.subr.bf16.mxu1 %v2957_v31 }
  0xa1   : > { %2788 = vmatprep.subr.bf16.mxu0 %v2958_v36 }
  0xa3   : > { %2709 = vmatpush3.bf16.msra.mxu1 %v2957_v31 }
  0xa4   : > { %2789 = vmatpush3.bf16.msra.mxu0 %v2958_v36  ;;  %2710 = vmatprep.subr.bf16.mxu1 %v2959_v37 }
  0xa5   : > { %2790 = vmatprep.subr.bf16.mxu0 %v2960_v42 }
  0xa7   : > { %2711 = vmatpush3.bf16.msra.mxu1 %v2959_v37 }
  0xa8   : > { %2791 = vmatpush3.bf16.msra.mxu0 %v2960_v42 }
  0xaa   : > { %2713 = vmatmul.mubr.bf16.vlgmr.msra.gmra.mrb[4].mxu1 %v3138_v21 }
  0xab   : > { %2793 = vmatmul.mubr.bf16.vlgmr.msra.gmra.mrb[0].mxu0 %v2455_v45 }
 0x15d   : > { %v2674_v46 = vpop.f32.mrb[0].mxu1 }
 0x15e   : > { %v917_v48 = vpop.f32.mrb[1].mxu1 }
 0x15f   : > { %v2675_v49 = vpop.f32.mrb[2].mxu1 }
 0x160   : > { %v920_v50 = vpop.f32.mrb[3].mxu1 }
 0x17d   : > { %v2714_v51 = vpop.f32.mrb[4].mxu1 }
 0x17e   : > { %v2794_v47 = vpop.f32.mrb[0].mxu0  ;;  %v1171_v52 = vpop.f32.mrb[5].mxu1 }
 0x17f   : > { %v2796_v53 = vadd.f32 %v2794_v47, %v2674_v46  ;;  %v1822_v54 = vpop.f32.mrb[1].mxu0  ;;  %v2715_v55 = vpop.f32.mrb[6].mxu1 }
 0x180   : > { %v2797_v21 = vadd.f32 %v1822_v54, %v917_v48  ;;  %v2492_v56 = vpack.c.bf16 %v2715_v55, %v2714_v51  ;;  %v2795_v57 = vpop.f32.mrb[2].mxu0  ;;  %v1174_v58 = vpop.f32.mrb[7].mxu1 }
 0x181   : > { %v2798_v59 = vadd.f32 %v2795_v57, %v2675_v49  ;;  %v2487_v60 = vpack.c.bf16 %v1174_v58, %v1171_v52  ;;  %v1891_v61 = vadd.f32 %v1174_v58, %v1171_v52  ;;  %v1825_v62 = vpop.f32.mrb[3].mxu0 }
 0x182   : > { %2495 = vst [vmem:[%s329_s14 + $0x8] sm:$0xff] %v2492_v56   ;;  %v2799_v63 = vadd.f32 %v1825_v62, %v920_v50  ;;  %v1877_v50 = vshrl.u32 %v1876_v44, 7 }
 0x183   : > { %v2482_v0 = vpack.c.bf16 %v2798_v59, %v2796_v53  ;;  %2488 = vst [vmem:[%s329_s14] sm:$0xff] %v2487_v60   ;;  %v1892_v1 = vadd.f32 %v2714_v51, %v1891_v61 }
 0x184   : > { %v2477_v2 = vpack.c.bf16 %v2799_v63, %v2797_v21  ;;  %v1849_v3 = vadd.f32 %v2799_v63, %v2797_v21  ;;  %vm1879_vm3 = vcmp.eq.s32.totalorder %v1877_v50, 1  ;;  %vm1878_vm4 = vcmp.eq.s32.totalorder %v1877_v50, 0 }
 0x185   : > { %2494 = vst [vmem:[%s311_s17 + $0x8] sm:$0xff] %v2482_v0   ;;  %v1893_v4 = vadd.f32 %v2715_v55, %v1892_v1 }
 0x186   : > { %2478 = vst [vmem:[%s311_s17] sm:$0xff] %v2477_v2   ;;  %v1850_v5 = vadd.f32 %v2796_v53, %v1849_v3 }
 0x187   : > { %v1894_v6 = vrot.slane %v1893_v4, 4 }
 0x188   : > { %v1851_v7 = vadd.f32 %v2798_v59, %v1850_v5 }
 0x189   : > { %v1895_v8 = vadd.f32 %v1894_v6, %v1893_v4 }
 0x18a   : > { %v1852_v9 = vrot.slane %v1851_v7, 4 }
 0x18b   : > { %v1896_v10 = vrot.slane %v1895_v8, 2 }
 0x18c   : > { %v1853_v11 = vadd.f32 %v1852_v9, %v1851_v7 }
 0x18d   : > { %v1897_v12 = vadd.f32 %v1896_v10, %v1895_v8 }
 0x18e   : > { %v1854_v14 = vrot.slane %v1853_v11, 2 }
 0x18f   : > { %v1898_v15 = vrot.slane %v1897_v12, 1 }
 0x190   : > { %v1855_v16 = vadd.f32 %v1854_v14, %v1853_v11 }
 0x191   : > { %v1899_v13 = vadd.f32 %v1898_v15, %v1897_v12 }
 0x192   : > { %v1856_v17 = vrot.slane %v1855_v16, 1 }
 0x193   : > { %v1900_v18 = vmul.f32 0.03125, %v1899_v13 }
 0x194   : > { %v1857_v19 = vadd.f32 %v1856_v17, %v1855_v16 }
 0x195   : > { %v1901_v20 = vsub.f32 %v1171_v52, %v1900_v18  ;;  %v1902_v22 = vsub.f32 %v1174_v58, %v1900_v18  ;;  %v1903_v23 = vsub.f32 %v2714_v51, %v1900_v18  ;;  %v1904_v24 = vsub.f32 %v2715_v55, %v1900_v18 }
 0x196   : > { %v1858_v25 = vmul.f32 0.03125, %v1857_v19 }
 0x197   : > { %v1905_v26 = vmul.f32 %v1901_v20, %v1901_v20  ;;  %v1906_v27 = vmul.f32 %v1902_v22, %v1902_v22  ;;  %v1907_v32 = vmul.f32 %v1903_v23, %v1903_v23  ;;  %v1908_v36 = vmul.f32 %v1904_v24, %v1904_v24 }
 0x198   : > { %v1859_v28 = vsub.f32 %v2797_v21, %v1858_v25  ;;  %v1860_v29 = vsub.f32 %v2799_v63, %v1858_v25  ;;  %v1861_v30 = vsub.f32 %v2796_v53, %v1858_v25  ;;  %v1862_v31 = vsub.f32 %v2798_v59, %v1858_v25 }
 0x199   : > { %v1909_v33 = vadd.f32 %v1906_v27, %v1905_v26 }
 0x19a   : > { %v1863_v34 = vmul.f32 %v1859_v28, %v1859_v28  ;;  %v1864_v35 = vmul.f32 %v1860_v29, %v1860_v29  ;;  %v1865_v38 = vmul.f32 %v1861_v30, %v1861_v30  ;;  %v1866_v41 = vmul.f32 %v1862_v31, %v1862_v31 }
 0x19b   : > { %v1910_v37 = vadd.f32 %v1909_v33, %v1907_v32 }
 0x19c   : > { %v1867_v39 = vadd.f32 %v1864_v35, %v1863_v34 }
 0x19d   : > { %v1911_v40 = vadd.f32 %v1910_v37, %v1908_v36 }
 0x19e   : > { %v1868_v42 = vadd.f32 %v1867_v39, %v1865_v38 }
 0x19f   : > { %v1912_v43 = vrot.slane %v1911_v40, 4 }
 0x1a0   : > { %v1869_v45 = vadd.f32 %v1868_v42, %v1866_v41 }
 0x1a1   : > { %v1913_v46 = vadd.f32 %v1912_v43, %v1911_v40 }
 0x1a2   : > { %v1870_v48 = vrot.slane %v1869_v45, 4 }
 0x1a3   : > { %v1914_v49 = vrot.slane %v1913_v46, 2 }
 0x1a4   : > { %v1871_v51 = vadd.f32 %v1870_v48, %v1869_v45 }
 0x1a5   : > { %v1915_v47 = vadd.f32 %v1914_v49, %v1913_v46 }
 0x1a6   : > { %v1872_v52 = vrot.slane %v1871_v51, 2 }
 0x1a7   : > { %v1916_v53 = vrot.slane %v1915_v47, 1 }
 0x1a8   : > { %v1873_v54 = vadd.f32 %v1872_v52, %v1871_v51 }
 0x1a9   : > { %v1917_v55 = vadd.f32 %v1916_v53, %v1915_v47 }
 0x1aa   : > { %v1874_v21 = vrot.slane %v1873_v54, 1 }
 0x1ab   : > { %v1918_v56 = vsel %vm1879_vm3, %v1917_v55, 0.0 }
 0x1ac   : > { %v1919_v57 = vsel %vm1878_vm4, %v1899_v13, %v1918_v56  ;;  %v1875_v58 = vadd.f32 %v1874_v21, %v1873_v54 }
 0x1ad   : > { %1920 = vst [vmem:[%s338_s29] sm:$0xff] %v1919_v57 }
 0x1ae   : > { %v1880_v59 = vsel %vm1879_vm3, %v1875_v58, 0.0 }
 0x1af   : > { %v1881_v60 = vsel %vm1878_vm4, %v1857_v19, %v1880_v59 }
 0x1b0   : > { %1882 = vst [vmem:[%s320_s30] sm:$0xff] %v1881_v60 }
 0x1b1 PF: > { %s17_s25 = sadd.s32 1, %s2999_s25   ;;  %s3432_s21 = smov %s2991_s23 }
 0x1b2   : > { %p14_p8 = scmp.ge.s32.totalorder %s17_s25, 6   ;;  %s3433_s22 = smov %s2995_s24 }
 0x1b3   : > { %s3434_s23 = smov %s3437_s26  ;;  %s3435_s24 = smov %s3441_s27 }
 0x1b4   :  { %16 = sbr.rel (!%p14_p8) target bundleno = 3 (0x3), region = 112 }

// kernel: residual_block_pallas.4
= control target key start
LH: loop header
LB: loop body
LE: loop exit
PB: predicated region body
PF: predicated region fallthrough
CT: control target
= control target key end

     0   :  { %s2966_s18 = smov 0   ;;  %s2968_s19 = smov 0   ;;  %s3486_s0 = inlined_call_operand.vmem [shape: bf16[2,8,8,128], index: 0, kind: input, shape index: {}]   ;;  %s3487_s1 = inlined_call_operand.vmem [shape: f32[1,128], index: 1, kind: input, shape index: {}]   ;;  %s3488_s2 = inlined_call_operand.vmem [shape: f32[1,128], index: 2, kind: input, shape index: {}]   ;;  %s3489_s3 = inlined_call_operand.vmem [shape: bf16[9,128,128], index: 3, kind: input, shape index: {}]   ;;  %s3490_s4 = inlined_call_operand.vmem [shape: bf16[2,8,8,128], index: 4, kind: output, shape index: {0}]   ;;  %s3491_s5 = inlined_call_operand.vmem [shape: f32[2,2,8,128], index: 5, kind: output, shape index: {1}]  }
   0x1   :  { %s2970_s20 = smov 0   ;;  %s2972_s21 = smov 0  }
   0x2   :  { %s2974_s22 = smov 0  }
   0x3 LB: > { %s25_s23 = sadd.s32 1, %s2925_s20  ;;  %s28_s24 = sadd.s32 1, %s2929_s21  ;;  %s2933_s22 = sphi %s2974_s22, %s16_s22   ;;  %s2929_s21 = sphi %s2972_s21, %s3503_s21   ;;  %s2925_s20 = sphi %s2970_s20, %s3502_s20   ;;  %s2921_s19 = sphi %s2968_s19, %s3501_s19   ;;  %s2917_s18 = sphi %s2966_s18, %s3500_s18  }
   0x4   : > { %p26_p0 = scmp.ge.s32.totalorder %s25_s23, 2  ;;  %p2141_p1 = scmp.ge.s32.totalorder %s2933_s22, 1 }
   0x5   : > { %p206_p2 = scmp.lt.s32.totalorder %s2933_s22, 5 }
   0x6   : > { %s3505_s23 = smov (%p26_p0, %s25_s23), 0  ;;  %s3507_s24 = smov (!%p26_p0, %s28_s24), %s2929_s21 }
   0x7   : > { %p207_p3 = pnand %p2141_p1, %p206_p2  ;;  %p30_p4 = scmp.ge.s32.totalorder %s3507_s24, 2 }
   0x8   : > { %p246_p5 = scmp.lt.s32.totalorder (!%p207_p3), %s2921_s19, 1  ;;  %s2144_s25 = sshll.u32 (!%p207_p3), %s2917_s18, 2 }
   0x9   : > { %s3509_s24 = smov (%p30_p4, %s3507_s24), 0  ;;  %210 = sbr.rel (%p207_p3) target bundleno = 479 (0x1df), region = 36 }
   0xa   : > { %p254_p6 = scmp.lt.s32.totalorder (!%p207_p3), %s2144_s25, 7  ;;  %p263_p7 = scmp.lt.s32.totalorder (!%p207_p3), %s2917_s18, 1 }
   0xb   : > { %p2149_p8 = scmp.ne.s32.totalorder (!%p207_p3), %s2917_s18, 0 }
  0x10   : > { %s3511_s19 = smov (!%p246_p5, %s2921_s19), 1  ;;  %s3513_s25 = smov (!%p254_p6, %s2144_s25), 7 }
  0x11   : > { %s2431_s26 = sshll.u32 %s3511_s19, 5  ;;  %s2145_s27 = sshll.u32 %s3511_s19, 3  ;;  %v2150_v1 = vld [vmem:[%s3487_s1] ss:$0 sm:$0xff] (!%p2149_p8)  ;;  %v2935_v2 = vmov (!%p2149_p8), 0   ;;  %vm461_vm0 = vcmask (!%p2149_p8), 1043456  }
  0x12   : > { %s3003_s30 = scalar_lea.vmem %s3486_s0, %s2431_s26  ;;  %s257_s6 = sadd.s32 %s2145_s27, %s3513_s25  ;;  %276 = vst [vmem:[#allocation2 + $0x8] sm:$0xf] (!%p2149_p8), %v2935_v2  ;;  %274 = vst [vmem:[#allocation2] sm:$0xf] (!%p2149_p8), %v2935_v2  ;;  %v2151_v6 = vld [vmem:[%s3488_s2] ss:$0 sm:$0xff] (!%p2149_p8) }
  0x13   : > { %s2146_s7 = sshll.u32 %s257_s6, 2  ;;  %s2147_s11 = sshll.u32 %s3511_s19, 1  ;;  %v2445_v0 = vld [vmem:[%s3003_s30] sm:$0xff] (!%p2149_p8)   ;;  %275 = vst [vmem:[#allocation2 + $0x4] sm:$0x1] (!%p2149_p8), %v2935_v2  ;;  %v2470_v4 = vld [vmem:[%s3003_s30 + $0x8] sm:$0xff] (!%p2149_p8)  }
  0x14   : > { %s3008_s10 = scalar_lea.vmem %s3490_s4, %s2146_s7  ;;  %273 = sbr.rel (%p2149_p8) target bundleno = 50 (0x32), region = 40  ;;  %277 = vst [vmem:[#allocation2 + $0xc] sm:$0x1] (!%p2149_p8), %v2935_v2  ;;  %278 = vst [vmem:[#allocation2 + $0x10] sm:$0xf] (!%p2149_p8), %v2935_v2  ;;  %v2446_v3 = vunpack.c.l.bf16 (!%p2149_p8), %v2445_v0  ;;  %v2471_v5 = vld [vmem:[%s3003_s30 + $0x10] sm:$0xff] (!%p2149_p8)   ;;  %v2447_v7 = vunpack.c.h.bf16 (!%p2149_p8), %v2445_v0  ;;  %v2450_v8 = vunpack.c.l.bf16 (!%p2149_p8), %v2470_v4  ;;  %v2451_v9 = vunpack.c.h.bf16 (!%p2149_p8), %v2470_v4 }
  0x15   : > { %s264_s12 = scalar_select %p263_p7, %s2917_s18, 1 }
  0x16   : > { %279 = vst [vmem:[#allocation2 + $0x14] sm:$0x1] (!%p2149_p8), %v2935_v2  ;;  %280 = vst [vmem:[#allocation2 + $0x18] sm:$0xf] (!%p2149_p8), %v2935_v2  ;;  %v2472_v10 = vld [vmem:[%s3003_s30 + $0x18] sm:$0xff] (!%p2149_p8)   ;;  %v317_v11 = vmul.f32 (!%p2149_p8), %v2446_v3, %v2150_v1  ;;  %v2454_v12 = vunpack.c.l.bf16 (!%p2149_p8), %v2471_v5  ;;  %v2455_v13 = vunpack.c.h.bf16 (!%p2149_p8), %v2471_v5  ;;  %v318_v15 = vmul.f32 (!%p2149_p8), %v2447_v7, %v2150_v1 }
  0x17   : > { %s266_s13 = sadd.s32 %s2147_s11, %s264_s12  ;;  %281 = vst [vmem:[#allocation2 + $0x1c] sm:$0x1] (!%p2149_p8), %v2935_v2  ;;  %282 = vst [vmem:[#allocation2 + $0x20] sm:$0xf] (!%p2149_p8), %v2935_v2  ;;  %v2458_v14 = vunpack.c.l.bf16 (!%p2149_p8), %v2472_v10  ;;  %v319_v16 = vmul.f32 (!%p2149_p8), %v2450_v8, %v2150_v1  ;;  %v320_v17 = vmul.f32 (!%p2149_p8), %v2451_v9, %v2150_v1  ;;  %v2459_v18 = vunpack.c.h.bf16 (!%p2149_p8), %v2472_v10 }
  0x18   : > { %s2148_s14 = sshll.u32 %s266_s13, 3  ;;  %283 = vst [vmem:[#allocation2 + $0x24] sm:$0x1] (!%p2149_p8), %v2935_v2  ;;  %284 = vst [vmem:[#allocation2 + $0x28] sm:$0xf] (!%p2149_p8), %v2935_v2  ;;  %v332_v19 = vadd.f32 (!%p2149_p8), %v2151_v6, %v317_v11  ;;  %v321_v20 = vmul.f32 (!%p2149_p8), %v2454_v12, %v2150_v1  ;;  %v322_v21 = vmul.f32 (!%p2149_p8), %v2455_v13, %v2150_v1  ;;  %vm467_vm2 = vcmask (!%p2149_p8), 1040384  }
  0x19   : > { %s3014_s17 = scalar_lea.vmem %s3491_s5, %s2148_s14  ;;  %285 = vst [vmem:[#allocation2 + $0x2c] sm:$0x1] (!%p2149_p8), %v2935_v2  ;;  %286 = vst [vmem:[#allocation2 + $0x30] sm:$0xf] (!%p2149_p8), %v2935_v2  ;;  %v323_v22 = vmul.f32 (!%p2149_p8), %v2458_v14, %v2150_v1  ;;  %v333_v23 = vadd.f32 (!%p2149_p8), %v2151_v6, %v318_v15  ;;  %v334_v24 = vadd.f32 (!%p2149_p8), %v2151_v6, %v319_v16  ;;  %vm462_vm1 = vsmask.f32 (!%p2149_p8), 7938 }
  0x1a   : > { %287 = vst [vmem:[#allocation2 + $0x34] sm:$0x1] (!%p2149_p8), %v2935_v2  ;;  %288 = vst [vmem:[#allocation2 + $0x38] sm:$0xf] (!%p2149_p8), %v2935_v2  ;;  %v335_v25 = vadd.f32 (!%p2149_p8), %v2151_v6, %v320_v17  ;;  %v324_v26 = vmul.f32 (!%p2149_p8), %v2459_v18, %v2150_v1  ;;  %v340_v27 = vmax.f32 (!%p2149_p8), %v332_v19, 0.0  ;;  %v336_v28 = vadd.f32 (!%p2149_p8), %v2151_v6, %v321_v20 }
  0x1b   : > { %289 = vst [vmem:[#allocation2 + $0x3c] sm:$0x1] %v2935_v2  ;;  %290 = vst [vmem:[#allocation2 + $0x40] sm:$0xf] %v2935_v2  ;;  %v341_v29 = vmax.f32 %v333_v23, 0.0  ;;  %v342_v30 = vmax.f32 %v334_v24, 0.0  ;;  %v337_v32 = vadd.f32 %v2151_v6, %v322_v21  ;;  %v338_v33 = vadd.f32 %v2151_v6, %v323_v22 }
  0x1c   : > { %291 = vst [vmem:[#allocation2 + $0x44] sm:$0x1] %v2935_v2  ;;  %292 = vst [vmem:[#allocation2 + $0x48] sm:$0xf] %v2935_v2  ;;  %v2432_v31 = vpack.c.bf16 %v340_v27, %v340_v27  ;;  %v339_v34 = vadd.f32 %v2151_v6, %v324_v26  ;;  %v343_v37 = vmax.f32 %v335_v25, 0.0  ;;  %v344_v38 = vmax.f32 %v336_v28, 0.0 }
  0x1d   : > { %293 = vst [vmem:[#allocation2 + $0x4c] sm:$0x1] %v2935_v2  ;;  %v2433_v35 = vpack.c.bf16 %v341_v29, %v341_v29  ;;  %v2434_v36 = vpack.c.bf16 %v342_v30, %v342_v30  ;;  %vm468_vm3 = vsmask.f32 256  ;;  %v464_v41 = vld [vmem:[#allocation2 + $0x8] sm:$0xf]  ;;  %vm3029_vm4 = vmand %vm461_vm0, %vm462_vm1 }
  0x1e   : > { %v381_v39 = vshrl.u32 %v2432_v31, 16  ;;  %v384_v40 = vshll.u32 %v2432_v31, 16  ;;  %v470_v42 = vld [vmem:[#allocation2 + $0xc] sm:$0x1]  ;;  %v473_v49 = vld [vmem:[#allocation2 + $0x10] sm:$0xf]  ;;  %v2435_v51 = vpack.c.bf16 %v343_v37, %v343_v37  ;;  %v2436_v52 = vpack.c.bf16 %v344_v38, %v344_v38  ;;  %vm3034_vm5 = vmand %vm467_vm2, %vm468_vm3 }
  0x1f   : > { %v389_v43 = vshrl.u32 %v2433_v35, 16  ;;  %v392_v44 = vshll.u32 %v2433_v35, 16  ;;  %v397_v45 = vshrl.u32 %v2434_v36, 16  ;;  %v400_v46 = vshll.u32 %v2434_v36, 16  ;;  %v476_v50 = vld [vmem:[#allocation2 + $0x14] sm:$0x1] }
  0x20   : > { %v383_v47 = vrot.slane %v381_v39, 7  ;;  %v345_v53 = vmax.f32 %v337_v32, 0.0  ;;  %v479_v57 = vld [vmem:[#allocation2 + $0x18] sm:$0xf]  ;;  %v346_v58 = vmax.f32 %v338_v33, 0.0  ;;  %v347_v59 = vmax.f32 %v339_v34, 0.0 }
  0x21   : > { %v391_v55 = vrot.slane %v389_v43, 7  ;;  %v399_v56 = vrot.slane %v397_v45, 7  ;;  %v482_v62 = vld [vmem:[#allocation2 + $0x1c] sm:$0x1]  ;;  %v405_v63 = vshrl.u32 %v2435_v51, 16  ;;  %v408_v0 = vshll.u32 %v2435_v51, 16 }
  0x22   : > { %v386_v60 = vor.u32 %v384_v40, %v383_v47  ;;  %v387_v61 = vrot.slane %v383_v47, 4  ;;  %v413_v8 = vshrl.u32 %v2436_v52, 16  ;;  %v485_v13 = vld [vmem:[#allocation2 + $0x20] sm:$0xf]  ;;  %v488_v14 = vld [vmem:[#allocation2 + $0x24] sm:$0x1]  ;;  %v2437_v21 = vpack.c.bf16 %v345_v53, %v345_v53 }
  0x23   : > { %v394_v1 = vor.u32 %v392_v44, %v391_v55  ;;  %v395_v2 = vrot.slane %v391_v55, 4  ;;  %v402_v3 = vor.u32 %v400_v46, %v399_v56  ;;  %v403_v4 = vrot.slane %v399_v56, 4  ;;  %v491_v19 = vld [vmem:[#allocation2 + $0x28] sm:$0xf]  ;;  %v494_v20 = vld [vmem:[#allocation2 + $0x2c] sm:$0x1] }
  0x24   : > { %v465_v5 = vsel %vm3029_vm4, %v386_v60, %v464_v41  ;;  %v471_v6 = vsel %vm3034_vm5, %v387_v61, %v470_v42  ;;  %v407_v7 = vrot.slane %v405_v63, 7  ;;  %v415_v17 = vrot.slane %v413_v8, 7  ;;  %v497_v37 = vld [vmem:[#allocation2 + $0x30] sm:$0xf]  ;;  %v500_v38 = vld [vmem:[#allocation2 + $0x34] sm:$0x1] }
  0x25   : > { %466 = vst [vmem:[#allocation2 + $0x8] sm:$0xf] %v465_v5  ;;  %472 = vst [vmem:[#allocation2 + $0xc] sm:$0x1] %v471_v6  ;;  %v474_v9 = vsel %vm3029_vm4, %v394_v1, %v473_v49  ;;  %v477_v10 = vsel %vm3034_vm5, %v395_v2, %v476_v50  ;;  %v480_v11 = vsel %vm3029_vm4, %v402_v3, %v479_v57  ;;  %v416_v18 = vshll.u32 %v2436_v52, 16 }
  0x26   : > { %v483_v12 = vsel %vm3034_vm5, %v403_v4, %v482_v62  ;;  %475 = vst [vmem:[#allocation2 + $0x10] sm:$0xf] %v474_v9  ;;  %478 = vst [vmem:[#allocation2 + $0x14] sm:$0x1] %v477_v10  ;;  %v410_v15 = vor.u32 %v408_v0, %v407_v7  ;;  %v411_v16 = vrot.slane %v407_v7, 4  ;;  %v2438_v22 = vpack.c.bf16 %v346_v58, %v346_v58 }
  0x27   : > { %481 = vst [vmem:[#allocation2 + $0x18] sm:$0xf] %v480_v11  ;;  %484 = vst [vmem:[#allocation2 + $0x1c] sm:$0x1] %v483_v12  ;;  %v2439_v23 = vpack.c.bf16 %v347_v59, %v347_v59  ;;  %v418_v26 = vor.u32 %v416_v18, %v415_v17  ;;  %v419_v27 = vrot.slane %v415_v17, 4  ;;  %v421_v28 = vshrl.u32 %v2437_v21, 16 }
  0x28   : > { %v486_v24 = vsel %vm3029_vm4, %v410_v15, %v485_v13  ;;  %v489_v25 = vsel %vm3034_vm5, %v411_v16, %v488_v14  ;;  %v424_v29 = vshll.u32 %v2437_v21, 16  ;;  %v429_v30 = vshrl.u32 %v2438_v22, 16  ;;  %v503_v40 = vld [vmem:[#allocation2 + $0x38] sm:$0xf]  ;;  %v506_v41 = vld [vmem:[#allocation2 + $0x3c] sm:$0x1] }
  0x29   : > { %487 = vst [vmem:[#allocation2 + $0x20] sm:$0xf] %v486_v24  ;;  %490 = vst [vmem:[#allocation2 + $0x24] sm:$0x1] %v489_v25  ;;  %v432_v31 = vshll.u32 %v2438_v22, 16  ;;  %v492_v32 = vsel %vm3029_vm4, %v418_v26, %v491_v19  ;;  %v495_v33 = vsel %vm3034_vm5, %v419_v27, %v494_v20  ;;  %v437_v34 = vshrl.u32 %v2439_v23, 16 }
  0x2a   : > { %v440_v35 = vshll.u32 %v2439_v23, 16  ;;  %493 = vst [vmem:[#allocation2 + $0x28] sm:$0xf] %v492_v32  ;;  %496 = vst [vmem:[#allocation2 + $0x2c] sm:$0x1] %v495_v33  ;;  %v423_v36 = vrot.slane %v421_v28, 7 }
  0x2b   : > { %v431_v39 = vrot.slane %v429_v30, 7  ;;  %v439_v42 = vrot.slane %v437_v34, 7  ;;  %v509_v47 = vld [vmem:[#allocation2 + $0x40] sm:$0xf]  ;;  %v512_v49 = vld [vmem:[#allocation2 + $0x44] sm:$0x1] }
  0x2c   : > { %v426_v43 = vor.u32 %v424_v29, %v423_v36  ;;  %v427_v44 = vrot.slane %v423_v36, 4 }
  0x2d   : > { %v434_v45 = vor.u32 %v432_v31, %v431_v39  ;;  %v435_v46 = vrot.slane %v431_v39, 4  ;;  %v442_v50 = vor.u32 %v440_v35, %v439_v42  ;;  %v443_v51 = vrot.slane %v439_v42, 4 }
  0x2e   : > { %v498_v52 = vsel %vm3029_vm4, %v426_v43, %v497_v37  ;;  %v501_v53 = vsel %vm3034_vm5, %v427_v44, %v500_v38 }
  0x2f   : > { %v504_v55 = vsel %vm3029_vm4, %v434_v45, %v503_v40  ;;  %v507_v56 = vsel %vm3034_vm5, %v435_v46, %v506_v41  ;;  %499 = vst [vmem:[#allocation2 + $0x30] sm:$0xf] %v498_v52  ;;  %502 = vst [vmem:[#allocation2 + $0x34] sm:$0x1] %v501_v53  ;;  %v510_v57 = vsel %vm3029_vm4, %v442_v50, %v509_v47 }
  0x30   : > { %505 = vst [vmem:[#allocation2 + $0x38] sm:$0xf] %v504_v55  ;;  %508 = vst [vmem:[#allocation2 + $0x3c] sm:$0x1] %v507_v56  ;;  %v513_v58 = vsel %vm3034_vm5, %v443_v51, %v512_v49 }
  0x31   : > { %511 = vst [vmem:[#allocation2 + $0x40] sm:$0xf] %v510_v57  ;;  %514 = vst [vmem:[#allocation2 + $0x44] sm:$0x1] %v513_v58 }
  0x32 PF: > { %v2817_v59 = vld [vmem:[%s3489_s3 + $0x40] sm:$0xff]   ;;  %v2819_v48 = vld [vmem:[%s3489_s3 + $0x48] sm:$0xff]   ;;  %v2821_v61 = vld [vmem:[%s3489_s3 + $0x50] sm:$0xff]   ;;  %s2441_s27 = sshll.u32 %s2917_s18, 5  ;;  %vm543_vm6 = vsmask.f32 3328 }
  0x33   : > { %v2818_v60 = vld [vmem:[%s3489_s3 + $0x100] sm:$0xff]   ;;  %2564 = vmatprep.subr.bf16.mxu1 %v2817_v59  ;;  %v2820_v54 = vld [vmem:[%s3489_s3 + $0x108] sm:$0xff]   ;;  %v2822_v62 = vld [vmem:[%s3489_s3 + $0x110] sm:$0xff]   ;;  %s3104_s18 = scalar_lea.vmem [#allocation2], %s2441_s27  ;;  %vm544_vm7 = vsmask.f32 7440 }
  0x34   : > { %2644 = vmatprep.subr.bf16.mxu0 %v2818_v60  ;;  %2565 = vmatpush3.bf16.msra.mxu1 %v2817_v59  ;;  %v2823_v63 = vld [vmem:[%s3489_s3 + $0x58] sm:$0xff]   ;;  %v2825_v1 = vld [vmem:[%s3489_s3 + $0x60] sm:$0xff]   ;;  %v2827_v3 = vld [vmem:[%s3489_s3 + $0x68] sm:$0xff]   ;;  %vm845_vm9 = vcmask 1042432   ;;  %vm846_vm10 = vcmask 1046532  }
  0x35   : > { %2645 = vmatpush3.bf16.msra.mxu0 %v2818_v60  ;;  %2566 = vmatprep.subr.bf16.mxu1 %v2819_v48  ;;  %v2824_v0 = vld [vmem:[%s3489_s3 + $0x118] sm:$0xff]   ;;  %v2826_v2 = vld [vmem:[%s3489_s3 + $0x120] sm:$0xff]   ;;  %v2828_v7 = vld [vmem:[%s3489_s3 + $0x128] sm:$0xff]  }
  0x36   : > { %2646 = vmatprep.subr.bf16.mxu0 %v2820_v54  ;;  %v2829_v15 = vld [vmem:[%s3489_s3 + $0x70] sm:$0xff]   ;;  %v2831_v30 = vld [vmem:[%s3489_s3 + $0x78] sm:$0xff]   ;;  %vm3146_vm8 = vmor %vm543_vm6, %vm544_vm7 }
  0x37   : > { %v2830_v16 = vld [vmem:[%s3489_s3 + $0x130] sm:$0xff]   ;;  %v2832_v40 = vld [vmem:[%s3489_s3 + $0x138] sm:$0xff]   ;;  %v2833_v58 = vld [vmem:[%s3489_s3] sm:$0xff]  }
  0x38   : > { %2567 = vmatpush3.bf16.msra.mxu1 %v2819_v48  ;;  %v3107_v4 = vld [vmem:[%s3104_s18] sm:$0xf]  ;;  %v3110_v5 = vld [vmem:[%s3104_s18 + $0x8] sm:$0xf]  ;;  %v3113_v6 = vld [vmem:[%s3104_s18 + $0x4] sm:$0x1] }
  0x39   : > { %2647 = vmatpush3.bf16.msra.mxu0 %v2820_v54  ;;  %2568 = vmatprep.subr.bf16.mxu1 %v2821_v61  ;;  %v3119_v8 = vld [vmem:[%s3104_s18 + $0xc] sm:$0x1]  ;;  %v547_v9 = vshrl.u32 %v3107_v4, 16  ;;  %v550_v10 = vshll.u32 %v3107_v4, 16  ;;  %v556_v11 = vshll.u32 %v3113_v6, 16  ;;  %v561_v12 = vshrl.u32 %v3110_v5, 16  ;;  %vm3219_vm11 = vmor %vm845_vm9, %vm846_vm10 }
  0x3a   : > { %2648 = vmatprep.subr.bf16.mxu0 %v2822_v62  ;;  %v564_v13 = vshll.u32 %v3110_v5, 16  ;;  %v570_v14 = vshll.u32 %v3119_v8, 16  ;;  %v2261_v23 = vld [vmem:[%s3104_s18 + $0x8] sm:$0xf]  ;;  %v3135_v24 = vld [vmem:[%s3104_s18 + $0xc] sm:$0x1] }
  0x3b   : > { %v549_v17 = vrot.slane %v547_v9, 4  ;;  %v552_v18 = vrot.slane %v550_v10, 5  ;;  %v558_v19 = vrot.slane %v556_v11, 5  ;;  %v563_v20 = vrot.slane %v561_v12, 4  ;;  %v2263_v26 = vld [vmem:[%s3104_s18 + $0x10] sm:$0xf] }
  0x3c   : > { %2569 = vmatpush3.bf16.msra.mxu1 %v2821_v61  ;;  %v566_v21 = vrot.slane %v564_v13, 5  ;;  %v572_v22 = vrot.slane %v570_v14, 5  ;;  %v3139_v27 = vld [vmem:[%s3104_s18 + $0x14] sm:$0x1]  ;;  %v1137_v28 = vshrl.u32 %v2261_v23, 16  ;;  %v1140_v29 = vshll.u32 %v2261_v23, 16 }
  0x3d   : > { %2649 = vmatpush3.bf16.msra.mxu0 %v2822_v62  ;;  %2570 = vmatprep.subr.bf16.mxu1 %v2823_v63  ;;  %v553_v25 = vor.u32 %v552_v18, %v549_v17  ;;  %v1146_v33 = vshll.u32 %v3135_v24, 16  ;;  %v1151_v34 = vshrl.u32 %v2263_v26, 16  ;;  %v1154_v35 = vshll.u32 %v2263_v26, 16  ;;  %v3156_v44 = vld [vmem:[%s3104_s18 + $0x10] sm:$0xf]  ;;  %v3178_v60 = vld [vmem:[%s3489_s3 + $0x140] sm:$0xff]  }
  0x3e   : > { %2650 = vmatprep.subr.bf16.mxu0 %v2824_v0  ;;  %v567_v32 = vor.u32 %v566_v21, %v563_v20  ;;  %v1139_v37 = vrot.slane %v1137_v28, 4  ;;  %v1142_v38 = vrot.slane %v1140_v29, 5  ;;  %v1160_v39 = vshll.u32 %v3139_v27, 16  ;;  %v3161_v49 = vld [vmem:[%s3104_s18 + $0x18] sm:$0xf]  ;;  %v2888_v31 = vld [vmem:[%s3489_s3 + $0x208] sm:$0xff]  }
  0x3f   : > { %v554_v36 = vrot.slane %v553_v25, 4  ;;  %v1153_v42 = vrot.slane %v1151_v34, 4  ;;  %v1156_v43 = vrot.slane %v1154_v35, 5  ;;  %v1148_v47 = vrot.slane %v1146_v33, 5  ;;  %v3164_v50 = vld [vmem:[%s3104_s18 + $0x14] sm:$0x1] }
  0x40   : > { %2571 = vmatpush3.bf16.msra.mxu1 %v2823_v63  ;;  %v568_v41 = vrot.slane %v567_v32, 4  ;;  %v1143_v46 = vor.u32 %v1142_v38, %v1139_v37  ;;  %v1162_v53 = vrot.slane %v1160_v39, 5  ;;  %v3169_v55 = vld [vmem:[%s3104_s18 + $0x1c] sm:$0x1]  ;;  %v575_v56 = vshrl.u32 %v3156_v44, 16 }
  0x41   : > { %2651 = vmatpush3.bf16.msra.mxu0 %v2824_v0  ;;  %2572 = vmatprep.subr.bf16.mxu1 %v2825_v1  ;;  %v559_v45 = vsel %vm3146_vm8, %v554_v36, %v558_v19  ;;  %v1157_v52 = vor.u32 %v1156_v43, %v1153_v42  ;;  %v578_v48 = vshll.u32 %v3156_v44, 16  ;;  %v584_v54 = vshll.u32 %v3164_v50, 16  ;;  %v3189_v9 = vld [vmem:[%s3104_s18 + $0x1c] sm:$0x1]  ;;  %v2267_v10 = vld [vmem:[%s3104_s18 + $0x20] sm:$0xf] }
  0x42   : > { %2652 = vmatprep.subr.bf16.mxu0 %v2826_v2  ;;  %v573_v51 = vsel %vm3146_vm8, %v568_v41, %v572_v22  ;;  %v1144_v59 = vrot.slane %v1143_v46, 4  ;;  %v577_v62 = vrot.slane %v575_v56, 4  ;;  %v589_v63 = vshrl.u32 %v3161_v49, 16  ;;  %v3195_v14 = vld [vmem:[%s3104_s18 + $0x24] sm:$0x1]  ;;  %v2835_v36 = vld [vmem:[%s3489_s3 + $0x8] sm:$0xff]  }
  0x43   : > { %v2179_v57 = vcombine.low %v559_v45, %v573_v51  ;;  %v1158_v61 = vrot.slane %v1157_v52, 4  ;;  %v592_v0 = vshll.u32 %v3161_v49, 16  ;;  %v586_v17 = vrot.slane %v584_v54, 5  ;;  %v2836_v52 = vld [vmem:[%s3489_s3 + $0x148] sm:$0xff]   ;;  %v2296_v54 = vld [vmem:[%s3104_s18 + $0x10] sm:$0xe] }
  0x44   : > { %2573 = vmatpush3.bf16.msra.mxu1 %v2825_v1  ;;  %v2265_v1 = vld [vmem:[%s3104_s18 + $0x18] sm:$0xf]  ;;  %v591_v12 = vrot.slane %v589_v63, 4  ;;  %v1174_v22 = vshll.u32 %v3189_v9, 16  ;;  %v1179_v25 = vshrl.u32 %v2267_v10, 16  ;;  %v1182_v26 = vshll.u32 %v2267_v10, 16 }
  0x45   : > { %2653 = vmatpush3.bf16.msra.mxu0 %v2826_v2  ;;  %2574 = vmatprep.subr.bf16.mxu1 %v2827_v3  ;;  %v1149_v2 = vsel %vm3146_vm8, %v1144_v59, %v1148_v47  ;;  %v1163_v11 = vsel %vm3146_vm8, %v1158_v61, %v1162_v53  ;;  %v594_v13 = vrot.slane %v592_v0, 5  ;;  %v1165_v20 = vshrl.u32 %v2265_v1, 16  ;;  %v2838_v59 = vld [vmem:[%s3489_s3 + $0x150] sm:$0xff]   ;;  %v2844_v10 = vld [vmem:[%s3489_s3 + $0x168] sm:$0xff]  }
  0x46   : > { %2654 = vmatprep.subr.bf16.mxu0 %v2828_v7  ;;  %2580 = vmatprep.mubr.bf16.mxu1 %v2179_v57  ;;  %v1168_v21 = vshll.u32 %v2265_v1, 16  ;;  %v1188_v28 = vshll.u32 %v3195_v14, 16  ;;  %v1181_v34 = vrot.slane %v1179_v25, 4  ;;  %v1184_v35 = vrot.slane %v1182_v26, 5  ;;  %v2839_v57 = vld [vmem:[%s3489_s3 + $0x18] sm:$0xff]   ;;  %v2843_v1 = vld [vmem:[%s3489_s3 + $0x28] sm:$0xff]  }
  0x47   : > { %v595_v19 = vor.u32 %v594_v13, %v591_v12  ;;  %v2189_v37 = vcombine.low %v3107_v4, %v3110_v5  ;;  %v2837_v5 = vld [vmem:[%s3489_s3 + $0x10] sm:$0xff]   ;;  %v1332_v56 = vrot.slane %v3135_v24, 5  ;;  %v2841_v24 = vld [vmem:[%s3489_s3 + $0x20] sm:$0xff]   ;;  %v858_v12 = vrot.slane %v3164_v50, 5 }
  0x48   : > { %2575 = vmatpush3.bf16.msra.mxu1 %v2827_v3  ;;  %v580_v3 = vrot.slane %v578_v48, 5  ;;  %v1170_v32 = vrot.slane %v1168_v21, 5  ;;  %v1190_v41 = vrot.slane %v1188_v28, 5  ;;  %v1185_v43 = vor.u32 %v1184_v35, %v1181_v34  ;;  %v2295_v48 = vld [vmem:[%s3104_s18 + $0x8] sm:$0xe]  ;;  %v2850_v50 = vld [vmem:[%s3489_s3 + $0x80] sm:$0xff]  }
  0x49   : > { %2655 = vmatpush3.bf16.msra.mxu0 %v2828_v7  ;;  %2576 = vmatprep.subr.bf16.mxu1 %v2829_v15  ;;  %v598_v7 = vshll.u32 %v3169_v55, 16  ;;  %v596_v29 = vrot.slane %v595_v19, 4  ;;  %v2299_v61 = vrot.slane %v2295_v48, 9  ;;  %v1340_v13 = vrot.slane %v3189_v9, 5  ;;  %v833_v9 = vld [vmem:[%s3104_s18] sm:$0xe] }
  0x4a   : > { %2656 = vmatprep.subr.bf16.mxu0 %v2830_v16  ;;  %v1186_v46 = vrot.slane %v1185_v43, 4  ;;  %v834_v19 = vld [vmem:[%s3104_s18 + $0x8] sm:$0xe]  ;;  %v2190_v26 = vcombine.low %v3156_v44, %v3161_v49  ;;  %v2851_v49 = vld [vmem:[%s3489_s3 + $0x180] sm:$0xff]   ;;  %v2857_v43 = vld [vmem:[%s3489_s3 + $0x98] sm:$0xff]  }
  0x4b   : > { %v600_v18 = vrot.slane %v598_v7, 5  ;;  %v850_v7 = vrot.slane %v3113_v6, 5  ;;  %v2847_v6 = vld [vmem:[%s3489_s3 + $0x38] sm:$0xff]   ;;  %v2853_v44 = vld [vmem:[%s3489_s3 + $0x88] sm:$0xff]   ;;  %v2863_v48 = vld [vmem:[%s3489_s3 + $0xb0] sm:$0xff]  }
  0x4c   : > { %2577 = vmatpush3.bf16.msra.mxu1 %v2829_v15  ;;  %v2285_v15 = vcombine.low %v1149_v2, %v1163_v11  ;;  %v1191_v4 = vsel %vm3146_vm8, %v1186_v46, %v1190_v41  ;;  %v2842_v2 = vld [vmem:[%s3489_s3 + $0x160] sm:$0xff]   ;;  %v854_v11 = vrot.slane %v3119_v8, 5  ;;  %v1344_v8 = vrot.slane %v3195_v14, 5  ;;  %v2848_v14 = vld [vmem:[%s3489_s3 + $0x178] sm:$0xff]   ;;  %v2855_v41 = vld [vmem:[%s3489_s3 + $0x90] sm:$0xff]  }
  0x4d   : > { %2657 = vmatpush3.bf16.msra.mxu0 %v2830_v16  ;;  %2578 = vmatprep.subr.bf16.mxu1 %v2831_v30  ;;  %v581_v16 = vor.u32 %v580_v3, %v577_v62  ;;  %v601_v38 = vsel %vm3146_vm8, %v596_v29, %v600_v18  ;;  %v2300_v62 = vrot.slane %v2296_v54, 9  ;;  %v2845_v3 = vld [vmem:[%s3489_s3 + $0x30] sm:$0xff]   ;;  %v2859_v46 = vld [vmem:[%s3489_s3 + $0xa0] sm:$0xff]   ;;  %v2862_v54 = vld [vmem:[%s3489_s3 + $0x1a8] sm:$0xff]  }
  0x4e   : > { %2658 = vmatprep.subr.bf16.mxu0 %v2832_v40  ;;  %2660 = vmatprep.mubr.bf16.mxu0 %v2285_v15  ;;  %v2846_v15 = vld [vmem:[%s3489_s3 + $0x170] sm:$0xff]  }
  0x4f   : > { %v582_v23 = vrot.slane %v581_v16, 4  ;;  %v2297_v16 = vld [vmem:[%s3104_s18 + $0x18] sm:$0xe]  ;;  %v835_v29 = vld [vmem:[%s3104_s18 + $0x10] sm:$0xe] }
  0x50   : > { %2579 = vmatpush3.bf16.msra.mxu1 %v2831_v30  ;;  %v1167_v30 = vrot.slane %v1165_v20, 4  ;;  %v2301_v18 = vrot.slane %v2297_v16, 9  ;;  %v2199_v20 = vrot.slane %v833_v9, 9 }
  0x51   : > { %2659 = vmatpush3.bf16.msra.mxu0 %v2832_v40  ;;  %2584 = vmatprep.subr.bf16.mxu1 %v2833_v58  ;;  %v587_v33 = vsel %vm3146_vm8, %v582_v23, %v586_v17  ;;  %v1176_v40 = vrot.slane %v1174_v22, 5  ;;  %v2298_v17 = vld [vmem:[%s3104_s18 + $0x20] sm:$0xe]  ;;  %v2200_v22 = vrot.slane %v834_v19, 9  ;;  %v862_v23 = vrot.slane %v3169_v55, 5 }
  0x52   : > { %2664 = vmatprep.subr.bf16.mxu0 %v3178_v60  ;;  %v1171_v39 = vor.u32 %v1170_v32, %v1167_v30  ;;  %v2180_v42 = vcombine.low %v587_v33, %v601_v38  ;;  %v2302_v21 = vrot.slane %v2298_v17, 9  ;;  %v851_v25 = vsel %vm3219_vm11, %v2199_v20, %v850_v7  ;;  %v836_v30 = vld [vmem:[%s3104_s18 + $0x18] sm:$0xe]  ;;  %v2885_v17 = vld [vmem:[%s3104_s18 + $0x8] ss:$8 sps:$4 sm:$0xff]  }
  0x53   : > { %v855_v28 = vsel %vm3219_vm11, %v2200_v22, %v854_v11  ;;  %v2201_v33 = vrot.slane %v835_v29, 9  ;;  %v2202_v55 = vrot.slane %v836_v30, 9  ;;  %v1341_v34 = vsel %vm3219_vm11, %v2301_v18, %v1340_v13  ;;  %v2867_v11 = vld [vmem:[%s3489_s3 + $0xc0] sm:$0xff]   ;;  %v2873_v20 = vld [vmem:[%s3489_s3 + $0xd0] sm:$0xff]   ;;  %v2367_v29 = vld [vmem:[%s3104_s18 + $0x28] sm:$0xf] }
  0x54   : > { %v1172_v45 = vrot.slane %v1171_v39, 4  ;;  %2581 = vmatmul.mubr.bf16.vlgmr.msra.gmra.mrb[0].mxu1 %v2180_v42  ;;  %v2219_v32 = vcombine.low %v851_v25, %v855_v28  ;;  %v1345_v35 = vsel %vm3219_vm11, %v2302_v21, %v1344_v8  ;;  %v2868_v42 = vld [vmem:[%s3104_s18 + $0x10] ss:$8 sps:$4 sm:$0xff]   ;;  %v2871_v8 = vld [vmem:[%s3489_s3 + $0xc8] sm:$0xff]   ;;  %v2877_v25 = vld [vmem:[%s3489_s3 + $0xe0] sm:$0xff]  }
  0x55   : > { %2585 = vmatpush3.bf16.msra.mxu1 %v2833_v58  ;;  %2600 = vmatprep.mubr.bf16.mxu1 %v2189_v37  ;;  %v1336_v58 = vrot.slane %v3139_v27, 5  ;;  %v2840_v27 = vld [vmem:[%s3489_s3 + $0x158] sm:$0xff]   ;;  %v3302_v37 = vsel %vm3219_vm11, %v2202_v55, %v862_v23  ;;  %v2320_v39 = vcombine.low %v1341_v34, %v1345_v35  ;;  %v2870_v19 = vld [vmem:[%s3104_s18 + $0x20] ss:$8 sps:$4 sm:$0xff]   ;;  %v1661_v55 = vshrl.u32 %v2367_v29, 16 }
  0x56   : > { %v1177_v47 = vsel %vm3146_vm8, %v1172_v45, %v1176_v40  ;;  %2586 = vmatprep.subr.bf16.mxu1 %v2835_v36  ;;  %v2854_v40 = vld [vmem:[%s3489_s3 + $0x188] sm:$0xff]   ;;  %v2856_v45 = vld [vmem:[%s3489_s3 + $0x190] sm:$0xff]   ;;  %v2875_v23 = vld [vmem:[%s3489_s3 + $0xd8] sm:$0xff]   ;;  %v1664_v34 = vshll.u32 %v2367_v29, 16 }
  0x57   : > { %v2286_v51 = vcombine.low %v1177_v47, %v1191_v4  ;;  %v1337_v63 = vsel %vm3219_vm11, %v2300_v62, %v1336_v58  ;;  %v2858_v47 = vld [vmem:[%s3489_s3 + $0x198] sm:$0xff]   ;;  %v2861_v4 = vld [vmem:[%s3489_s3 + $0xa8] sm:$0xff]   ;;  %v2365_v28 = vld [vmem:[%s3104_s18 + $0x20] sm:$0xf] }
  0x58   : > { %v3343_v62 = vld [vmem:[%s3104_s18 + $0x1c] sm:$0x1]  ;;  %v2872_v21 = vld [vmem:[%s3489_s3 + $0x1c8] sm:$0xff]   ;;  %v2878_v35 = vld [vmem:[%s3489_s3 + $0x1e0] sm:$0xff]  }
  0x59   : > { %2661 = vmatmul.mubr.bf16.vlgmr.msra.gmra.mrb[0].mxu0 %v2286_v51  ;;  %2587 = vmatpush3.bf16.msra.mxu1 %v2835_v36  ;;  %v3298_v36 = vsel %vm3219_vm11, %v2201_v33, %v858_v12  ;;  %v2860_v51 = vld [vmem:[%s3489_s3 + $0x1a0] sm:$0xff]   ;;  %v2866_v12 = vld [vmem:[%s3489_s3 + $0x1b8] sm:$0xff]   ;;  %v2879_v30 = vld [vmem:[%s3489_s3 + $0xe8] sm:$0xff]   ;;  %v1650_v33 = vshll.u32 %v2365_v28, 16 }
  0x5a   : > { %2665 = vmatpush3.bf16.msra.mxu0 %v3178_v60  ;;  %2588 = vmatprep.subr.bf16.mxu1 %v2837_v5  ;;  %v1333_v60 = vsel %vm3219_vm11, %v2299_v61, %v1332_v56  ;;  %v2220_v38 = vcombine.low %v3298_v36, %v3302_v37  ;;  %v3340_v61 = vld [vmem:[%s3104_s18 + $0x14] sm:$0x1]  ;;  %v1663_v37 = vrot.slane %v1661_v55, 4 }
  0x5b   : > { %2666 = vmatprep.subr.bf16.mxu0 %v2836_v52  ;;  %v2319_v0 = vcombine.low %v1333_v60, %v1337_v63  ;;  %v1652_v36 = vrot.slane %v1650_v33, 5 }
  0x5d   : > { %2589 = vmatpush3.bf16.msra.mxu1 %v2837_v5  ;;  %2680 = vmatprep.mubr.bf16.mxu0 %v2319_v0  ;;  %v2361_v5 = vld [vmem:[%s3104_s18 + $0x10] sm:$0xf]  ;;  %v2865_v0 = vld [vmem:[%s3489_s3 + $0xb8] sm:$0xff]  }
  0x5e   : > { %2667 = vmatpush3.bf16.msra.mxu0 %v2836_v52  ;;  %2590 = vmatprep.subr.bf16.mxu1 %v2839_v57  ;;  %v2363_v52 = vld [vmem:[%s3104_s18 + $0x18] sm:$0xf]  ;;  %v1619_v56 = vshrl.u32 %v2361_v5, 16 }
  0x5f   : > { %2668 = vmatprep.subr.bf16.mxu0 %v2838_v59  ;;  %v1633_v58 = vshrl.u32 %v2363_v52, 16 }
  0x61   : > { %2591 = vmatpush3.bf16.msra.mxu1 %v2839_v57  ;;  %v1622_v57 = vshll.u32 %v2361_v5, 16  ;;  %v1635_v60 = vrot.slane %v1633_v58, 4  ;;  %v2395_v5 = vld [vmem:[%s3104_s18 + $0x10] sm:$0xe] }
  0x62   : > { %2669 = vmatpush3.bf16.msra.mxu0 %v2838_v59  ;;  %2592 = vmatprep.subr.bf16.mxu1 %v2841_v24  ;;  %v1636_v59 = vshll.u32 %v2363_v52, 16 }
  0x63   : > { %2670 = vmatprep.subr.bf16.mxu0 %v2840_v27 }
  0x64   : > { %v1638_v63 = vrot.slane %v1636_v59, 5  ;;  %v2884_v59 = vld [vmem:[%s3489_s3 + $0x1f8] sm:$0xff]  }
  0x65   : > { %2593 = vmatpush3.bf16.msra.mxu1 %v2841_v24  ;;  %v1621_v24 = vrot.slane %v1619_v56, 4 }
  0x66   : > { %2671 = vmatpush3.bf16.msra.mxu0 %v2840_v27  ;;  %2594 = vmatprep.subr.bf16.mxu1 %v2843_v1  ;;  %v1624_v27 = vrot.slane %v1622_v57, 5 }
  0x67   : > { %2672 = vmatprep.subr.bf16.mxu0 %v2842_v2 }
  0x68   : > { %v1625_v7 = vor.u32 %v1624_v27, %v1621_v24  ;;  %v1818_v27 = vrot.slane %v3343_v62, 5 }
  0x69   : > { %2595 = vmatpush3.bf16.msra.mxu1 %v2843_v1  ;;  %v2864_v1 = vld [vmem:[%s3489_s3 + $0x1b0] sm:$0xff]  }
  0x6a   : > { %2673 = vmatpush3.bf16.msra.mxu0 %v2842_v2  ;;  %2596 = vmatprep.subr.bf16.mxu1 %v2845_v3  ;;  %v1628_v2 = vshll.u32 %v3340_v61, 16  ;;  %v1626_v13 = vrot.slane %v1625_v7, 4  ;;  %v2889_v7 = vld [vmem:[%s3489_s3 + $0x210] sm:$0xff]  }
  0x6b   : > { %2674 = vmatprep.subr.bf16.mxu0 %v2844_v10 }
  0x6d   : > { %2597 = vmatpush3.bf16.msra.mxu1 %v2845_v3  ;;  %v1642_v3 = vshll.u32 %v3343_v62, 16 }
  0x6e   : > { %2675 = vmatpush3.bf16.msra.mxu0 %v2844_v10  ;;  %2598 = vmatprep.subr.bf16.mxu1 %v2847_v6  ;;  %v1639_v10 = vor.u32 %v1638_v63, %v1635_v60  ;;  %v2886_v60 = vld [vmem:[%s3104_s18 + $0x18] ss:$8 sps:$4 sm:$0xff]  }
  0x6f   : > { %2676 = vmatprep.subr.bf16.mxu0 %v2846_v15  ;;  %v1644_v16 = vrot.slane %v1642_v3, 5 }
  0x71   : > { %2599 = vmatpush3.bf16.msra.mxu1 %v2847_v6  ;;  %v1640_v6 = vrot.slane %v1639_v10, 4  ;;  %v2890_v10 = vld [vmem:[%s3489_s3 + $0x218] sm:$0xff]  }
  0x72   : > { %2677 = vmatpush3.bf16.msra.mxu0 %v2846_v15  ;;  %2604 = vmatprep.subr.bf16.mxu1 %v2850_v50  ;;  %v1630_v15 = vrot.slane %v1628_v2, 5 }
  0x73   : > { %2678 = vmatprep.subr.bf16.mxu0 %v2848_v14  ;;  %v1645_v18 = vsel %vm3146_vm8, %v1640_v6, %v1644_v16  ;;  %v2398_v6 = vld [vmem:[%s3104_s18 + $0x28] sm:$0xe] }
  0x74   : > { %2601 = vmatmul.mubr.bf16.vlgmr.msra.gmra.mrb[0].mxu1 %v2190_v26  ;;  %v1631_v9 = vsel %vm3146_vm8, %v1626_v13, %v1630_v15  ;;  %v2876_v26 = vld [vmem:[%s3489_s3 + $0x1d8] sm:$0xff]   ;;  %v2893_v13 = vld [vmem:[%s3489_s3 + $0x230] sm:$0xff]   ;;  %v2397_v15 = vld [vmem:[%s3104_s18 + $0x20] sm:$0xe] }
  0x75   : > { %2605 = vmatpush3.bf16.msra.mxu1 %v2850_v50  ;;  %2620 = vmatprep.mubr.bf16.mxu1 %v2219_v32  ;;  %v2869_v50 = vld [vmem:[%s3489_s3 + $0x1c0] sm:$0xff]   ;;  %v2385_v22 = vcombine.low %v1631_v9, %v1645_v18  ;;  %v1647_v32 = vshrl.u32 %v2365_v28, 16  ;;  %v2401_v16 = vrot.slane %v2397_v15, 9  ;;  %v2894_v9 = vld [vmem:[%s3489_s3 + $0x238] sm:$0xff]  }
  0x76   : > { %2679 = vmatpush3.bf16.msra.mxu0 %v2848_v14  ;;  %2606 = vmatprep.subr.bf16.mxu1 %v2853_v44  ;;  %v2874_v14 = vld [vmem:[%s3489_s3 + $0x1d0] sm:$0xff]  }
  0x77   : > { %2684 = vmatprep.subr.bf16.mxu0 %v2851_v49 }
  0x79   : > { %2681 = vmatmul.mubr.bf16.vlgmr.msra.gmra.mrb[0].mxu0 %v2320_v39  ;;  %2607 = vmatpush3.bf16.msra.mxu1 %v2853_v44  ;;  %v2881_v44 = vld [vmem:[%s3489_s3 + $0xf0] sm:$0xff]   ;;  %v2880_v39 = vld [vmem:[%s3489_s3 + $0x1e8] sm:$0xff]  }
  0x7a   : > { %2685 = vmatpush3.bf16.msra.mxu0 %v2851_v49  ;;  %2608 = vmatprep.subr.bf16.mxu1 %v2855_v41  ;;  %v1649_v49 = vrot.slane %v1647_v32, 4 }
  0x7b   : > { %2686 = vmatprep.subr.bf16.mxu0 %v2854_v40  ;;  %2700 = vmatprep.mubr.bf16.mxu0 %v2868_v42  ;;  %v2883_v42 = vld [vmem:[%s3489_s3 + $0xf8] sm:$0xff]  }
  0x7d   : > { %2609 = vmatpush3.bf16.msra.mxu1 %v2855_v41  ;;  %v3410_v41 = vld [vmem:[%s3104_s18 + $0x2c] sm:$0x1] }
  0x7e   : > { %2687 = vmatpush3.bf16.msra.mxu0 %v2854_v40  ;;  %2610 = vmatprep.subr.bf16.mxu1 %v2857_v43  ;;  %v3407_v40 = vld [vmem:[%s3104_s18 + $0x24] sm:$0x1] }
  0x7f   : > { %2688 = vmatprep.subr.bf16.mxu0 %v2856_v45 }
  0x81   : > { %2611 = vmatpush3.bf16.msra.mxu1 %v2857_v43  ;;  %v1653_v43 = vor.u32 %v1652_v36, %v1649_v49 }
  0x82   : > { %2689 = vmatpush3.bf16.msra.mxu0 %v2856_v45  ;;  %2612 = vmatprep.subr.bf16.mxu1 %v2859_v46  ;;  %v1656_v45 = vshll.u32 %v3407_v40, 16 }
  0x83   : > { %2690 = vmatprep.subr.bf16.mxu0 %v2858_v47  ;;  %v1654_v52 = vrot.slane %v1653_v43, 4 }
  0x84   : > { %v1658_v56 = vrot.slane %v1656_v45, 5 }
  0x85   : > { %2613 = vmatpush3.bf16.msra.mxu1 %v2859_v46 }
  0x86   : > { %2691 = vmatpush3.bf16.msra.mxu0 %v2858_v47  ;;  %2614 = vmatprep.subr.bf16.mxu1 %v2861_v4  ;;  %v1670_v47 = vshll.u32 %v3410_v41, 16  ;;  %v1659_v63 = vsel %vm3146_vm8, %v1654_v52, %v1658_v56 }
  0x87   : > { %2692 = vmatprep.subr.bf16.mxu0 %v2860_v51 }
  0x88   : > { %v1672_v58 = vrot.slane %v1670_v47, 5 }
  0x89   : > { %2615 = vmatpush3.bf16.msra.mxu1 %v2861_v4  ;;  %v2882_v4 = vld [vmem:[%s3489_s3 + $0x1f0] sm:$0xff]  }
  0x8a   : > { %2693 = vmatpush3.bf16.msra.mxu0 %v2860_v51  ;;  %2616 = vmatprep.subr.bf16.mxu1 %v2863_v48  ;;  %v2396_v51 = vld [vmem:[%s3104_s18 + $0x18] sm:$0xe] }
  0x8b   : > { %2694 = vmatprep.subr.bf16.mxu0 %v2862_v54  ;;  %v2400_v24 = vrot.slane %v2396_v51, 9 }
  0x8d   : > { %2617 = vmatpush3.bf16.msra.mxu1 %v2863_v48  ;;  %v2399_v48 = vrot.slane %v2395_v5, 9  ;;  %v1819_v62 = vsel %vm3219_vm11, %v2400_v24, %v1818_v27 }
  0x8e   : > { %2695 = vmatpush3.bf16.msra.mxu0 %v2862_v54  ;;  %2618 = vmatprep.subr.bf16.mxu1 %v2865_v0  ;;  %v1814_v54 = vrot.slane %v3340_v61, 5 }
  0x8f   : > { %2696 = vmatprep.subr.bf16.mxu0 %v2864_v1 }
  0x90   : > { %v1815_v61 = vsel %vm3219_vm11, %v2399_v48, %v1814_v54  ;;  %v1989_v48 = vlaneseq }
  0x91   : > { %2619 = vmatpush3.bf16.msra.mxu1 %v2865_v0  ;;  %v2419_v3 = vcombine.low %v1815_v61, %v1819_v62 }
  0x92   : > { %2697 = vmatpush3.bf16.msra.mxu0 %v2864_v1  ;;  %2624 = vmatprep.subr.bf16.mxu1 %v2867_v11  ;;  %v2887_v1 = vld [vmem:[%s3489_s3 + $0x200] sm:$0xff]   ;;  %v1990_v27 = vshrl.u32 %v1989_v48, 7 }
  0x93   : > { %2698 = vmatprep.subr.bf16.mxu0 %v2866_v12 }
  0x94   : > { %2621 = vmatmul.mubr.bf16.vlgmr.msra.gmra.mrb[0].mxu1 %v2220_v38  ;;  %v1666_v38 = vrot.slane %v1664_v34, 5  ;;  %vm1992_vm12 = vcmp.eq.s32.totalorder %v1990_v27, 1  ;;  %vm1991_vm13 = vcmp.eq.s32.totalorder %v1990_v27, 0 }
  0x95   : > { %2625 = vmatpush3.bf16.msra.mxu1 %v2867_v11  ;;  %2640 = vmatprep.mubr.bf16.mxu1 %v2885_v17  ;;  %v2891_v11 = vld [vmem:[%s3489_s3 + $0x220] sm:$0xff]   ;;  %v1822_v17 = vrot.slane %v3407_v40, 5 }
  0x96   : > { %2699 = vmatpush3.bf16.msra.mxu0 %v2866_v12  ;;  %2626 = vmatprep.subr.bf16.mxu1 %v2871_v8  ;;  %v1667_v46 = vor.u32 %v1666_v38, %v1663_v37  ;;  %v2892_v12 = vld [vmem:[%s3489_s3 + $0x228] sm:$0xff]  }
  0x97   : > { %2704 = vmatprep.subr.bf16.mxu0 %v2869_v50  ;;  %v1823_v18 = vsel %vm3219_vm11, %v2401_v16, %v1822_v17 }
  0x98   : > { %v1668_v57 = vrot.slane %v1667_v46, 4 }
  0x99   : > { %2701 = vmatmul.mubr.bf16.vlgmr.msra.gmra.mrb[0].mxu0 %v2870_v19  ;;  %2627 = vmatpush3.bf16.msra.mxu1 %v2871_v8  ;;  %v2402_v8 = vrot.slane %v2398_v6, 9 }
  0x9a   : > { %2705 = vmatpush3.bf16.msra.mxu0 %v2869_v50  ;;  %2628 = vmatprep.subr.bf16.mxu1 %v2873_v20  ;;  %v1673_v0 = vsel %vm3146_vm8, %v1668_v57, %v1672_v58  ;;  %v1826_v50 = vrot.slane %v3410_v41, 5 }
  0x9b   : > { %2706 = vmatprep.subr.bf16.mxu0 %v2872_v21  ;;  %2720 = vmatprep.mubr.bf16.mxu0 %v2385_v22  ;;  %v2386_v2 = vcombine.low %v1659_v63, %v1673_v0 }
  0x9c   : > { %v1827_v19 = vsel %vm3219_vm11, %v2402_v8, %v1826_v50 }
  0x9d   : > { %2629 = vmatpush3.bf16.msra.mxu1 %v2873_v20  ;;  %v2420_v20 = vcombine.low %v1823_v18, %v1827_v19 }
  0x9e   : > { %2707 = vmatpush3.bf16.msra.mxu0 %v2872_v21  ;;  %2630 = vmatprep.subr.bf16.mxu1 %v2875_v23 }
  0x9f   : > { %2708 = vmatprep.subr.bf16.mxu0 %v2874_v14 }
  0xa1   : > { %2631 = vmatpush3.bf16.msra.mxu1 %v2875_v23 }
  0xa2   : > { %2709 = vmatpush3.bf16.msra.mxu0 %v2874_v14  ;;  %2632 = vmatprep.subr.bf16.mxu1 %v2877_v25 }
  0xa3   : > { %2710 = vmatprep.subr.bf16.mxu0 %v2876_v26 }
  0xa5   : > { %2633 = vmatpush3.bf16.msra.mxu1 %v2877_v25 }
  0xa6   : > { %2711 = vmatpush3.bf16.msra.mxu0 %v2876_v26  ;;  %2634 = vmatprep.subr.bf16.mxu1 %v2879_v30 }
  0xa7   : > { %2712 = vmatprep.subr.bf16.mxu0 %v2878_v35 }
  0xa9   : > { %2635 = vmatpush3.bf16.msra.mxu1 %v2879_v30 }
  0xaa   : > { %2713 = vmatpush3.bf16.msra.mxu0 %v2878_v35  ;;  %2636 = vmatprep.subr.bf16.mxu1 %v2881_v44 }
  0xab   : > { %2714 = vmatprep.subr.bf16.mxu0 %v2880_v39 }
  0xad   : > { %2637 = vmatpush3.bf16.msra.mxu1 %v2881_v44 }
  0xae   : > { %2715 = vmatpush3.bf16.msra.mxu0 %v2880_v39  ;;  %2638 = vmatprep.subr.bf16.mxu1 %v2883_v42 }
  0xaf   : > { %2716 = vmatprep.subr.bf16.mxu0 %v2882_v4 }
  0xb1   : > { %2639 = vmatpush3.bf16.msra.mxu1 %v2883_v42 }
  0xb2   : > { %2717 = vmatpush3.bf16.msra.mxu0 %v2882_v4 }
  0xb3   : > { %2718 = vmatprep.subr.bf16.mxu0 %v2884_v59 }
  0xb4   : > { %2641 = vmatmul.mubr.bf16.vlgmr.msra.gmra.mrb[0].mxu1 %v2886_v60 }
  0xb6   : > { %2719 = vmatpush3.bf16.msra.mxu0 %v2884_v59 }
  0xb7   : > { %2724 = vmatprep.subr.bf16.mxu0 %v2887_v1 }
  0xb9   : > { %2721 = vmatmul.mubr.bf16.vlgmr.msra.gmra.mrb[0].mxu0 %v2386_v2 }
  0xba   : > { %2725 = vmatpush3.bf16.msra.mxu0 %v2887_v1  ;;  %2740 = vmatprep.mubr.bf16.mxu0 %v2419_v3 }
  0xbb   : > { %2726 = vmatprep.subr.bf16.mxu0 %v2888_v31 }
  0xbe   : > { %2727 = vmatpush3.bf16.msra.mxu0 %v2888_v31 }
  0xbf   : > { %2728 = vmatprep.subr.bf16.mxu0 %v2889_v7 }
  0xc2   : > { %2729 = vmatpush3.bf16.msra.mxu0 %v2889_v7 }
  0xc3   : > { %2730 = vmatprep.subr.bf16.mxu0 %v2890_v10 }
  0xc6   : > { %2731 = vmatpush3.bf16.msra.mxu0 %v2890_v10 }
  0xc7   : > { %2732 = vmatprep.subr.bf16.mxu0 %v2891_v11 }
  0xca   : > { %2733 = vmatpush3.bf16.msra.mxu0 %v2891_v11 }
  0xcb   : > { %2734 = vmatprep.subr.bf16.mxu0 %v2892_v12 }
  0xce   : > { %2735 = vmatpush3.bf16.msra.mxu0 %v2892_v12 }
  0xcf   : > { %2736 = vmatprep.subr.bf16.mxu0 %v2893_v13 }
  0xd2   : > { %2737 = vmatpush3.bf16.msra.mxu0 %v2893_v13 }
  0xd3   : > { %2738 = vmatprep.subr.bf16.mxu0 %v2894_v9 }
  0xd6   : > { %2739 = vmatpush3.bf16.msra.mxu0 %v2894_v9 }
  0xd9   : > { %2741 = vmatmul.mubr.bf16.vlgmr.msra.gmra.mrb[0].mxu0 %v2420_v20 }
 0x187   : > { %v2642_v21 = vpop.f32.mrb[0].mxu1 }
 0x188   : > { %v1109_v22 = vpop.f32.mrb[1].mxu1 }
 0x189   : > { %v2643_v23 = vpop.f32.mrb[2].mxu1 }
 0x18a   : > { %v1112_v14 = vpop.f32.mrb[3].mxu1 }
 0x1ac   : > { %v2742_v25 = vpop.f32.mrb[0].mxu0 }
 0x1ad   : > { %v2744_v26 = vadd.f32 %v2742_v25, %v2642_v21  ;;  %v1935_v28 = vpop.f32.mrb[1].mxu0 }
 0x1ae   : > { %v2745_v29 = vadd.f32 %v1935_v28, %v1109_v22  ;;  %v2743_v30 = vpop.f32.mrb[2].mxu0 }
 0x1af   : > { %v2746_v32 = vadd.f32 %v2743_v30, %v2643_v23  ;;  %v1938_v33 = vpop.f32.mrb[3].mxu0 }
 0x1b0   : > { %v2747_v55 = vadd.f32 %v1938_v33, %v1112_v14 }
 0x1b1   : > { %v2468_v53 = vpack.c.bf16 %v2746_v32, %v2744_v26 }
 0x1b2   : > { %v2463_v34 = vpack.c.bf16 %v2747_v55, %v2745_v29  ;;  %v1962_v35 = vadd.f32 %v2747_v55, %v2745_v29 }
 0x1b3   : > { %2473 = vst [vmem:[%s3008_s10 + $0x8] sm:$0xff] %v2468_v53  }
 0x1b4   : > { %2464 = vst [vmem:[%s3008_s10] sm:$0xff] %v2463_v34   ;;  %v1963_v44 = vadd.f32 %v2744_v26, %v1962_v35 }
 0x1b6   : > { %v1964_v49 = vadd.f32 %v2746_v32, %v1963_v44 }
 0x1b8   : > { %v1965_v36 = vrot.slane %v1964_v49, 4 }
 0x1ba   : > { %v1966_v37 = vadd.f32 %v1965_v36, %v1964_v49 }
 0x1bc   : > { %v1967_v38 = vrot.slane %v1966_v37, 2 }
 0x1be   : > { %v1968_v39 = vadd.f32 %v1967_v38, %v1966_v37 }
 0x1c0   : > { %v1969_v40 = vrot.slane %v1968_v39, 1 }
 0x1c2   : > { %v1970_v41 = vadd.f32 %v1969_v40, %v1968_v39 }
 0x1c4   : > { %v1971_v42 = vmul.f32 0.03125, %v1970_v41 }
 0x1c6   : > { %v1972_v43 = vsub.f32 %v2745_v29, %v1971_v42  ;;  %v1973_v45 = vsub.f32 %v2747_v55, %v1971_v42  ;;  %v1974_v46 = vsub.f32 %v2744_v26, %v1971_v42  ;;  %v1975_v47 = vsub.f32 %v2746_v32, %v1971_v42 }
 0x1c8   : > { %v1976_v4 = vmul.f32 %v1972_v43, %v1972_v43  ;;  %v1977_v5 = vmul.f32 %v1973_v45, %v1973_v45  ;;  %v1978_v51 = vmul.f32 %v1974_v46, %v1974_v46  ;;  %v1979_v56 = vmul.f32 %v1975_v47, %v1975_v47 }
 0x1ca   : > { %v1980_v52 = vadd.f32 %v1977_v5, %v1976_v4 }
 0x1cc   : > { %v1981_v57 = vadd.f32 %v1980_v52, %v1978_v51 }
 0x1ce   : > { %v1982_v58 = vadd.f32 %v1981_v57, %v1979_v56 }
 0x1d0   : > { %v1983_v59 = vrot.slane %v1982_v58, 4 }
 0x1d2   : > { %v1984_v54 = vadd.f32 %v1983_v59, %v1982_v58 }
 0x1d4   : > { %v1985_v24 = vrot.slane %v1984_v54, 2 }
 0x1d6   : > { %v1986_v60 = vadd.f32 %v1985_v24, %v1984_v54 }
 0x1d8   : > { %v1987_v63 = vrot.slane %v1986_v60, 1 }
 0x1da   : > { %v1988_v0 = vadd.f32 %v1987_v63, %v1986_v60 }
 0x1dc   : > { %v1993_v1 = vsel %vm1992_vm12, %v1988_v0, 0.0 }
 0x1dd   : > { %v1994_v61 = vsel %vm1991_vm13, %v1970_v41, %v1993_v1 }
 0x1de   : > { %1995 = vst [vmem:[%s3014_s17] sm:$0xff] %v1994_v61 }
 0x1df PF: > { %s16_s22 = sadd.s32 1, %s2933_s22   ;;  %s3500_s18 = smov %s2925_s20 }
 0x1e0   : > { %p13_p9 = scmp.ge.s32.totalorder %s16_s22, 6   ;;  %s3501_s19 = smov %s2929_s21 }
 0x1e1   : > { %s3502_s20 = smov %s3505_s23  ;;  %s3503_s21 = smov %s3509_s24 }
 0x1e2   :  { %15 = sbr.rel (!%p13_p9) target bundleno = 3 (0x3), region = 94 }

</bundles_post_ra>
